<compile_context>
chip_gen: v7x
topology: tpu7x:2x2x1
jax: 0.10.0
libtpu: 0.0.40
codegen_flags: <defaults>
</compile_context>

<pallas_src>
import functools

import numpy as np
import jax
import jax.numpy as jnp
from jax.experimental import pallas as pl
from jax.experimental.pallas import tpu as pltpu

K = 3            # Conv3d kernel size (both layers)
LANE = 128       # TPU lane width; Cout (and conv2's Cin) padded to this
C1_IN, C1_OUT = 6, 100   # Conv3d(6, 100, 3)
C2_OUT = 32              # Conv3d(100, 32, 3)
CIN1_PAD = 8     # conv1 input channels padded 6 -> 8 (sublane-aligned contraction)
ROW_CHUNK = 128  # output rows accumulated per register-resident f32 chunk


# ----------------------------------------------------------------------------
# Pallas kernel: one (batch, output-depth) step of a 3x3x3 valid conv,
# in-kernel im2col via 27 shifted matmuls accumulated in f32.
# ----------------------------------------------------------------------------
def _conv_plane_kernel(x0_ref, x1_ref, x2_ref, w_ref, b_ref, o_ref,
                       *, W, R, HW, cp):
    """x{a}_ref: (HW, Cin) bf16 input plane at depth d+a (rows = h*W + w).
    w_ref: (27, Cin, cp) bf16 per-tap weights, tap-major (a, b, c).
    b_ref: (1, cp) f32 bias.   o_ref: (HW, cp) output plane.
    Output row h*W + w holds the conv result at (h, w) whenever h < H-2 and
    w < W-2; other rows are wrapped/zero "don't care" padding that downstream
    consumers never read for valid positions.
    """
    x_refs = (x0_ref, x1_ref, x2_ref)
    bias = b_ref[...]                                   # (1, cp) f32, hoisted

    for r0 in range(0, R, ROW_CHUNK):                   # static row chunking:
        rows = min(ROW_CHUNK, R - r0)                   # bounds vreg pressure
        acc = jnp.zeros((rows, cp), jnp.float32)
        t = 0
        for a in range(K):                              # depth tap -> which x ref
            xa = x_refs[a]
            for b in range(K):
                for c in range(K):                      # in-plane taps -> static
                    off = r0 + b * W + c                # row-offset slices
                    acc = acc + jnp.dot(
                        xa[off:off + rows, :], w_ref[t],
                        preferred_element_type=jnp.float32)
                    t += 1
        o_ref[r0:r0 + rows, :] = (acc + bias).astype(o_ref.dtype)

    if R < HW:                                          # zero the tail rows so
        o_ref[R:HW, :] = jnp.zeros((HW - R, cp), o_ref.dtype)  # nothing is left
                                                               # uninitialized


def _conv3d_plane(x_flat, w_taps, b_pad, W, out_dtype):
    """3-D valid conv (stride 1) on a plane-flattened channels-last activation.

    x_flat : (N, Din, H*W, Cin) bf16, plane rows indexed h*W + w.
    Returns (N, Din-2, H*W, cp) out_dtype in the same padded plane geometry.
    """
    N, Din, HW, cin = x_flat.shape
    Dout = Din - (K - 1)
    cp = w_taps.shape[-1]
    max_off = (K - 1) * W + (K - 1)        # largest in-plane tap offset
    R = HW - max_off                       # rows we can compute without OOB reads
                                           # (covers every valid output row)

    kernel = functools.partial(_conv_plane_kernel, W=W, R=R, HW=HW, cp=cp)

    def x_spec(a):                         # same array, depth-shifted by the tap
        return pl.BlockSpec((None, None, HW, cin),
                            lambda n, d, a=a: (n, d + a, 0, 0))

    flops = 2 * N * Dout * R * (K ** 3) * cin * cp
    bytes_accessed = (3 * x_flat.size * np.dtype(jnp.bfloat16).itemsize
                      + w_taps.size * np.dtype(jnp.bfloat16).itemsize
                      + b_pad.size * 4
                      + N * Dout * HW * cp * np.dtype(out_dtype).itemsize)

    return pl.pallas_call(
        kernel,
        out_shape=jax.ShapeDtypeStruct((N, Dout, HW, cp), out_dtype),
        grid=(N, Dout),
        in_specs=[
            x_spec(0), x_spec(1), x_spec(2),
            pl.BlockSpec((K ** 3, cin, cp), lambda n, d: (0, 0, 0)),  # weights resident
            pl.BlockSpec((1, cp), lambda n, d: (0, 0)),               # bias resident
        ],
        out_specs=pl.BlockSpec((None, None, HW, cp), lambda n, d: (n, d, 0, 0)),
        compiler_params=pltpu.CompilerParams(
            dimension_semantics=("parallel", "parallel"),   # megacore-splittable
            vmem_limit_bytes=32 * 1024 * 1024),
        cost_estimate=pl.CostEstimate(flops=int(flops), transcendentals=0,
                                      bytes_accessed=int(bytes_accessed)),
    )(x_flat, x_flat, x_flat, w_taps, b_pad)


# ----------------------------------------------------------------------------
# Parameters
# ----------------------------------------------------------------------------
def init_encoder_params(key):
    """Deterministic synthetic init matching nn.Conv3d shapes (PyTorch layout)."""
    k1, k2, k3, k4 = jax.random.split(key, 4)

    def u(k, shape, fan_in):
        bound = 1.0 / np.sqrt(fan_in)
        return jax.random.uniform(k, shape, jnp.float32, -bound, bound)

    w1 = u(k1, (C1_OUT, C1_IN, K, K, K), C1_IN * K ** 3)     # Conv3d(6, 100, 3)
    b1 = u(k2, (C1_OUT,), C1_IN * K ** 3)
    w2 = u(k3, (C2_OUT, C1_OUT, K, K, K), C1_OUT * K ** 3)   # Conv3d(100, 32, 3)
    b2 = u(k4, (C2_OUT,), C1_OUT * K ** 3)
    return (w1, b1, w2, b2)


def _prep_conv(w, b, cin_pad):
    """One-time reshape of PyTorch Conv3d params into per-tap matmul form."""
    cout, cin = w.shape[0], w.shape[1]
    # (Cout, Cin, K, K, K) -> (K, K, K, Cin, Cout) -> (27, Cin, Cout), zero-pad
    # Cin to cin_pad and Cout to a full 128-lane width.
    wt = jnp.transpose(w, (2, 3, 4, 1, 0)).reshape(K ** 3, cin, cout)
    wt = jnp.pad(wt, ((0, 0), (0, cin_pad - cin), (0, LANE - cout)))
    bp = jnp.pad(b, (0, LANE - cout)).astype(jnp.float32).reshape(1, LANE)
    return wt.astype(jnp.bfloat16), bp


def prepare_encoder_params(params):
    w1, b1, w2, b2 = params
    w1t, b1p = _prep_conv(w1, b1, CIN1_PAD)   # conv1: Cin 6 -> 8
    w2t, b2p = _prep_conv(w2, b2, LANE)       # conv2: Cin 100 -> 128 so conv1's
    return w1t, b1p, w2t, b2p                 # lane-padded output is used unsliced


# ----------------------------------------------------------------------------
# Forward (matches Encoder.forward: conv1 -> conv2, no activation / pool / BN)
# ----------------------------------------------------------------------------
@jax.jit
def encoder_forward(x, w1t, b1p, w2t, b2p):
    N, C, D, H, W = x.shape
    # NCDHW -> channels-last, pad Cin 6->8, flatten (H, W) into rows of stride
    # W, cast bf16.  XLA fuses this into one pass over the (small) input.
    x_cl = jnp.transpose(x, (0, 2, 3, 4, 1))
    x_cl = jnp.pad(x_cl, ((0, 0),) * 4 + ((0, CIN1_PAD - C),))
    x_flat = x_cl.reshape(N, D, H * W, CIN1_PAD).astype(jnp.bfloat16)

    # conv1: bf16 output, 128 lanes (100 real + 28 zero), padded plane geometry
    y = _conv3d_plane(x_flat, w1t, b1p, W, jnp.bfloat16)    # (N, D-2, H*W, 128)
    # conv2: consumes conv1's output directly (no slice / cast), f32 result
    z = _conv3d_plane(y, w2t, b2p, W, jnp.float32)          # (N, D-4, H*W, 128)

    # Extract the valid region and go back to NCDHW (single fused XLA pass).
    Do, Ho, Wo = D - 4, H - 4, W - 4
    z = z.reshape(N, Do, H, W, LANE)[:, :, :Ho, :Wo, :C2_OUT]
    return jnp.transpose(z, (0, 4, 1, 2, 3))


# ----------------------------------------------------------------------------
# NumPy reference (PyTorch Conv3d semantics: cross-correlation, stride 1, pad 0)
# ----------------------------------------------------------------------------
def conv3d_ref(x, w, b):
    N, Cin, D, H, W = x.shape
    Cout = w.shape[0]
    Do, Ho, Wo = D - K + 1, H - K + 1, W - K + 1
    out = np.zeros((N, Cout, Do, Ho, Wo), np.float32)
    for a in range(K):
        for bb in range(K):
            for c in range(K):
                out += np.einsum('nidhw,oi->nodhw',
                                 x[:, :, a:a + Do, bb:bb + Ho, c:c + Wo],
                                 w[:, :, a, bb, c])
    return out + b.reshape(1, Cout, 1, 1, 1)


if __name__ == "__main__":
    key = jax.random.PRNGKey(0)
    kx, kp = jax.random.split(key)
    params = init_encoder_params(kp)
    w1t, b1p, w2t, b2p = prepare_encoder_params(params)   # one-time weight prep

    # small volume: (batch=2, channels=6, D=H=W=8) -> output (2, 32, 4, 4, 4)
    x = jax.random.normal(kx, (2, C1_IN, 8, 8, 8), jnp.float32)

    out = encoder_forward(x, w1t, b1p, w2t, b2p)
    out = jax.block_until_ready(out)
    assert out.shape == (2, C2_OUT, 4, 4, 4), out.shape

    # correctness check vs NumPy reference (bf16 operands, f32 accumulation)
    xr = np.asarray(x)
    w1, b1, w2, b2 = (np.asarray(p) for p in params)
    ref = conv3d_ref(conv3d_ref(xr, w1, b1), w2, b2)
    np.testing.assert_allclose(np.asarray(out), ref, rtol=5e-2, atol=5e-2)

    print("KERNEL_OK")
</pallas_src>

<mosaic_0001>
module attributes {stable_mosaic.version = 11 : i64} {
  func.func @_conv_plane_kernel(%arg0: i32, %arg1: i32, %arg2: memref<1x1x64x8xbf16, #tpu.memory_space<vmem>>, %arg3: memref<1x1x64x8xbf16, #tpu.memory_space<vmem>>, %arg4: memref<1x1x64x8xbf16, #tpu.memory_space<vmem>>, %arg5: memref<27x8x128xbf16, #tpu.memory_space<vmem>>, %arg6: memref<1x128xf32, #tpu.memory_space<vmem>>, %arg7: memref<1x1x64x128xbf16, #tpu.memory_space<vmem>>) attributes {dimension_semantics = [#tpu.dimension_semantics<parallel>, #tpu.dimension_semantics<parallel>], iteration_bounds = array<i64: 2, 6>, scalar_prefetch = 0 : i64, scratch_operands = 0 : i64, tpu.core_type = #tpu.core_type<tc>, window_params = [{transform_indices = @transform_0, window_bounds = array<i64: 1, 1, 64, 8>}, {transform_indices = @transform_1, window_bounds = array<i64: 1, 1, 64, 8>}, {transform_indices = @transform_2, window_bounds = array<i64: 1, 1, 64, 8>}, {pipeline_mode = #tpu.pipeline_mode<synchronous>, transform_indices = @transform_3, window_bounds = array<i64: 27, 8, 128>}, {pipeline_mode = #tpu.pipeline_mode<synchronous>, transform_indices = @transform_4, window_bounds = array<i64: 1, 128>}, {transform_indices = @transform_5, window_bounds = array<i64: 1, 1, 64, 128>}]} {
    %c0 = arith.constant 0 : index
    %c0_0 = arith.constant 0 : index
    %0 = vector.load %arg6[%c0, %c0_0] : memref<1x128xf32, #tpu.memory_space<vmem>>, vector<1x128xf32>
    %cst = arith.constant 0.000000e+00 : f32
    %1 = vector.broadcast %cst : f32 to vector<46x128xf32>
    %c0_1 = arith.constant 0 : index
    %c0_2 = arith.constant 0 : index
    %c0_3 = arith.constant 0 : index
    %c0_4 = arith.constant 0 : index
    %2 = vector.load %arg2[%c0_1, %c0_2, %c0_3, %c0_4] : memref<1x1x64x8xbf16, #tpu.memory_space<vmem>>, vector<1x1x46x8xbf16>
    %3 = vector.shape_cast %2 : vector<1x1x46x8xbf16> to vector<46x8xbf16>
    %c0_5 = arith.constant 0 : index
    %c0_6 = arith.constant 0 : index
    %c0_7 = arith.constant 0 : index
    %4 = vector.load %arg5[%c0_5, %c0_6, %c0_7] : memref<27x8x128xbf16, #tpu.memory_space<vmem>>, vector<1x8x128xbf16>
    %5 = vector.shape_cast %4 : vector<1x8x128xbf16> to vector<8x128xbf16>
    %cst_8 = arith.constant dense<0.000000e+00> : vector<46x128xf32>
    %6 = tpu.matmul %3, %5, %cst_8 {dimension_numbers = #tpu.dot_dimension_numbers<[1], [0], [0], [1], [0, 0, 1, 1], [], []>} : vector<46x8xbf16>, vector<8x128xbf16>, vector<46x128xf32> -> vector<46x128xf32>
    %7 = arith.addf %1, %6 : vector<46x128xf32>
    %c0_9 = arith.constant 0 : index
    %c0_10 = arith.constant 0 : index
    %c1 = arith.constant 1 : index
    %c0_11 = arith.constant 0 : index
    %8 = vector.load %arg2[%c0_9, %c0_10, %c1, %c0_11] : memref<1x1x64x8xbf16, #tpu.memory_space<vmem>>, vector<1x1x46x8xbf16>
    %9 = vector.shape_cast %8 : vector<1x1x46x8xbf16> to vector<46x8xbf16>
    %c1_12 = arith.constant 1 : index
    %c0_13 = arith.constant 0 : index
    %c0_14 = arith.constant 0 : index
    %10 = vector.load %arg5[%c1_12, %c0_13, %c0_14] : memref<27x8x128xbf16, #tpu.memory_space<vmem>>, vector<1x8x128xbf16>
    %11 = vector.shape_cast %10 : vector<1x8x128xbf16> to vector<8x128xbf16>
    %cst_15 = arith.constant dense<0.000000e+00> : vector<46x128xf32>
    %12 = tpu.matmul %9, %11, %cst_15 {dimension_numbers = #tpu.dot_dimension_numbers<[1], [0], [0], [1], [0, 0, 1, 1], [], []>} : vector<46x8xbf16>, vector<8x128xbf16>, vector<46x128xf32> -> vector<46x128xf32>
    %13 = arith.addf %7, %12 : vector<46x128xf32>
    %c0_16 = arith.constant 0 : index
    %c0_17 = arith.constant 0 : index
    %c2 = arith.constant 2 : index
    %c0_18 = arith.constant 0 : index
    %14 = vector.load %arg2[%c0_16, %c0_17, %c2, %c0_18] : memref<1x1x64x8xbf16, #tpu.memory_space<vmem>>, vector<1x1x46x8xbf16>
    %15 = vector.shape_cast %14 : vector<1x1x46x8xbf16> to vector<46x8xbf16>
    %c2_19 = arith.constant 2 : index
    %c0_20 = arith.constant 0 : index
    %c0_21 = arith.constant 0 : index
    %16 = vector.load %arg5[%c2_19, %c0_20, %c0_21] : memref<27x8x128xbf16, #tpu.memory_space<vmem>>, vector<1x8x128xbf16>
    %17 = vector.shape_cast %16 : vector<1x8x128xbf16> to vector<8x128xbf16>
    %cst_22 = arith.constant dense<0.000000e+00> : vector<46x128xf32>
    %18 = tpu.matmul %15, %17, %cst_22 {dimension_numbers = #tpu.dot_dimension_numbers<[1], [0], [0], [1], [0, 0, 1, 1], [], []>} : vector<46x8xbf16>, vector<8x128xbf16>, vector<46x128xf32> -> vector<46x128xf32>
    %19 = arith.addf %13, %18 : vector<46x128xf32>
    %c0_23 = arith.constant 0 : index
    %c0_24 = arith.constant 0 : index
    %c8 = arith.constant 8 : index
    %c0_25 = arith.constant 0 : index
    %20 = vector.load %arg2[%c0_23, %c0_24, %c8, %c0_25] : memref<1x1x64x8xbf16, #tpu.memory_space<vmem>>, vector<1x1x46x8xbf16>
    %21 = vector.shape_cast %20 : vector<1x1x46x8xbf16> to vector<46x8xbf16>
    %c3 = arith.constant 3 : index
    %c0_26 = arith.constant 0 : index
    %c0_27 = arith.constant 0 : index
    %22 = vector.load %arg5[%c3, %c0_26, %c0_27] : memref<27x8x128xbf16, #tpu.memory_space<vmem>>, vector<1x8x128xbf16>
    %23 = vector.shape_cast %22 : vector<1x8x128xbf16> to vector<8x128xbf16>
    %cst_28 = arith.constant dense<0.000000e+00> : vector<46x128xf32>
    %24 = tpu.matmul %21, %23, %cst_28 {dimension_numbers = #tpu.dot_dimension_numbers<[1], [0], [0], [1], [0, 0, 1, 1], [], []>} : vector<46x8xbf16>, vector<8x128xbf16>, vector<46x128xf32> -> vector<46x128xf32>
    %25 = arith.addf %19, %24 : vector<46x128xf32>
    %c0_29 = arith.constant 0 : index
    %c0_30 = arith.constant 0 : index
    %c9 = arith.constant 9 : index
    %c0_31 = arith.constant 0 : index
    %26 = vector.load %arg2[%c0_29, %c0_30, %c9, %c0_31] : memref<1x1x64x8xbf16, #tpu.memory_space<vmem>>, vector<1x1x46x8xbf16>
    %27 = vector.shape_cast %26 : vector<1x1x46x8xbf16> to vector<46x8xbf16>
    %c4 = arith.constant 4 : index
    %c0_32 = arith.constant 0 : index
    %c0_33 = arith.constant 0 : index
    %28 = vector.load %arg5[%c4, %c0_32, %c0_33] : memref<27x8x128xbf16, #tpu.memory_space<vmem>>, vector<1x8x128xbf16>
    %29 = vector.shape_cast %28 : vector<1x8x128xbf16> to vector<8x128xbf16>
    %cst_34 = arith.constant dense<0.000000e+00> : vector<46x128xf32>
    %30 = tpu.matmul %27, %29, %cst_34 {dimension_numbers = #tpu.dot_dimension_numbers<[1], [0], [0], [1], [0, 0, 1, 1], [], []>} : vector<46x8xbf16>, vector<8x128xbf16>, vector<46x128xf32> -> vector<46x128xf32>
    %31 = arith.addf %25, %30 : vector<46x128xf32>
    %c0_35 = arith.constant 0 : index
    %c0_36 = arith.constant 0 : index
    %c10 = arith.constant 10 : index
    %c0_37 = arith.constant 0 : index
    %32 = vector.load %arg2[%c0_35, %c0_36, %c10, %c0_37] : memref<1x1x64x8xbf16, #tpu.memory_space<vmem>>, vector<1x1x46x8xbf16>
    %33 = vector.shape_cast %32 : vector<1x1x46x8xbf16> to vector<46x8xbf16>
    %c5 = arith.constant 5 : index
    %c0_38 = arith.constant 0 : index
    %c0_39 = arith.constant 0 : index
    %34 = vector.load %arg5[%c5, %c0_38, %c0_39] : memref<27x8x128xbf16, #tpu.memory_space<vmem>>, vector<1x8x128xbf16>
    %35 = vector.shape_cast %34 : vector<1x8x128xbf16> to vector<8x128xbf16>
    %cst_40 = arith.constant dense<0.000000e+00> : vector<46x128xf32>
    %36 = tpu.matmul %33, %35, %cst_40 {dimension_numbers = #tpu.dot_dimension_numbers<[1], [0], [0], [1], [0, 0, 1, 1], [], []>} : vector<46x8xbf16>, vector<8x128xbf16>, vector<46x128xf32> -> vector<46x128xf32>
    %37 = arith.addf %31, %36 : vector<46x128xf32>
    %c0_41 = arith.constant 0 : index
    %c0_42 = arith.constant 0 : index
    %c16 = arith.constant 16 : index
    %c0_43 = arith.constant 0 : index
    %38 = vector.load %arg2[%c0_41, %c0_42, %c16, %c0_43] : memref<1x1x64x8xbf16, #tpu.memory_space<vmem>>, vector<1x1x46x8xbf16>
    %39 = vector.shape_cast %38 : vector<1x1x46x8xbf16> to vector<46x8xbf16>
    %c6 = arith.constant 6 : index
    %c0_44 = arith.constant 0 : index
    %c0_45 = arith.constant 0 : index
    %40 = vector.load %arg5[%c6, %c0_44, %c0_45] : memref<27x8x128xbf16, #tpu.memory_space<vmem>>, vector<1x8x128xbf16>
    %41 = vector.shape_cast %40 : vector<1x8x128xbf16> to vector<8x128xbf16>
    %cst_46 = arith.constant dense<0.000000e+00> : vector<46x128xf32>
    %42 = tpu.matmul %39, %41, %cst_46 {dimension_numbers = #tpu.dot_dimension_numbers<[1], [0], [0], [1], [0, 0, 1, 1], [], []>} : vector<46x8xbf16>, vector<8x128xbf16>, vector<46x128xf32> -> vector<46x128xf32>
    %43 = arith.addf %37, %42 : vector<46x128xf32>
    %c0_47 = arith.constant 0 : index
    %c0_48 = arith.constant 0 : index
    %c17 = arith.constant 17 : index
    %c0_49 = arith.constant 0 : index
    %44 = vector.load %arg2[%c0_47, %c0_48, %c17, %c0_49] : memref<1x1x64x8xbf16, #tpu.memory_space<vmem>>, vector<1x1x46x8xbf16>
    %45 = vector.shape_cast %44 : vector<1x1x46x8xbf16> to vector<46x8xbf16>
    %c7 = arith.constant 7 : index
    %c0_50 = arith.constant 0 : index
    %c0_51 = arith.constant 0 : index
    %46 = vector.load %arg5[%c7, %c0_50, %c0_51] : memref<27x8x128xbf16, #tpu.memory_space<vmem>>, vector<1x8x128xbf16>
    %47 = vector.shape_cast %46 : vector<1x8x128xbf16> to vector<8x128xbf16>
    %cst_52 = arith.constant dense<0.000000e+00> : vector<46x128xf32>
    %48 = tpu.matmul %45, %47, %cst_52 {dimension_numbers = #tpu.dot_dimension_numbers<[1], [0], [0], [1], [0, 0, 1, 1], [], []>} : vector<46x8xbf16>, vector<8x128xbf16>, vector<46x128xf32> -> vector<46x128xf32>
    %49 = arith.addf %43, %48 : vector<46x128xf32>
    %c0_53 = arith.constant 0 : index
    %c0_54 = arith.constant 0 : index
    %c18 = arith.constant 18 : index
    %c0_55 = arith.constant 0 : index
    %50 = vector.load %arg2[%c0_53, %c0_54, %c18, %c0_55] : memref<1x1x64x8xbf16, #tpu.memory_space<vmem>>, vector<1x1x46x8xbf16>
    %51 = vector.shape_cast %50 : vector<1x1x46x8xbf16> to vector<46x8xbf16>
    %c8_56 = arith.constant 8 : index
    %c0_57 = arith.constant 0 : index
    %c0_58 = arith.constant 0 : index
    %52 = vector.load %arg5[%c8_56, %c0_57, %c0_58] : memref<27x8x128xbf16, #tpu.memory_space<vmem>>, vector<1x8x128xbf16>
    %53 = vector.shape_cast %52 : vector<1x8x128xbf16> to vector<8x128xbf16>
    %cst_59 = arith.constant dense<0.000000e+00> : vector<46x128xf32>
    %54 = tpu.matmul %51, %53, %cst_59 {dimension_numbers = #tpu.dot_dimension_numbers<[1], [0], [0], [1], [0, 0, 1, 1], [], []>} : vector<46x8xbf16>, vector<8x128xbf16>, vector<46x128xf32> -> vector<46x128xf32>
    %55 = arith.addf %49, %54 : vector<46x128xf32>
    %c0_60 = arith.constant 0 : index
    %c0_61 = arith.constant 0 : index
    %c0_62 = arith.constant 0 : index
    %c0_63 = arith.constant 0 : index
    %56 = vector.load %arg3[%c0_60, %c0_61, %c0_62, %c0_63] : memref<1x1x64x8xbf16, #tpu.memory_space<vmem>>, vector<1x1x46x8xbf16>
    %57 = vector.shape_cast %56 : vector<1x1x46x8xbf16> to vector<46x8xbf16>
    %c9_64 = arith.constant 9 : index
    %c0_65 = arith.constant 0 : index
    %c0_66 = arith.constant 0 : index
    %58 = vector.load %arg5[%c9_64, %c0_65, %c0_66] : memref<27x8x128xbf16, #tpu.memory_space<vmem>>, vector<1x8x128xbf16>
    %59 = vector.shape_cast %58 : vector<1x8x128xbf16> to vector<8x128xbf16>
    %cst_67 = arith.constant dense<0.000000e+00> : vector<46x128xf32>
    %60 = tpu.matmul %57, %59, %cst_67 {dimension_numbers = #tpu.dot_dimension_numbers<[1], [0], [0], [1], [0, 0, 1, 1], [], []>} : vector<46x8xbf16>, vector<8x128xbf16>, vector<46x128xf32> -> vector<46x128xf32>
    %61 = arith.addf %55, %60 : vector<46x128xf32>
    %c0_68 = arith.constant 0 : index
    %c0_69 = arith.constant 0 : index
    %c1_70 = arith.constant 1 : index
    %c0_71 = arith.constant 0 : index
    %62 = vector.load %arg3[%c0_68, %c0_69, %c1_70, %c0_71] : memref<1x1x64x8xbf16, #tpu.memory_space<vmem>>, vector<1x1x46x8xbf16>
    %63 = vector.shape_cast %62 : vector<1x1x46x8xbf16> to vector<46x8xbf16>
    %c10_72 = arith.constant 10 : index
    %c0_73 = arith.constant 0 : index
    %c0_74 = arith.constant 0 : index
    %64 = vector.load %arg5[%c10_72, %c0_73, %c0_74] : memref<27x8x128xbf16, #tpu.memory_space<vmem>>, vector<1x8x128xbf16>
    %65 = vector.shape_cast %64 : vector<1x8x128xbf16> to vector<8x128xbf16>
    %cst_75 = arith.constant dense<0.000000e+00> : vector<46x128xf32>
    %66 = tpu.matmul %63, %65, %cst_75 {dimension_numbers = #tpu.dot_dimension_numbers<[1], [0], [0], [1], [0, 0, 1, 1], [], []>} : vector<46x8xbf16>, vector<8x128xbf16>, vector<46x128xf32> -> vector<46x128xf32>
    %67 = arith.addf %61, %66 : vector<46x128xf32>
    %c0_76 = arith.constant 0 : index
    %c0_77 = arith.constant 0 : index
    %c2_78 = arith.constant 2 : index
    %c0_79 = arith.constant 0 : index
    %68 = vector.load %arg3[%c0_76, %c0_77, %c2_78, %c0_79] : memref<1x1x64x8xbf16, #tpu.memory_space<vmem>>, vector<1x1x46x8xbf16>
    %69 = vector.shape_cast %68 : vector<1x1x46x8xbf16> to vector<46x8xbf16>
    %c11 = arith.constant 11 : index
    %c0_80 = arith.constant 0 : index
    %c0_81 = arith.constant 0 : index
    %70 = vector.load %arg5[%c11, %c0_80, %c0_81] : memref<27x8x128xbf16, #tpu.memory_space<vmem>>, vector<1x8x128xbf16>
    %71 = vector.shape_cast %70 : vector<1x8x128xbf16> to vector<8x128xbf16>
    %cst_82 = arith.constant dense<0.000000e+00> : vector<46x128xf32>
    %72 = tpu.matmul %69, %71, %cst_82 {dimension_numbers = #tpu.dot_dimension_numbers<[1], [0], [0], [1], [0, 0, 1, 1], [], []>} : vector<46x8xbf16>, vector<8x128xbf16>, vector<46x128xf32> -> vector<46x128xf32>
    %73 = arith.addf %67, %72 : vector<46x128xf32>
    %c0_83 = arith.constant 0 : index
    %c0_84 = arith.constant 0 : index
    %c8_85 = arith.constant 8 : index
    %c0_86 = arith.constant 0 : index
    %74 = vector.load %arg3[%c0_83, %c0_84, %c8_85, %c0_86] : memref<1x1x64x8xbf16, #tpu.memory_space<vmem>>, vector<1x1x46x8xbf16>
    %75 = vector.shape_cast %74 : vector<1x1x46x8xbf16> to vector<46x8xbf16>
    %c12 = arith.constant 12 : index
    %c0_87 = arith.constant 0 : index
    %c0_88 = arith.constant 0 : index
    %76 = vector.load %arg5[%c12, %c0_87, %c0_88] : memref<27x8x128xbf16, #tpu.memory_space<vmem>>, vector<1x8x128xbf16>
    %77 = vector.shape_cast %76 : vector<1x8x128xbf16> to vector<8x128xbf16>
    %cst_89 = arith.constant dense<0.000000e+00> : vector<46x128xf32>
    %78 = tpu.matmul %75, %77, %cst_89 {dimension_numbers = #tpu.dot_dimension_numbers<[1], [0], [0], [1], [0, 0, 1, 1], [], []>} : vector<46x8xbf16>, vector<8x128xbf16>, vector<46x128xf32> -> vector<46x128xf32>
    %79 = arith.addf %73, %78 : vector<46x128xf32>
    %c0_90 = arith.constant 0 : index
    %c0_91 = arith.constant 0 : index
    %c9_92 = arith.constant 9 : index
    %c0_93 = arith.constant 0 : index
    %80 = vector.load %arg3[%c0_90, %c0_91, %c9_92, %c0_93] : memref<1x1x64x8xbf16, #tpu.memory_space<vmem>>, vector<1x1x46x8xbf16>
    %81 = vector.shape_cast %80 : vector<1x1x46x8xbf16> to vector<46x8xbf16>
    %c13 = arith.constant 13 : index
    %c0_94 = arith.constant 0 : index
    %c0_95 = arith.constant 0 : index
    %82 = vector.load %arg5[%c13, %c0_94, %c0_95] : memref<27x8x128xbf16, #tpu.memory_space<vmem>>, vector<1x8x128xbf16>
    %83 = vector.shape_cast %82 : vector<1x8x128xbf16> to vector<8x128xbf16>
    %cst_96 = arith.constant dense<0.000000e+00> : vector<46x128xf32>
    %84 = tpu.matmul %81, %83, %cst_96 {dimension_numbers = #tpu.dot_dimension_numbers<[1], [0], [0], [1], [0, 0, 1, 1], [], []>} : vector<46x8xbf16>, vector<8x128xbf16>, vector<46x128xf32> -> vector<46x128xf32>
    %85 = arith.addf %79, %84 : vector<46x128xf32>
    %c0_97 = arith.constant 0 : index
    %c0_98 = arith.constant 0 : index
    %c10_99 = arith.constant 10 : index
    %c0_100 = arith.constant 0 : index
    %86 = vector.load %arg3[%c0_97, %c0_98, %c10_99, %c0_100] : memref<1x1x64x8xbf16, #tpu.memory_space<vmem>>, vector<1x1x46x8xbf16>
    %87 = vector.shape_cast %86 : vector<1x1x46x8xbf16> to vector<46x8xbf16>
    %c14 = arith.constant 14 : index
    %c0_101 = arith.constant 0 : index
    %c0_102 = arith.constant 0 : index
    %88 = vector.load %arg5[%c14, %c0_101, %c0_102] : memref<27x8x128xbf16, #tpu.memory_space<vmem>>, vector<1x8x128xbf16>
    %89 = vector.shape_cast %88 : vector<1x8x128xbf16> to vector<8x128xbf16>
    %cst_103 = arith.constant dense<0.000000e+00> : vector<46x128xf32>
    %90 = tpu.matmul %87, %89, %cst_103 {dimension_numbers = #tpu.dot_dimension_numbers<[1], [0], [0], [1], [0, 0, 1, 1], [], []>} : vector<46x8xbf16>, vector<8x128xbf16>, vector<46x128xf32> -> vector<46x128xf32>
    %91 = arith.addf %85, %90 : vector<46x128xf32>
    %c0_104 = arith.constant 0 : index
    %c0_105 = arith.constant 0 : index
    %c16_106 = arith.constant 16 : index
    %c0_107 = arith.constant 0 : index
    %92 = vector.load %arg3[%c0_104, %c0_105, %c16_106, %c0_107] : memref<1x1x64x8xbf16, #tpu.memory_space<vmem>>, vector<1x1x46x8xbf16>
    %93 = vector.shape_cast %92 : vector<1x1x46x8xbf16> to vector<46x8xbf16>
    %c15 = arith.constant 15 : index
    %c0_108 = arith.constant 0 : index
    %c0_109 = arith.constant 0 : index
    %94 = vector.load %arg5[%c15, %c0_108, %c0_109] : memref<27x8x128xbf16, #tpu.memory_space<vmem>>, vector<1x8x128xbf16>
    %95 = vector.shape_cast %94 : vector<1x8x128xbf16> to vector<8x128xbf16>
    %cst_110 = arith.constant dense<0.000000e+00> : vector<46x128xf32>
    %96 = tpu.matmul %93, %95, %cst_110 {dimension_numbers = #tpu.dot_dimension_numbers<[1], [0], [0], [1], [0, 0, 1, 1], [], []>} : vector<46x8xbf16>, vector<8x128xbf16>, vector<46x128xf32> -> vector<46x128xf32>
    %97 = arith.addf %91, %96 : vector<46x128xf32>
    %c0_111 = arith.constant 0 : index
    %c0_112 = arith.constant 0 : index
    %c17_113 = arith.constant 17 : index
    %c0_114 = arith.constant 0 : index
    %98 = vector.load %arg3[%c0_111, %c0_112, %c17_113, %c0_114] : memref<1x1x64x8xbf16, #tpu.memory_space<vmem>>, vector<1x1x46x8xbf16>
    %99 = vector.shape_cast %98 : vector<1x1x46x8xbf16> to vector<46x8xbf16>
    %c16_115 = arith.constant 16 : index
    %c0_116 = arith.constant 0 : index
    %c0_117 = arith.constant 0 : index
    %100 = vector.load %arg5[%c16_115, %c0_116, %c0_117] : memref<27x8x128xbf16, #tpu.memory_space<vmem>>, vector<1x8x128xbf16>
    %101 = vector.shape_cast %100 : vector<1x8x128xbf16> to vector<8x128xbf16>
    %cst_118 = arith.constant dense<0.000000e+00> : vector<46x128xf32>
    %102 = tpu.matmul %99, %101, %cst_118 {dimension_numbers = #tpu.dot_dimension_numbers<[1], [0], [0], [1], [0, 0, 1, 1], [], []>} : vector<46x8xbf16>, vector<8x128xbf16>, vector<46x128xf32> -> vector<46x128xf32>
    %103 = arith.addf %97, %102 : vector<46x128xf32>
    %c0_119 = arith.constant 0 : index
    %c0_120 = arith.constant 0 : index
    %c18_121 = arith.constant 18 : index
    %c0_122 = arith.constant 0 : index
    %104 = vector.load %arg3[%c0_119, %c0_120, %c18_121, %c0_122] : memref<1x1x64x8xbf16, #tpu.memory_space<vmem>>, vector<1x1x46x8xbf16>
    %105 = vector.shape_cast %104 : vector<1x1x46x8xbf16> to vector<46x8xbf16>
    %c17_123 = arith.constant 17 : index
    %c0_124 = arith.constant 0 : index
    %c0_125 = arith.constant 0 : index
    %106 = vector.load %arg5[%c17_123, %c0_124, %c0_125] : memref<27x8x128xbf16, #tpu.memory_space<vmem>>, vector<1x8x128xbf16>
    %107 = vector.shape_cast %106 : vector<1x8x128xbf16> to vector<8x128xbf16>
    %cst_126 = arith.constant dense<0.000000e+00> : vector<46x128xf32>
    %108 = tpu.matmul %105, %107, %cst_126 {dimension_numbers = #tpu.dot_dimension_numbers<[1], [0], [0], [1], [0, 0, 1, 1], [], []>} : vector<46x8xbf16>, vector<8x128xbf16>, vector<46x128xf32> -> vector<46x128xf32>
    %109 = arith.addf %103, %108 : vector<46x128xf32>
    %c0_127 = arith.constant 0 : index
    %c0_128 = arith.constant 0 : index
    %c0_129 = arith.constant 0 : index
    %c0_130 = arith.constant 0 : index
    %110 = vector.load %arg4[%c0_127, %c0_128, %c0_129, %c0_130] : memref<1x1x64x8xbf16, #tpu.memory_space<vmem>>, vector<1x1x46x8xbf16>
    %111 = vector.shape_cast %110 : vector<1x1x46x8xbf16> to vector<46x8xbf16>
    %c18_131 = arith.constant 18 : index
    %c0_132 = arith.constant 0 : index
    %c0_133 = arith.constant 0 : index
    %112 = vector.load %arg5[%c18_131, %c0_132, %c0_133] : memref<27x8x128xbf16, #tpu.memory_space<vmem>>, vector<1x8x128xbf16>
    %113 = vector.shape_cast %112 : vector<1x8x128xbf16> to vector<8x128xbf16>
    %cst_134 = arith.constant dense<0.000000e+00> : vector<46x128xf32>
    %114 = tpu.matmul %111, %113, %cst_134 {dimension_numbers = #tpu.dot_dimension_numbers<[1], [0], [0], [1], [0, 0, 1, 1], [], []>} : vector<46x8xbf16>, vector<8x128xbf16>, vector<46x128xf32> -> vector<46x128xf32>
    %115 = arith.addf %109, %114 : vector<46x128xf32>
    %c0_135 = arith.constant 0 : index
    %c0_136 = arith.constant 0 : index
    %c1_137 = arith.constant 1 : index
    %c0_138 = arith.constant 0 : index
    %116 = vector.load %arg4[%c0_135, %c0_136, %c1_137, %c0_138] : memref<1x1x64x8xbf16, #tpu.memory_space<vmem>>, vector<1x1x46x8xbf16>
    %117 = vector.shape_cast %116 : vector<1x1x46x8xbf16> to vector<46x8xbf16>
    %c19 = arith.constant 19 : index
    %c0_139 = arith.constant 0 : index
    %c0_140 = arith.constant 0 : index
    %118 = vector.load %arg5[%c19, %c0_139, %c0_140] : memref<27x8x128xbf16, #tpu.memory_space<vmem>>, vector<1x8x128xbf16>
    %119 = vector.shape_cast %118 : vector<1x8x128xbf16> to vector<8x128xbf16>
    %cst_141 = arith.constant dense<0.000000e+00> : vector<46x128xf32>
    %120 = tpu.matmul %117, %119, %cst_141 {dimension_numbers = #tpu.dot_dimension_numbers<[1], [0], [0], [1], [0, 0, 1, 1], [], []>} : vector<46x8xbf16>, vector<8x128xbf16>, vector<46x128xf32> -> vector<46x128xf32>
    %121 = arith.addf %115, %120 : vector<46x128xf32>
    %c0_142 = arith.constant 0 : index
    %c0_143 = arith.constant 0 : index
    %c2_144 = arith.constant 2 : index
    %c0_145 = arith.constant 0 : index
    %122 = vector.load %arg4[%c0_142, %c0_143, %c2_144, %c0_145] : memref<1x1x64x8xbf16, #tpu.memory_space<vmem>>, vector<1x1x46x8xbf16>
    %123 = vector.shape_cast %122 : vector<1x1x46x8xbf16> to vector<46x8xbf16>
    %c20 = arith.constant 20 : index
    %c0_146 = arith.constant 0 : index
    %c0_147 = arith.constant 0 : index
    %124 = vector.load %arg5[%c20, %c0_146, %c0_147] : memref<27x8x128xbf16, #tpu.memory_space<vmem>>, vector<1x8x128xbf16>
    %125 = vector.shape_cast %124 : vector<1x8x128xbf16> to vector<8x128xbf16>
    %cst_148 = arith.constant dense<0.000000e+00> : vector<46x128xf32>
    %126 = tpu.matmul %123, %125, %cst_148 {dimension_numbers = #tpu.dot_dimension_numbers<[1], [0], [0], [1], [0, 0, 1, 1], [], []>} : vector<46x8xbf16>, vector<8x128xbf16>, vector<46x128xf32> -> vector<46x128xf32>
    %127 = arith.addf %121, %126 : vector<46x128xf32>
    %c0_149 = arith.constant 0 : index
    %c0_150 = arith.constant 0 : index
    %c8_151 = arith.constant 8 : index
    %c0_152 = arith.constant 0 : index
    %128 = vector.load %arg4[%c0_149, %c0_150, %c8_151, %c0_152] : memref<1x1x64x8xbf16, #tpu.memory_space<vmem>>, vector<1x1x46x8xbf16>
    %129 = vector.shape_cast %128 : vector<1x1x46x8xbf16> to vector<46x8xbf16>
    %c21 = arith.constant 21 : index
    %c0_153 = arith.constant 0 : index
    %c0_154 = arith.constant 0 : index
    %130 = vector.load %arg5[%c21, %c0_153, %c0_154] : memref<27x8x128xbf16, #tpu.memory_space<vmem>>, vector<1x8x128xbf16>
    %131 = vector.shape_cast %130 : vector<1x8x128xbf16> to vector<8x128xbf16>
    %cst_155 = arith.constant dense<0.000000e+00> : vector<46x128xf32>
    %132 = tpu.matmul %129, %131, %cst_155 {dimension_numbers = #tpu.dot_dimension_numbers<[1], [0], [0], [1], [0, 0, 1, 1], [], []>} : vector<46x8xbf16>, vector<8x128xbf16>, vector<46x128xf32> -> vector<46x128xf32>
    %133 = arith.addf %127, %132 : vector<46x128xf32>
    %c0_156 = arith.constant 0 : index
    %c0_157 = arith.constant 0 : index
    %c9_158 = arith.constant 9 : index
    %c0_159 = arith.constant 0 : index
    %134 = vector.load %arg4[%c0_156, %c0_157, %c9_158, %c0_159] : memref<1x1x64x8xbf16, #tpu.memory_space<vmem>>, vector<1x1x46x8xbf16>
    %135 = vector.shape_cast %134 : vector<1x1x46x8xbf16> to vector<46x8xbf16>
    %c22 = arith.constant 22 : index
    %c0_160 = arith.constant 0 : index
    %c0_161 = arith.constant 0 : index
    %136 = vector.load %arg5[%c22, %c0_160, %c0_161] : memref<27x8x128xbf16, #tpu.memory_space<vmem>>, vector<1x8x128xbf16>
    %137 = vector.shape_cast %136 : vector<1x8x128xbf16> to vector<8x128xbf16>
    %cst_162 = arith.constant dense<0.000000e+00> : vector<46x128xf32>
    %138 = tpu.matmul %135, %137, %cst_162 {dimension_numbers = #tpu.dot_dimension_numbers<[1], [0], [0], [1], [0, 0, 1, 1], [], []>} : vector<46x8xbf16>, vector<8x128xbf16>, vector<46x128xf32> -> vector<46x128xf32>
    %139 = arith.addf %133, %138 : vector<46x128xf32>
    %c0_163 = arith.constant 0 : index
    %c0_164 = arith.constant 0 : index
    %c10_165 = arith.constant 10 : index
    %c0_166 = arith.constant 0 : index
    %140 = vector.load %arg4[%c0_163, %c0_164, %c10_165, %c0_166] : memref<1x1x64x8xbf16, #tpu.memory_space<vmem>>, vector<1x1x46x8xbf16>
    %141 = vector.shape_cast %140 : vector<1x1x46x8xbf16> to vector<46x8xbf16>
    %c23 = arith.constant 23 : index
    %c0_167 = arith.constant 0 : index
    %c0_168 = arith.constant 0 : index
    %142 = vector.load %arg5[%c23, %c0_167, %c0_168] : memref<27x8x128xbf16, #tpu.memory_space<vmem>>, vector<1x8x128xbf16>
    %143 = vector.shape_cast %142 : vector<1x8x128xbf16> to vector<8x128xbf16>
    %cst_169 = arith.constant dense<0.000000e+00> : vector<46x128xf32>
    %144 = tpu.matmul %141, %143, %cst_169 {dimension_numbers = #tpu.dot_dimension_numbers<[1], [0], [0], [1], [0, 0, 1, 1], [], []>} : vector<46x8xbf16>, vector<8x128xbf16>, vector<46x128xf32> -> vector<46x128xf32>
    %145 = arith.addf %139, %144 : vector<46x128xf32>
    %c0_170 = arith.constant 0 : index
    %c0_171 = arith.constant 0 : index
    %c16_172 = arith.constant 16 : index
    %c0_173 = arith.constant 0 : index
    %146 = vector.load %arg4[%c0_170, %c0_171, %c16_172, %c0_173] : memref<1x1x64x8xbf16, #tpu.memory_space<vmem>>, vector<1x1x46x8xbf16>
    %147 = vector.shape_cast %146 : vector<1x1x46x8xbf16> to vector<46x8xbf16>
    %c24 = arith.constant 24 : index
    %c0_174 = arith.constant 0 : index
    %c0_175 = arith.constant 0 : index
    %148 = vector.load %arg5[%c24, %c0_174, %c0_175] : memref<27x8x128xbf16, #tpu.memory_space<vmem>>, vector<1x8x128xbf16>
    %149 = vector.shape_cast %148 : vector<1x8x128xbf16> to vector<8x128xbf16>
    %cst_176 = arith.constant dense<0.000000e+00> : vector<46x128xf32>
    %150 = tpu.matmul %147, %149, %cst_176 {dimension_numbers = #tpu.dot_dimension_numbers<[1], [0], [0], [1], [0, 0, 1, 1], [], []>} : vector<46x8xbf16>, vector<8x128xbf16>, vector<46x128xf32> -> vector<46x128xf32>
    %151 = arith.addf %145, %150 : vector<46x128xf32>
    %c0_177 = arith.constant 0 : index
    %c0_178 = arith.constant 0 : index
    %c17_179 = arith.constant 17 : index
    %c0_180 = arith.constant 0 : index
    %152 = vector.load %arg4[%c0_177, %c0_178, %c17_179, %c0_180] : memref<1x1x64x8xbf16, #tpu.memory_space<vmem>>, vector<1x1x46x8xbf16>
    %153 = vector.shape_cast %152 : vector<1x1x46x8xbf16> to vector<46x8xbf16>
    %c25 = arith.constant 25 : index
    %c0_181 = arith.constant 0 : index
    %c0_182 = arith.constant 0 : index
    %154 = vector.load %arg5[%c25, %c0_181, %c0_182] : memref<27x8x128xbf16, #tpu.memory_space<vmem>>, vector<1x8x128xbf16>
    %155 = vector.shape_cast %154 : vector<1x8x128xbf16> to vector<8x128xbf16>
    %cst_183 = arith.constant dense<0.000000e+00> : vector<46x128xf32>
    %156 = tpu.matmul %153, %155, %cst_183 {dimension_numbers = #tpu.dot_dimension_numbers<[1], [0], [0], [1], [0, 0, 1, 1], [], []>} : vector<46x8xbf16>, vector<8x128xbf16>, vector<46x128xf32> -> vector<46x128xf32>
    %157 = arith.addf %151, %156 : vector<46x128xf32>
    %c0_184 = arith.constant 0 : index
    %c0_185 = arith.constant 0 : index
    %c18_186 = arith.constant 18 : index
    %c0_187 = arith.constant 0 : index
    %158 = vector.load %arg4[%c0_184, %c0_185, %c18_186, %c0_187] : memref<1x1x64x8xbf16, #tpu.memory_space<vmem>>, vector<1x1x46x8xbf16>
    %159 = vector.shape_cast %158 : vector<1x1x46x8xbf16> to vector<46x8xbf16>
    %c26 = arith.constant 26 : index
    %c0_188 = arith.constant 0 : index
    %c0_189 = arith.constant 0 : index
    %160 = vector.load %arg5[%c26, %c0_188, %c0_189] : memref<27x8x128xbf16, #tpu.memory_space<vmem>>, vector<1x8x128xbf16>
    %161 = vector.shape_cast %160 : vector<1x8x128xbf16> to vector<8x128xbf16>
    %cst_190 = arith.constant dense<0.000000e+00> : vector<46x128xf32>
    %162 = tpu.matmul %159, %161, %cst_190 {dimension_numbers = #tpu.dot_dimension_numbers<[1], [0], [0], [1], [0, 0, 1, 1], [], []>} : vector<46x8xbf16>, vector<8x128xbf16>, vector<46x128xf32> -> vector<46x128xf32>
    %163 = arith.addf %157, %162 : vector<46x128xf32>
    %164 = vector.broadcast %0 : vector<1x128xf32> to vector<46x128xf32>
    %165 = arith.addf %163, %164 : vector<46x128xf32>
    %166 = arith.truncf %165 : vector<46x128xf32> to vector<46x128xbf16>
    %c0_191 = arith.constant 0 : index
    %c0_192 = arith.constant 0 : index
    %c0_193 = arith.constant 0 : index
    %c0_194 = arith.constant 0 : index
    %167 = vector.load %arg7[%c0_191, %c0_192, %c0_193, %c0_194] : memref<1x1x64x128xbf16, #tpu.memory_space<vmem>>, vector<1x1x46x128xbf16>
    %168 = vector.shape_cast %167 : vector<1x1x46x128xbf16> to vector<46x128xbf16>
    %169 = vector.shape_cast %166 : vector<46x128xbf16> to vector<1x1x46x128xbf16>
    tpu.vector_store %arg7[%c0_191, %c0_192, %c0_193, %c0_194], %169 {strides = array<i32>} : memref<1x1x64x128xbf16, #tpu.memory_space<vmem>>, vector<1x1x46x128xbf16>,
    %cst_195 = arith.constant 0.000000e+00 : bf16
    %170 = vector.broadcast %cst_195 : bf16 to vector<18x128xbf16>
    %c0_196 = arith.constant 0 : index
    %c0_197 = arith.constant 0 : index
    %c46 = arith.constant 46 : index
    %c0_198 = arith.constant 0 : index
    %171 = vector.load %arg7[%c0_196, %c0_197, %c46, %c0_198] : memref<1x1x64x128xbf16, #tpu.memory_space<vmem>>, vector<1x1x18x128xbf16>
    %172 = vector.shape_cast %171 : vector<1x1x18x128xbf16> to vector<18x128xbf16>
    %173 = vector.shape_cast %170 : vector<18x128xbf16> to vector<1x1x18x128xbf16>
    tpu.vector_store %arg7[%c0_196, %c0_197, %c46, %c0_198], %173 {strides = array<i32>} : memref<1x1x64x128xbf16, #tpu.memory_space<vmem>>, vector<1x1x18x128xbf16>,
    return
  }
  func.func @transform_0(%arg0: i32, %arg1: i32) -> (i32, i32, i32, i32) {
    %c0_i32 = arith.constant 0 : i32
    %0 = arith.addi %arg1, %c0_i32 : i32
    %c0_i32_0 = arith.constant 0 : i32
    %c0_i32_1 = arith.constant 0 : i32
    %c0_i32_2 = arith.constant 0 : i32
    return %arg0, %0, %c0_i32_0, %c0_i32_1 : i32, i32, i32, i32
  }
  func.func @transform_1(%arg0: i32, %arg1: i32) -> (i32, i32, i32, i32) {
    %c1_i32 = arith.constant 1 : i32
    %0 = arith.addi %arg1, %c1_i32 : i32
    %c0_i32 = arith.constant 0 : i32
    %c0_i32_0 = arith.constant 0 : i32
    %c0_i32_1 = arith.constant 0 : i32
    return %arg0, %0, %c0_i32, %c0_i32_0 : i32, i32, i32, i32
  }
  func.func @transform_2(%arg0: i32, %arg1: i32) -> (i32, i32, i32, i32) {
    %c2_i32 = arith.constant 2 : i32
    %0 = arith.addi %arg1, %c2_i32 : i32
    %c0_i32 = arith.constant 0 : i32
    %c0_i32_0 = arith.constant 0 : i32
    %c0_i32_1 = arith.constant 0 : i32
    return %arg0, %0, %c0_i32, %c0_i32_0 : i32, i32, i32, i32
  }
  func.func @transform_3(%arg0: i32, %arg1: i32) -> (i32, i32, i32) {
    %c0_i32 = arith.constant 0 : i32
    %c0_i32_0 = arith.constant 0 : i32
    %c0_i32_1 = arith.constant 0 : i32
    %c0_i32_2 = arith.constant 0 : i32
    return %c0_i32, %c0_i32_0, %c0_i32_1 : i32, i32, i32
  }
  func.func @transform_4(%arg0: i32, %arg1: i32) -> (i32, i32) {
    %c0_i32 = arith.constant 0 : i32
    %c0_i32_0 = arith.constant 0 : i32
    %c0_i32_1 = arith.constant 0 : i32
    return %c0_i32, %c0_i32_0 : i32, i32
  }
  func.func @transform_5(%arg0: i32, %arg1: i32) -> (i32, i32, i32, i32) {
    %c0_i32 = arith.constant 0 : i32
    %c0_i32_0 = arith.constant 0 : i32
    %c0_i32_1 = arith.constant 0 : i32
    return %arg0, %arg1, %c0_i32, %c0_i32_0 : i32, i32, i32, i32
  }
}

module attributes {stable_mosaic.version = 11 : i64} {
  func.func @_conv_plane_kernel(%arg0: i32, %arg1: i32, %arg2: memref<1x1x64x128xbf16, #tpu.memory_space<vmem>>, %arg3: memref<1x1x64x128xbf16, #tpu.memory_space<vmem>>, %arg4: memref<1x1x64x128xbf16, #tpu.memory_space<vmem>>, %arg5: memref<27x128x128xbf16, #tpu.memory_space<vmem>>, %arg6: memref<1x128xf32, #tpu.memory_space<vmem>>, %arg7: memref<1x1x64x128xf32, #tpu.memory_space<vmem>>) attributes {dimension_semantics = [#tpu.dimension_semantics<parallel>, #tpu.dimension_semantics<parallel>], iteration_bounds = array<i64: 2, 4>, scalar_prefetch = 0 : i64, scratch_operands = 0 : i64, tpu.core_type = #tpu.core_type<tc>, window_params = [{transform_indices = @transform_0, window_bounds = array<i64: 1, 1, 64, 128>}, {transform_indices = @transform_1, window_bounds = array<i64: 1, 1, 64, 128>}, {transform_indices = @transform_2, window_bounds = array<i64: 1, 1, 64, 128>}, {pipeline_mode = #tpu.pipeline_mode<synchronous>, transform_indices = @transform_3, window_bounds = array<i64: 27, 128, 128>}, {pipeline_mode = #tpu.pipeline_mode<synchronous>, transform_indices = @transform_4, window_bounds = array<i64: 1, 128>}, {transform_indices = @transform_5, window_bounds = array<i64: 1, 1, 64, 128>}]} {
    %c0 = arith.constant 0 : index
    %c0_0 = arith.constant 0 : index
    %0 = vector.load %arg6[%c0, %c0_0] : memref<1x128xf32, #tpu.memory_space<vmem>>, vector<1x128xf32>
    %cst = arith.constant 0.000000e+00 : f32
    %1 = vector.broadcast %cst : f32 to vector<46x128xf32>
    %c0_1 = arith.constant 0 : index
    %c0_2 = arith.constant 0 : index
    %c0_3 = arith.constant 0 : index
    %c0_4 = arith.constant 0 : index
    %2 = vector.load %arg2[%c0_1, %c0_2, %c0_3, %c0_4] : memref<1x1x64x128xbf16, #tpu.memory_space<vmem>>, vector<1x1x46x128xbf16>
    %3 = vector.shape_cast %2 : vector<1x1x46x128xbf16> to vector<46x128xbf16>
    %c0_5 = arith.constant 0 : index
    %c0_6 = arith.constant 0 : index
    %c0_7 = arith.constant 0 : index
    %4 = vector.load %arg5[%c0_5, %c0_6, %c0_7] : memref<27x128x128xbf16, #tpu.memory_space<vmem>>, vector<1x128x128xbf16>
    %5 = vector.shape_cast %4 : vector<1x128x128xbf16> to vector<128x128xbf16>
    %cst_8 = arith.constant dense<0.000000e+00> : vector<46x128xf32>
    %6 = tpu.matmul %3, %5, %cst_8 {dimension_numbers = #tpu.dot_dimension_numbers<[1], [0], [0], [1], [0, 0, 1, 1], [], []>} : vector<46x128xbf16>, vector<128x128xbf16>, vector<46x128xf32> -> vector<46x128xf32>
    %7 = arith.addf %1, %6 : vector<46x128xf32>
    %c0_9 = arith.constant 0 : index
    %c0_10 = arith.constant 0 : index
    %c1 = arith.constant 1 : index
    %c0_11 = arith.constant 0 : index
    %8 = vector.load %arg2[%c0_9, %c0_10, %c1, %c0_11] : memref<1x1x64x128xbf16, #tpu.memory_space<vmem>>, vector<1x1x46x128xbf16>
    %9 = vector.shape_cast %8 : vector<1x1x46x128xbf16> to vector<46x128xbf16>
    %c1_12 = arith.constant 1 : index
    %c0_13 = arith.constant 0 : index
    %c0_14 = arith.constant 0 : index
    %10 = vector.load %arg5[%c1_12, %c0_13, %c0_14] : memref<27x128x128xbf16, #tpu.memory_space<vmem>>, vector<1x128x128xbf16>
    %11 = vector.shape_cast %10 : vector<1x128x128xbf16> to vector<128x128xbf16>
    %cst_15 = arith.constant dense<0.000000e+00> : vector<46x128xf32>
    %12 = tpu.matmul %9, %11, %cst_15 {dimension_numbers = #tpu.dot_dimension_numbers<[1], [0], [0], [1], [0, 0, 1, 1], [], []>} : vector<46x128xbf16>, vector<128x128xbf16>, vector<46x128xf32> -> vector<46x128xf32>
    %13 = arith.addf %7, %12 : vector<46x128xf32>
    %c0_16 = arith.constant 0 : index
    %c0_17 = arith.constant 0 : index
    %c2 = arith.constant 2 : index
    %c0_18 = arith.constant 0 : index
    %14 = vector.load %arg2[%c0_16, %c0_17, %c2, %c0_18] : memref<1x1x64x128xbf16, #tpu.memory_space<vmem>>, vector<1x1x46x128xbf16>
    %15 = vector.shape_cast %14 : vector<1x1x46x128xbf16> to vector<46x128xbf16>
    %c2_19 = arith.constant 2 : index
    %c0_20 = arith.constant 0 : index
    %c0_21 = arith.constant 0 : index
    %16 = vector.load %arg5[%c2_19, %c0_20, %c0_21] : memref<27x128x128xbf16, #tpu.memory_space<vmem>>, vector<1x128x128xbf16>
    %17 = vector.shape_cast %16 : vector<1x128x128xbf16> to vector<128x128xbf16>
    %cst_22 = arith.constant dense<0.000000e+00> : vector<46x128xf32>
    %18 = tpu.matmul %15, %17, %cst_22 {dimension_numbers = #tpu.dot_dimension_numbers<[1], [0], [0], [1], [0, 0, 1, 1], [], []>} : vector<46x128xbf16>, vector<128x128xbf16>, vector<46x128xf32> -> vector<46x128xf32>
    %19 = arith.addf %13, %18 : vector<46x128xf32>
    %c0_23 = arith.constant 0 : index
    %c0_24 = arith.constant 0 : index
    %c8 = arith.constant 8 : index
    %c0_25 = arith.constant 0 : index
    %20 = vector.load %arg2[%c0_23, %c0_24, %c8, %c0_25] : memref<1x1x64x128xbf16, #tpu.memory_space<vmem>>, vector<1x1x46x128xbf16>
    %21 = vector.shape_cast %20 : vector<1x1x46x128xbf16> to vector<46x128xbf16>
    %c3 = arith.constant 3 : index
    %c0_26 = arith.constant 0 : index
    %c0_27 = arith.constant 0 : index
    %22 = vector.load %arg5[%c3, %c0_26, %c0_27] : memref<27x128x128xbf16, #tpu.memory_space<vmem>>, vector<1x128x128xbf16>
    %23 = vector.shape_cast %22 : vector<1x128x128xbf16> to vector<128x128xbf16>
    %cst_28 = arith.constant dense<0.000000e+00> : vector<46x128xf32>
    %24 = tpu.matmul %21, %23, %cst_28 {dimension_numbers = #tpu.dot_dimension_numbers<[1], [0], [0], [1], [0, 0, 1, 1], [], []>} : vector<46x128xbf16>, vector<128x128xbf16>, vector<46x128xf32> -> vector<46x128xf32>
    %25 = arith.addf %19, %24 : vector<46x128xf32>
    %c0_29 = arith.constant 0 : index
    %c0_30 = arith.constant 0 : index
    %c9 = arith.constant 9 : index
    %c0_31 = arith.constant 0 : index
    %26 = vector.load %arg2[%c0_29, %c0_30, %c9, %c0_31] : memref<1x1x64x128xbf16, #tpu.memory_space<vmem>>, vector<1x1x46x128xbf16>
    %27 = vector.shape_cast %26 : vector<1x1x46x128xbf16> to vector<46x128xbf16>
    %c4 = arith.constant 4 : index
    %c0_32 = arith.constant 0 : index
    %c0_33 = arith.constant 0 : index
    %28 = vector.load %arg5[%c4, %c0_32, %c0_33] : memref<27x128x128xbf16, #tpu.memory_space<vmem>>, vector<1x128x128xbf16>
    %29 = vector.shape_cast %28 : vector<1x128x128xbf16> to vector<128x128xbf16>
    %cst_34 = arith.constant dense<0.000000e+00> : vector<46x128xf32>
    %30 = tpu.matmul %27, %29, %cst_34 {dimension_numbers = #tpu.dot_dimension_numbers<[1], [0], [0], [1], [0, 0, 1, 1], [], []>} : vector<46x128xbf16>, vector<128x128xbf16>, vector<46x128xf32> -> vector<46x128xf32>
    %31 = arith.addf %25, %30 : vector<46x128xf32>
    %c0_35 = arith.constant 0 : index
    %c0_36 = arith.constant 0 : index
    %c10 = arith.constant 10 : index
    %c0_37 = arith.constant 0 : index
    %32 = vector.load %arg2[%c0_35, %c0_36, %c10, %c0_37] : memref<1x1x64x128xbf16, #tpu.memory_space<vmem>>, vector<1x1x46x128xbf16>
    %33 = vector.shape_cast %32 : vector<1x1x46x128xbf16> to vector<46x128xbf16>
    %c5 = arith.constant 5 : index
    %c0_38 = arith.constant 0 : index
    %c0_39 = arith.constant 0 : index
    %34 = vector.load %arg5[%c5, %c0_38, %c0_39] : memref<27x128x128xbf16, #tpu.memory_space<vmem>>, vector<1x128x128xbf16>
    %35 = vector.shape_cast %34 : vector<1x128x128xbf16> to vector<128x128xbf16>
    %cst_40 = arith.constant dense<0.000000e+00> : vector<46x128xf32>
    %36 = tpu.matmul %33, %35, %cst_40 {dimension_numbers = #tpu.dot_dimension_numbers<[1], [0], [0], [1], [0, 0, 1, 1], [], []>} : vector<46x128xbf16>, vector<128x128xbf16>, vector<46x128xf32> -> vector<46x128xf32>
    %37 = arith.addf %31, %36 : vector<46x128xf32>
    %c0_41 = arith.constant 0 : index
    %c0_42 = arith.constant 0 : index
    %c16 = arith.constant 16 : index
    %c0_43 = arith.constant 0 : index
    %38 = vector.load %arg2[%c0_41, %c0_42, %c16, %c0_43] : memref<1x1x64x128xbf16, #tpu.memory_space<vmem>>, vector<1x1x46x128xbf16>
    %39 = vector.shape_cast %38 : vector<1x1x46x128xbf16> to vector<46x128xbf16>
    %c6 = arith.constant 6 : index
    %c0_44 = arith.constant 0 : index
    %c0_45 = arith.constant 0 : index
    %40 = vector.load %arg5[%c6, %c0_44, %c0_45] : memref<27x128x128xbf16, #tpu.memory_space<vmem>>, vector<1x128x128xbf16>
    %41 = vector.shape_cast %40 : vector<1x128x128xbf16> to vector<128x128xbf16>
    %cst_46 = arith.constant dense<0.000000e+00> : vector<46x128xf32>
    %42 = tpu.matmul %39, %41, %cst_46 {dimension_numbers = #tpu.dot_dimension_numbers<[1], [0], [0], [1], [0, 0, 1, 1], [], []>} : vector<46x128xbf16>, vector<128x128xbf16>, vector<46x128xf32> -> vector<46x128xf32>
    %43 = arith.addf %37, %42 : vector<46x128xf32>
    %c0_47 = arith.constant 0 : index
    %c0_48 = arith.constant 0 : index
    %c17 = arith.constant 17 : index
    %c0_49 = arith.constant 0 : index
    %44 = vector.load %arg2[%c0_47, %c0_48, %c17, %c0_49] : memref<1x1x64x128xbf16, #tpu.memory_space<vmem>>, vector<1x1x46x128xbf16>
    %45 = vector.shape_cast %44 : vector<1x1x46x128xbf16> to vector<46x128xbf16>
    %c7 = arith.constant 7 : index
    %c0_50 = arith.constant 0 : index
    %c0_51 = arith.constant 0 : index
    %46 = vector.load %arg5[%c7, %c0_50, %c0_51] : memref<27x128x128xbf16, #tpu.memory_space<vmem>>, vector<1x128x128xbf16>
    %47 = vector.shape_cast %46 : vector<1x128x128xbf16> to vector<128x128xbf16>
    %cst_52 = arith.constant dense<0.000000e+00> : vector<46x128xf32>
    %48 = tpu.matmul %45, %47, %cst_52 {dimension_numbers = #tpu.dot_dimension_numbers<[1], [0], [0], [1], [0, 0, 1, 1], [], []>} : vector<46x128xbf16>, vector<128x128xbf16>, vector<46x128xf32> -> vector<46x128xf32>
    %49 = arith.addf %43, %48 : vector<46x128xf32>
    %c0_53 = arith.constant 0 : index
    %c0_54 = arith.constant 0 : index
    %c18 = arith.constant 18 : index
    %c0_55 = arith.constant 0 : index
    %50 = vector.load %arg2[%c0_53, %c0_54, %c18, %c0_55] : memref<1x1x64x128xbf16, #tpu.memory_space<vmem>>, vector<1x1x46x128xbf16>
    %51 = vector.shape_cast %50 : vector<1x1x46x128xbf16> to vector<46x128xbf16>
    %c8_56 = arith.constant 8 : index
    %c0_57 = arith.constant 0 : index
    %c0_58 = arith.constant 0 : index
    %52 = vector.load %arg5[%c8_56, %c0_57, %c0_58] : memref<27x128x128xbf16, #tpu.memory_space<vmem>>, vector<1x128x128xbf16>
    %53 = vector.shape_cast %52 : vector<1x128x128xbf16> to vector<128x128xbf16>
    %cst_59 = arith.constant dense<0.000000e+00> : vector<46x128xf32>
    %54 = tpu.matmul %51, %53, %cst_59 {dimension_numbers = #tpu.dot_dimension_numbers<[1], [0], [0], [1], [0, 0, 1, 1], [], []>} : vector<46x128xbf16>, vector<128x128xbf16>, vector<46x128xf32> -> vector<46x128xf32>
    %55 = arith.addf %49, %54 : vector<46x128xf32>
    %c0_60 = arith.constant 0 : index
    %c0_61 = arith.constant 0 : index
    %c0_62 = arith.constant 0 : index
    %c0_63 = arith.constant 0 : index
    %56 = vector.load %arg3[%c0_60, %c0_61, %c0_62, %c0_63] : memref<1x1x64x128xbf16, #tpu.memory_space<vmem>>, vector<1x1x46x128xbf16>
    %57 = vector.shape_cast %56 : vector<1x1x46x128xbf16> to vector<46x128xbf16>
    %c9_64 = arith.constant 9 : index
    %c0_65 = arith.constant 0 : index
    %c0_66 = arith.constant 0 : index
    %58 = vector.load %arg5[%c9_64, %c0_65, %c0_66] : memref<27x128x128xbf16, #tpu.memory_space<vmem>>, vector<1x128x128xbf16>
    %59 = vector.shape_cast %58 : vector<1x128x128xbf16> to vector<128x128xbf16>
    %cst_67 = arith.constant dense<0.000000e+00> : vector<46x128xf32>
    %60 = tpu.matmul %57, %59, %cst_67 {dimension_numbers = #tpu.dot_dimension_numbers<[1], [0], [0], [1], [0, 0, 1, 1], [], []>} : vector<46x128xbf16>, vector<128x128xbf16>, vector<46x128xf32> -> vector<46x128xf32>
    %61 = arith.addf %55, %60 : vector<46x128xf32>
    %c0_68 = arith.constant 0 : index
    %c0_69 = arith.constant 0 : index
    %c1_70 = arith.constant 1 : index
    %c0_71 = arith.constant 0 : index
    %62 = vector.load %arg3[%c0_68, %c0_69, %c1_70, %c0_71] : memref<1x1x64x128xbf16, #tpu.memory_space<vmem>>, vector<1x1x46x128xbf16>
    %63 = vector.shape_cast %62 : vector<1x1x46x128xbf16> to vector<46x128xbf16>
    %c10_72 = arith.constant 10 : index
    %c0_73 = arith.constant 0 : index
    %c0_74 = arith.constant 0 : index
    %64 = vector.load %arg5[%c10_72, %c0_73, %c0_74] : memref<27x128x128xbf16, #tpu.memory_space<vmem>>, vector<1x128x128xbf16>
    %65 = vector.shape_cast %64 : vector<1x128x128xbf16> to vector<128x128xbf16>
    %cst_75 = arith.constant dense<0.000000e+00> : vector<46x128xf32>
    %66 = tpu.matmul %63, %65, %cst_75 {dimension_numbers = #tpu.dot_dimension_numbers<[1], [0], [0], [1], [0, 0, 1, 1], [], []>} : vector<46x128xbf16>, vector<128x128xbf16>, vector<46x128xf32> -> vector<46x128xf32>
    %67 = arith.addf %61, %66 : vector<46x128xf32>
    %c0_76 = arith.constant 0 : index
    %c0_77 = arith.constant 0 : index
    %c2_78 = arith.constant 2 : index
    %c0_79 = arith.constant 0 : index
    %68 = vector.load %arg3[%c0_76, %c0_77, %c2_78, %c0_79] : memref<1x1x64x128xbf16, #tpu.memory_space<vmem>>, vector<1x1x46x128xbf16>
    %69 = vector.shape_cast %68 : vector<1x1x46x128xbf16> to vector<46x128xbf16>
    %c11 = arith.constant 11 : index
    %c0_80 = arith.constant 0 : index
    %c0_81 = arith.constant 0 : index
    %70 = vector.load %arg5[%c11, %c0_80, %c0_81] : memref<27x128x128xbf16, #tpu.memory_space<vmem>>, vector<1x128x128xbf16>
    %71 = vector.shape_cast %70 : vector<1x128x128xbf16> to vector<128x128xbf16>
    %cst_82 = arith.constant dense<0.000000e+00> : vector<46x128xf32>
    %72 = tpu.matmul %69, %71, %cst_82 {dimension_numbers = #tpu.dot_dimension_numbers<[1], [0], [0], [1], [0, 0, 1, 1], [], []>} : vector<46x128xbf16>, vector<128x128xbf16>, vector<46x128xf32> -> vector<46x128xf32>
    %73 = arith.addf %67, %72 : vector<46x128xf32>
    %c0_83 = arith.constant 0 : index
    %c0_84 = arith.constant 0 : index
    %c8_85 = arith.constant 8 : index
    %c0_86 = arith.constant 0 : index
    %74 = vector.load %arg3[%c0_83, %c0_84, %c8_85, %c0_86] : memref<1x1x64x128xbf16, #tpu.memory_space<vmem>>, vector<1x1x46x128xbf16>
    %75 = vector.shape_cast %74 : vector<1x1x46x128xbf16> to vector<46x128xbf16>
    %c12 = arith.constant 12 : index
    %c0_87 = arith.constant 0 : index
    %c0_88 = arith.constant 0 : index
    %76 = vector.load %arg5[%c12, %c0_87, %c0_88] : memref<27x128x128xbf16, #tpu.memory_space<vmem>>, vector<1x128x128xbf16>
    %77 = vector.shape_cast %76 : vector<1x128x128xbf16> to vector<128x128xbf16>
    %cst_89 = arith.constant dense<0.000000e+00> : vector<46x128xf32>
    %78 = tpu.matmul %75, %77, %cst_89 {dimension_numbers = #tpu.dot_dimension_numbers<[1], [0], [0], [1], [0, 0, 1, 1], [], []>} : vector<46x128xbf16>, vector<128x128xbf16>, vector<46x128xf32> -> vector<46x128xf32>
    %79 = arith.addf %73, %78 : vector<46x128xf32>
    %c0_90 = arith.constant 0 : index
    %c0_91 = arith.constant 0 : index
    %c9_92 = arith.constant 9 : index
    %c0_93 = arith.constant 0 : index
    %80 = vector.load %arg3[%c0_90, %c0_91, %c9_92, %c0_93] : memref<1x1x64x128xbf16, #tpu.memory_space<vmem>>, vector<1x1x46x128xbf16>
    %81 = vector.shape_cast %80 : vector<1x1x46x128xbf16> to vector<46x128xbf16>
    %c13 = arith.constant 13 : index
    %c0_94 = arith.constant 0 : index
    %c0_95 = arith.constant 0 : index
    %82 = vector.load %arg5[%c13, %c0_94, %c0_95] : memref<27x128x128xbf16, #tpu.memory_space<vmem>>, vector<1x128x128xbf16>
    %83 = vector.shape_cast %82 : vector<1x128x128xbf16> to vector<128x128xbf16>
    %cst_96 = arith.constant dense<0.000000e+00> : vector<46x128xf32>
    %84 = tpu.matmul %81, %83, %cst_96 {dimension_numbers = #tpu.dot_dimension_numbers<[1], [0], [0], [1], [0, 0, 1, 1], [], []>} : vector<46x128xbf16>, vector<128x128xbf16>, vector<46x128xf32> -> vector<46x128xf32>
    %85 = arith.addf %79, %84 : vector<46x128xf32>
    %c0_97 = arith.constant 0 : index
    %c0_98 = arith.constant 0 : index
    %c10_99 = arith.constant 10 : index
    %c0_100 = arith.constant 0 : index
    %86 = vector.load %arg3[%c0_97, %c0_98, %c10_99, %c0_100] : memref<1x1x64x128xbf16, #tpu.memory_space<vmem>>, vector<1x1x46x128xbf16>
    %87 = vector.shape_cast %86 : vector<1x1x46x128xbf16> to vector<46x128xbf16>
    %c14 = arith.constant 14 : index
    %c0_101 = arith.constant 0 : index
    %c0_102 = arith.constant 0 : index
    %88 = vector.load %arg5[%c14, %c0_101, %c0_102] : memref<27x128x128xbf16, #tpu.memory_space<vmem>>, vector<1x128x128xbf16>
    %89 = vector.shape_cast %88 : vector<1x128x128xbf16> to vector<128x128xbf16>
    %cst_103 = arith.constant dense<0.000000e+00> : vector<46x128xf32>
    %90 = tpu.matmul %87, %89, %cst_103 {dimension_numbers = #tpu.dot_dimension_numbers<[1], [0], [0], [1], [0, 0, 1, 1], [], []>} : vector<46x128xbf16>, vector<128x128xbf16>, vector<46x128xf32> -> vector<46x128xf32>
    %91 = arith.addf %85, %90 : vector<46x128xf32>
    %c0_104 = arith.constant 0 : index
    %c0_105 = arith.constant 0 : index
    %c16_106 = arith.constant 16 : index
    %c0_107 = arith.constant 0 : index
    %92 = vector.load %arg3[%c0_104, %c0_105, %c16_106, %c0_107] : memref<1x1x64x128xbf16, #tpu.memory_space<vmem>>, vector<1x1x46x128xbf16>
    %93 = vector.shape_cast %92 : vector<1x1x46x128xbf16> to vector<46x128xbf16>
    %c15 = arith.constant 15 : index
    %c0_108 = arith.constant 0 : index
    %c0_109 = arith.constant 0 : index
    %94 = vector.load %arg5[%c15, %c0_108, %c0_109] : memref<27x128x128xbf16, #tpu.memory_space<vmem>>, vector<1x128x128xbf16>
    %95 = vector.shape_cast %94 : vector<1x128x128xbf16> to vector<128x128xbf16>
    %cst_110 = arith.constant dense<0.000000e+00> : vector<46x128xf32>
    %96 = tpu.matmul %93, %95, %cst_110 {dimension_numbers = #tpu.dot_dimension_numbers<[1], [0], [0], [1], [0, 0, 1, 1], [], []>} : vector<46x128xbf16>, vector<128x128xbf16>, vector<46x128xf32> -> vector<46x128xf32>
    %97 = arith.addf %91, %96 : vector<46x128xf32>
    %c0_111 = arith.constant 0 : index
    %c0_112 = arith.constant 0 : index
    %c17_113 = arith.constant 17 : index
    %c0_114 = arith.constant 0 : index
    %98 = vector.load %arg3[%c0_111, %c0_112, %c17_113, %c0_114] : memref<1x1x64x128xbf16, #tpu.memory_space<vmem>>, vector<1x1x46x128xbf16>
    %99 = vector.shape_cast %98 : vector<1x1x46x128xbf16> to vector<46x128xbf16>
    %c16_115 = arith.constant 16 : index
    %c0_116 = arith.constant 0 : index
    %c0_117 = arith.constant 0 : index
    %100 = vector.load %arg5[%c16_115, %c0_116, %c0_117] : memref<27x128x128xbf16, #tpu.memory_space<vmem>>, vector<1x128x128xbf16>
    %101 = vector.shape_cast %100 : vector<1x128x128xbf16> to vector<128x128xbf16>
    %cst_118 = arith.constant dense<0.000000e+00> : vector<46x128xf32>
    %102 = tpu.matmul %99, %101, %cst_118 {dimension_numbers = #tpu.dot_dimension_numbers<[1], [0], [0], [1], [0, 0, 1, 1], [], []>} : vector<46x128xbf16>, vector<128x128xbf16>, vector<46x128xf32> -> vector<46x128xf32>
    %103 = arith.addf %97, %102 : vector<46x128xf32>
    %c0_119 = arith.constant 0 : index
    %c0_120 = arith.constant 0 : index
    %c18_121 = arith.constant 18 : index
    %c0_122 = arith.constant 0 : index
    %104 = vector.load %arg3[%c0_119, %c0_120, %c18_121, %c0_122] : memref<1x1x64x128xbf16, #tpu.memory_space<vmem>>, vector<1x1x46x128xbf16>
    %105 = vector.shape_cast %104 : vector<1x1x46x128xbf16> to vector<46x128xbf16>
    %c17_123 = arith.constant 17 : index
    %c0_124 = arith.constant 0 : index
    %c0_125 = arith.constant 0 : index
    %106 = vector.load %arg5[%c17_123, %c0_124, %c0_125] : memref<27x128x128xbf16, #tpu.memory_space<vmem>>, vector<1x128x128xbf16>
    %107 = vector.shape_cast %106 : vector<1x128x128xbf16> to vector<128x128xbf16>
    %cst_126 = arith.constant dense<0.000000e+00> : vector<46x128xf32>
    %108 = tpu.matmul %105, %107, %cst_126 {dimension_numbers = #tpu.dot_dimension_numbers<[1], [0], [0], [1], [0, 0, 1, 1], [], []>} : vector<46x128xbf16>, vector<128x128xbf16>, vector<46x128xf32> -> vector<46x128xf32>
    %109 = arith.addf %103, %108 : vector<46x128xf32>
    %c0_127 = arith.constant 0 : index
    %c0_128 = arith.constant 0 : index
    %c0_129 = arith.constant 0 : index
    %c0_130 = arith.constant 0 : index
    %110 = vector.load %arg4[%c0_127, %c0_128, %c0_129, %c0_130] : memref<1x1x64x128xbf16, #tpu.memory_space<vmem>>, vector<1x1x46x128xbf16>
    %111 = vector.shape_cast %110 : vector<1x1x46x128xbf16> to vector<46x128xbf16>
    %c18_131 = arith.constant 18 : index
    %c0_132 = arith.constant 0 : index
    %c0_133 = arith.constant 0 : index
    %112 = vector.load %arg5[%c18_131, %c0_132, %c0_133] : memref<27x128x128xbf16, #tpu.memory_space<vmem>>, vector<1x128x128xbf16>
    %113 = vector.shape_cast %112 : vector<1x128x128xbf16> to vector<128x128xbf16>
    %cst_134 = arith.constant dense<0.000000e+00> : vector<46x128xf32>
    %114 = tpu.matmul %111, %113, %cst_134 {dimension_numbers = #tpu.dot_dimension_numbers<[1], [0], [0], [1], [0, 0, 1, 1], [], []>} : vector<46x128xbf16>, vector<128x128xbf16>, vector<46x128xf32> -> vector<46x128xf32>
    %115 = arith.addf %109, %114 : vector<46x128xf32>
    %c0_135 = arith.constant 0 : index
    %c0_136 = arith.constant 0 : index
    %c1_137 = arith.constant 1 : index
    %c0_138 = arith.constant 0 : index
    %116 = vector.load %arg4[%c0_135, %c0_136, %c1_137, %c0_138] : memref<1x1x64x128xbf16, #tpu.memory_space<vmem>>, vector<1x1x46x128xbf16>
    %117 = vector.shape_cast %116 : vector<1x1x46x128xbf16> to vector<46x128xbf16>
    %c19 = arith.constant 19 : index
    %c0_139 = arith.constant 0 : index
    %c0_140 = arith.constant 0 : index
    %118 = vector.load %arg5[%c19, %c0_139, %c0_140] : memref<27x128x128xbf16, #tpu.memory_space<vmem>>, vector<1x128x128xbf16>
    %119 = vector.shape_cast %118 : vector<1x128x128xbf16> to vector<128x128xbf16>
    %cst_141 = arith.constant dense<0.000000e+00> : vector<46x128xf32>
    %120 = tpu.matmul %117, %119, %cst_141 {dimension_numbers = #tpu.dot_dimension_numbers<[1], [0], [0], [1], [0, 0, 1, 1], [], []>} : vector<46x128xbf16>, vector<128x128xbf16>, vector<46x128xf32> -> vector<46x128xf32>
    %121 = arith.addf %115, %120 : vector<46x128xf32>
    %c0_142 = arith.constant 0 : index
    %c0_143 = arith.constant 0 : index
    %c2_144 = arith.constant 2 : index
    %c0_145 = arith.constant 0 : index
    %122 = vector.load %arg4[%c0_142, %c0_143, %c2_144, %c0_145] : memref<1x1x64x128xbf16, #tpu.memory_space<vmem>>, vector<1x1x46x128xbf16>
    %123 = vector.shape_cast %122 : vector<1x1x46x128xbf16> to vector<46x128xbf16>
    %c20 = arith.constant 20 : index
    %c0_146 = arith.constant 0 : index
    %c0_147 = arith.constant 0 : index
    %124 = vector.load %arg5[%c20, %c0_146, %c0_147] : memref<27x128x128xbf16, #tpu.memory_space<vmem>>, vector<1x128x128xbf16>
    %125 = vector.shape_cast %124 : vector<1x128x128xbf16> to vector<128x128xbf16>
    %cst_148 = arith.constant dense<0.000000e+00> : vector<46x128xf32>
    %126 = tpu.matmul %123, %125, %cst_148 {dimension_numbers = #tpu.dot_dimension_numbers<[1], [0], [0], [1], [0, 0, 1, 1], [], []>} : vector<46x128xbf16>, vector<128x128xbf16>, vector<46x128xf32> -> vector<46x128xf32>
    %127 = arith.addf %121, %126 : vector<46x128xf32>
    %c0_149 = arith.constant 0 : index
    %c0_150 = arith.constant 0 : index
    %c8_151 = arith.constant 8 : index
    %c0_152 = arith.constant 0 : index
    %128 = vector.load %arg4[%c0_149, %c0_150, %c8_151, %c0_152] : memref<1x1x64x128xbf16, #tpu.memory_space<vmem>>, vector<1x1x46x128xbf16>
    %129 = vector.shape_cast %128 : vector<1x1x46x128xbf16> to vector<46x128xbf16>
    %c21 = arith.constant 21 : index
    %c0_153 = arith.constant 0 : index
    %c0_154 = arith.constant 0 : index
    %130 = vector.load %arg5[%c21, %c0_153, %c0_154] : memref<27x128x128xbf16, #tpu.memory_space<vmem>>, vector<1x128x128xbf16>
    %131 = vector.shape_cast %130 : vector<1x128x128xbf16> to vector<128x128xbf16>
    %cst_155 = arith.constant dense<0.000000e+00> : vector<46x128xf32>
    %132 = tpu.matmul %129, %131, %cst_155 {dimension_numbers = #tpu.dot_dimension_numbers<[1], [0], [0], [1], [0, 0, 1, 1], [], []>} : vector<46x128xbf16>, vector<128x128xbf16>, vector<46x128xf32> -> vector<46x128xf32>
    %133 = arith.addf %127, %132 : vector<46x128xf32>
    %c0_156 = arith.constant 0 : index
    %c0_157 = arith.constant 0 : index
    %c9_158 = arith.constant 9 : index
    %c0_159 = arith.constant 0 : index
    %134 = vector.load %arg4[%c0_156, %c0_157, %c9_158, %c0_159] : memref<1x1x64x128xbf16, #tpu.memory_space<vmem>>, vector<1x1x46x128xbf16>
    %135 = vector.shape_cast %134 : vector<1x1x46x128xbf16> to vector<46x128xbf16>
    %c22 = arith.constant 22 : index
    %c0_160 = arith.constant 0 : index
    %c0_161 = arith.constant 0 : index
    %136 = vector.load %arg5[%c22, %c0_160, %c0_161] : memref<27x128x128xbf16, #tpu.memory_space<vmem>>, vector<1x128x128xbf16>
    %137 = vector.shape_cast %136 : vector<1x128x128xbf16> to vector<128x128xbf16>
    %cst_162 = arith.constant dense<0.000000e+00> : vector<46x128xf32>
    %138 = tpu.matmul %135, %137, %cst_162 {dimension_numbers = #tpu.dot_dimension_numbers<[1], [0], [0], [1], [0, 0, 1, 1], [], []>} : vector<46x128xbf16>, vector<128x128xbf16>, vector<46x128xf32> -> vector<46x128xf32>
    %139 = arith.addf %133, %138 : vector<46x128xf32>
    %c0_163 = arith.constant 0 : index
    %c0_164 = arith.constant 0 : index
    %c10_165 = arith.constant 10 : index
    %c0_166 = arith.constant 0 : index
    %140 = vector.load %arg4[%c0_163, %c0_164, %c10_165, %c0_166] : memref<1x1x64x128xbf16, #tpu.memory_space<vmem>>, vector<1x1x46x128xbf16>
    %141 = vector.shape_cast %140 : vector<1x1x46x128xbf16> to vector<46x128xbf16>
    %c23 = arith.constant 23 : index
    %c0_167 = arith.constant 0 : index
    %c0_168 = arith.constant 0 : index
    %142 = vector.load %arg5[%c23, %c0_167, %c0_168] : memref<27x128x128xbf16, #tpu.memory_space<vmem>>, vector<1x128x128xbf16>
    %143 = vector.shape_cast %142 : vector<1x128x128xbf16> to vector<128x128xbf16>
    %cst_169 = arith.constant dense<0.000000e+00> : vector<46x128xf32>
    %144 = tpu.matmul %141, %143, %cst_169 {dimension_numbers = #tpu.dot_dimension_numbers<[1], [0], [0], [1], [0, 0, 1, 1], [], []>} : vector<46x128xbf16>, vector<128x128xbf16>, vector<46x128xf32> -> vector<46x128xf32>
    %145 = arith.addf %139, %144 : vector<46x128xf32>
    %c0_170 = arith.constant 0 : index
    %c0_171 = arith.constant 0 : index
    %c16_172 = arith.constant 16 : index
    %c0_173 = arith.constant 0 : index
    %146 = vector.load %arg4[%c0_170, %c0_171, %c16_172, %c0_173] : memref<1x1x64x128xbf16, #tpu.memory_space<vmem>>, vector<1x1x46x128xbf16>
    %147 = vector.shape_cast %146 : vector<1x1x46x128xbf16> to vector<46x128xbf16>
    %c24 = arith.constant 24 : index
    %c0_174 = arith.constant 0 : index
    %c0_175 = arith.constant 0 : index
    %148 = vector.load %arg5[%c24, %c0_174, %c0_175] : memref<27x128x128xbf16, #tpu.memory_space<vmem>>, vector<1x128x128xbf16>
    %149 = vector.shape_cast %148 : vector<1x128x128xbf16> to vector<128x128xbf16>
    %cst_176 = arith.constant dense<0.000000e+00> : vector<46x128xf32>
    %150 = tpu.matmul %147, %149, %cst_176 {dimension_numbers = #tpu.dot_dimension_numbers<[1], [0], [0], [1], [0, 0, 1, 1], [], []>} : vector<46x128xbf16>, vector<128x128xbf16>, vector<46x128xf32> -> vector<46x128xf32>
    %151 = arith.addf %145, %150 : vector<46x128xf32>
    %c0_177 = arith.constant 0 : index
    %c0_178 = arith.constant 0 : index
    %c17_179 = arith.constant 17 : index
    %c0_180 = arith.constant 0 : index
    %152 = vector.load %arg4[%c0_177, %c0_178, %c17_179, %c0_180] : memref<1x1x64x128xbf16, #tpu.memory_space<vmem>>, vector<1x1x46x128xbf16>
    %153 = vector.shape_cast %152 : vector<1x1x46x128xbf16> to vector<46x128xbf16>
    %c25 = arith.constant 25 : index
    %c0_181 = arith.constant 0 : index
    %c0_182 = arith.constant 0 : index
    %154 = vector.load %arg5[%c25, %c0_181, %c0_182] : memref<27x128x128xbf16, #tpu.memory_space<vmem>>, vector<1x128x128xbf16>
    %155 = vector.shape_cast %154 : vector<1x128x128xbf16> to vector<128x128xbf16>
    %cst_183 = arith.constant dense<0.000000e+00> : vector<46x128xf32>
    %156 = tpu.matmul %153, %155, %cst_183 {dimension_numbers = #tpu.dot_dimension_numbers<[1], [0], [0], [1], [0, 0, 1, 1], [], []>} : vector<46x128xbf16>, vector<128x128xbf16>, vector<46x128xf32> -> vector<46x128xf32>
    %157 = arith.addf %151, %156 : vector<46x128xf32>
    %c0_184 = arith.constant 0 : index
    %c0_185 = arith.constant 0 : index
    %c18_186 = arith.constant 18 : index
    %c0_187 = arith.constant 0 : index
    %158 = vector.load %arg4[%c0_184, %c0_185, %c18_186, %c0_187] : memref<1x1x64x128xbf16, #tpu.memory_space<vmem>>, vector<1x1x46x128xbf16>
    %159 = vector.shape_cast %158 : vector<1x1x46x128xbf16> to vector<46x128xbf16>
    %c26 = arith.constant 26 : index
    %c0_188 = arith.constant 0 : index
    %c0_189 = arith.constant 0 : index
    %160 = vector.load %arg5[%c26, %c0_188, %c0_189] : memref<27x128x128xbf16, #tpu.memory_space<vmem>>, vector<1x128x128xbf16>
    %161 = vector.shape_cast %160 : vector<1x128x128xbf16> to vector<128x128xbf16>
    %cst_190 = arith.constant dense<0.000000e+00> : vector<46x128xf32>
    %162 = tpu.matmul %159, %161, %cst_190 {dimension_numbers = #tpu.dot_dimension_numbers<[1], [0], [0], [1], [0, 0, 1, 1], [], []>} : vector<46x128xbf16>, vector<128x128xbf16>, vector<46x128xf32> -> vector<46x128xf32>
    %163 = arith.addf %157, %162 : vector<46x128xf32>
    %164 = vector.broadcast %0 : vector<1x128xf32> to vector<46x128xf32>
    %165 = arith.addf %163, %164 : vector<46x128xf32>
    %c0_191 = arith.constant 0 : index
    %c0_192 = arith.constant 0 : index
    %c0_193 = arith.constant 0 : index
    %c0_194 = arith.constant 0 : index
    %166 = vector.load %arg7[%c0_191, %c0_192, %c0_193, %c0_194] : memref<1x1x64x128xf32, #tpu.memory_space<vmem>>, vector<1x1x46x128xf32>
    %167 = vector.shape_cast %166 : vector<1x1x46x128xf32> to vector<46x128xf32>
    %168 = vector.shape_cast %165 : vector<46x128xf32> to vector<1x1x46x128xf32>
    tpu.vector_store %arg7[%c0_191, %c0_192, %c0_193, %c0_194], %168 {strides = array<i32>} : memref<1x1x64x128xf32, #tpu.memory_space<vmem>>, vector<1x1x46x128xf32>,
    %cst_195 = arith.constant 0.000000e+00 : f32
    %169 = vector.broadcast %cst_195 : f32 to vector<18x128xf32>
    %c0_196 = arith.constant 0 : index
    %c0_197 = arith.constant 0 : index
    %c46 = arith.constant 46 : index
    %c0_198 = arith.constant 0 : index
    %170 = vector.load %arg7[%c0_196, %c0_197, %c46, %c0_198] : memref<1x1x64x128xf32, #tpu.memory_space<vmem>>, vector<1x1x18x128xf32>
    %171 = vector.shape_cast %170 : vector<1x1x18x128xf32> to vector<18x128xf32>
    %172 = vector.shape_cast %169 : vector<18x128xf32> to vector<1x1x18x128xf32>
    tpu.vector_store %arg7[%c0_196, %c0_197, %c46, %c0_198], %172 {strides = array<i32>} : memref<1x1x64x128xf32, #tpu.memory_space<vmem>>, vector<1x1x18x128xf32>,
    return
  }
  func.func @transform_0(%arg0: i32, %arg1: i32) -> (i32, i32, i32, i32) {
    %c0_i32 = arith.constant 0 : i32
    %0 = arith.addi %arg1, %c0_i32 : i32
    %c0_i32_0 = arith.constant 0 : i32
    %c0_i32_1 = arith.constant 0 : i32
    %c0_i32_2 = arith.constant 0 : i32
    return %arg0, %0, %c0_i32_0, %c0_i32_1 : i32, i32, i32, i32
  }
  func.func @transform_1(%arg0: i32, %arg1: i32) -> (i32, i32, i32, i32) {
    %c1_i32 = arith.constant 1 : i32
    %0 = arith.addi %arg1, %c1_i32 : i32
    %c0_i32 = arith.constant 0 : i32
    %c0_i32_0 = arith.constant 0 : i32
    %c0_i32_1 = arith.constant 0 : i32
    return %arg0, %0, %c0_i32, %c0_i32_0 : i32, i32, i32, i32
  }
  func.func @transform_2(%arg0: i32, %arg1: i32) -> (i32, i32, i32, i32) {
    %c2_i32 = arith.constant 2 : i32
    %0 = arith.addi %arg1, %c2_i32 : i32
    %c0_i32 = arith.constant 0 : i32
    %c0_i32_0 = arith.constant 0 : i32
    %c0_i32_1 = arith.constant 0 : i32
    return %arg0, %0, %c0_i32, %c0_i32_0 : i32, i32, i32, i32
  }
  func.func @transform_3(%arg0: i32, %arg1: i32) -> (i32, i32, i32) {
    %c0_i32 = arith.constant 0 : i32
    %c0_i32_0 = arith.constant 0 : i32
    %c0_i32_1 = arith.constant 0 : i32
    %c0_i32_2 = arith.constant 0 : i32
    return %c0_i32, %c0_i32_0, %c0_i32_1 : i32, i32, i32
  }
  func.func @transform_4(%arg0: i32, %arg1: i32) -> (i32, i32) {
    %c0_i32 = arith.constant 0 : i32
    %c0_i32_0 = arith.constant 0 : i32
    %c0_i32_1 = arith.constant 0 : i32
    return %c0_i32, %c0_i32_0 : i32, i32
  }
  func.func @transform_5(%arg0: i32, %arg1: i32) -> (i32, i32, i32, i32) {
    %c0_i32 = arith.constant 0 : i32
    %c0_i32_0 = arith.constant 0 : i32
    %c0_i32_1 = arith.constant 0 : i32
    return %arg0, %arg1, %c0_i32, %c0_i32_0 : i32, i32, i32, i32
  }
}

</mosaic_0001>

<bundles_post_ra>
// kernel: encoder_forward.2
= control target key start
LH: loop header
LB: loop body
LE: loop exit
PB: predicated region body
PF: predicated region fallthrough
CT: control target
= control target key end

     0   :  { %s3936_s18 = smov 0   ;;  %s3938_s19 = smov 0   ;;  %s4646_s0 = inlined_call_operand.vmem [shape: bf16[2,8,64,8], index: 0, kind: input, shape index: {}, may-alias: {0,1,2}]   ;;  %s4647_s1 = inlined_call_operand.vmem [shape: bf16[2,8,64,8], index: 1, kind: input, shape index: {}, may-alias: {0,1,2}]   ;;  %s4648_s2 = inlined_call_operand.vmem [shape: bf16[2,8,64,8], index: 2, kind: input, shape index: {}, may-alias: {0,1,2}]   ;;  %s4649_s3 = inlined_call_operand.vmem [shape: bf16[27,8,128], index: 3, kind: input, shape index: {}]   ;;  %s4650_s4 = inlined_call_operand.vmem [shape: f32[1,128], index: 4, kind: input, shape index: {}]   ;;  %s4651_s5 = inlined_call_operand.vmem [shape: bf16[2,6,64,128], index: 5, kind: output, shape index: {}]  }
   0x1   :  { %s3940_s20 = smov 0   ;;  %s3942_s21 = smov 0  }
   0x2   :  { %s3944_s22 = smov 0  }
   0x3 LB: > { %s24_s23 = sadd.s32 1, %s3893_s20  ;;  %s27_s24 = sadd.s32 1, %s3897_s21  ;;  %s3901_s22 = sphi %s3944_s22, %s15_s22   ;;  %s3897_s21 = sphi %s3942_s21, %s4655_s21   ;;  %s3893_s20 = sphi %s3940_s20, %s4654_s20   ;;  %s3889_s19 = sphi %s3938_s19, %s4653_s19   ;;  %s3885_s18 = sphi %s3936_s18, %s4652_s18  }
   0x4   : > { %p25_p0 = scmp.ge.s32.totalorder %s24_s23, 6  ;;  %p3096_p1 = scmp.ge.s32.totalorder %s3901_s22, 1 }
   0x5   : > { %p247_p2 = scmp.lt.s32.totalorder %s3901_s22, 13 }
   0x6   : > { %s4657_s23 = smov (%p25_p0, %s24_s23), 0  ;;  %s4659_s24 = smov (!%p25_p0, %s27_s24), %s3897_s21 }
   0x7   : > { %p248_p3 = pnand %p3096_p1, %p247_p2  ;;  %p29_p4 = scmp.ge.s32.totalorder %s4659_s24, 2 }
   0x8   : > { %v3108_v0 = vld [vmem:[%s4649_s3 + $0x4] sm:$0xf] (!%p248_p3)  ;;  %vm404_vm0 = vcmask (!%p248_p3), 1043456   ;;  %p303_p5 = scmp.lt.s32.totalorder (!%p248_p3), %s3889_s19, 1  ;;  %v3903_v1 = vmov (!%p248_p3), 0.0   ;;  %vm3904_vm1 = vmmov (!%p248_p3), 0  }
   0x9   : > { %s4661_s24 = smov (%p29_p4, %s4659_s24), 0  ;;  %251 = sbr.rel (%p248_p3) target bundleno = 574 (0x23e), region = 40 }
   0xa   : > { %3772 = vmatprep.subr.bf16.mxu1 (!%p248_p3), %v3903_v1  ;;  %v406_v2 = vsel (!%p248_p3), %vm404_vm0, %v3108_v0, 0  ;;  %3400 = vmatprep.mubr.msk.bf16.mxu1 (!%p248_p3), %vm3904_vm1, %v3903_v1  ;;  %p305_p6 = scmp.lt.s32.totalorder (!%p248_p3), %s3885_s18, 7  ;;  %s312_s27 = sadd.s32 (!%p248_p3), 1, %s3885_s18  ;;  %v351_v14 = vld [vmem:[%s4649_s3] sm:$0xf] (!%p248_p3)  ;;  %vm394_vm3 = vcmask (!%p248_p3), 64512  }
   0xb   : > { %3773 = vmatpush3.bf16.msra.mxu1 (!%p248_p3), %v406_v2  ;;  %3394 = vmatprep.subr.bf16.mxu0 (!%p248_p3), %v3903_v1  ;;  %p315_p7 = scmp.lt.s32.totalorder (!%p248_p3), %s312_s27, 7  ;;  %vm370_vm2 = vsmask.f32 (!%p248_p3), 7424  ;;  %v476_v20 = vsel (!%p248_p3), %vm404_vm0, %v351_v14, 0  ;;  %v3119_v22 = vld [vmem:[%s4649_s3 + $0x8] sm:$0xf] (!%p248_p3) }
   0xc   : > { %3408 = vmatprep.subr.bf16.mxu1 (!%p248_p3), %v3903_v1  ;;  %3395 = vmatpush3.bf16.msra.mxu0 (!%p248_p3), %v406_v2  ;;  %v557_v27 = vsel (!%p248_p3), %vm404_vm0, %v3119_v22, 0  ;;  %vm541_vm4 = vcmask (!%p248_p3), 1046528   ;;  %v3131_v32 = vld [vmem:[%s4649_s3 + $0x10] sm:$0xf] (!%p248_p3)  ;;  %v3124_v35 = vld [vmem:[%s4649_s3 + $0xc] sm:$0xf] (!%p248_p3) }
   0xd   : > { %3396 = vmatprep.mubr.msk.bf16.mxu0 (!%p248_p3), %vm3904_vm1, %v3903_v1  ;;  %3422 = vmatprep.subr.bf16.mxu0 (!%p248_p3), %v3903_v1  ;;  %v757_v34 = vsel (!%p248_p3), %vm404_vm0, %v3131_v32, 0  ;;  %v655_v39 = vsel (!%p248_p3), %vm404_vm0, %v3124_v35, 0  ;;  %v3141_v54 = vld [vmem:[%s4649_s3 + $0x18] sm:$0xf] (!%p248_p3)  ;;  %v3136_v59 = vld [vmem:[%s4649_s3 + $0x14] sm:$0xf] (!%p248_p3) }
   0xe   : > { %v941_v58 = vsel (!%p248_p3), %vm404_vm0, %v3141_v54, 0  ;;  %v843_v62 = vsel (!%p248_p3), %vm404_vm0, %v3136_v59, 0  ;;  %v3148_v14 = vld [vmem:[%s4649_s3 + $0x1c] sm:$0xf] (!%p248_p3)  ;;  %p336_p9 = scmp.lt.s32.totalorder (!%p248_p3), %s3885_s18, 5 }
  0x10   : > { %s4663_s19 = smov (!%p303_p5, %s3889_s19), 1  ;;  %s4665_s27 = smov (!%p315_p7, %s312_s27), 7 }
  0x11   : > { %s306_s28 = scalar_select %p305_p6, %s3885_s18, 7 }
  0x12   : > { %s3983_s29 = sshll.u32 %s4663_s19, 6  ;;  %s3100_s11 = sshll.u32 %s4665_s27, 3 }
  0x13   : > { %s3097_s30 = sshll.u32 %s306_s28, 3  ;;  %s319_s14 = sadd.s32 %s3100_s11, %s3983_s29 }
  0x14   : > { %s309_s6 = sadd.s32 %s3983_s29, %s3097_s30  ;;  %s3102_s17 = sshll.u32 %s319_s14, 2 }
  0x15   : > { %s3099_s7 = sshll.u32 %s309_s6, 2  ;;  %s4030_s27 = scalar_lea.vmem %s4647_s1, %s3102_s17 }
  0x16   : > { %s3992_s10 = scalar_lea.vmem %s4646_s0, %s3099_s7  ;;  %s323_s17 = sadd.s32 2, %s3885_s18 }
  0x17   : > { %v3995_v3 = vld [vmem:[%s3992_s10 + $0x8] sm:$0xff]   ;;  %v3998_v4 = vld [vmem:[%s3992_s10 + $0x10] sm:$0xf]  ;;  %v352_v5 = vld [vmem:[%s3992_s10 + $0x14] sm:$0xf]  ;;  %p326_p8 = scmp.lt.s32.totalorder %s323_s17, 7 }
  0x18   : > { %v345_v6 = vld [vmem:[%s3992_s10] sm:$0xf]  ;;  %v4003_v7 = vcombine.low %v3998_v4, %v352_v5  ;;  %v379_v8 = vshll.u32 %v3995_v3, 16  ;;  %v383_v9 = vshrl.u32 %v3995_v3, 16  ;;  %v346_v10 = vld [vmem:[%s3992_s10 + $0x4] sm:$0xf] }
  0x19   : > { %v3109_v11 = vcombine.low %v345_v6, %v346_v10  ;;  %v535_v19 = vld [vmem:[%s3992_s10] sm:$0xe]  ;;  %v543_v31 = vrot.slane %v3995_v3, 1  ;;  %v622_v37 = vld [vmem:[%s3992_s10 + $0x4] sm:$0xf]  ;;  %v4067_v42 = vld [vmem:[%s3992_s10 + $0xc] sm:$0xff]  }
  0x1a   : > { %v381_v12 = vrot.slane %v379_v8, 1  ;;  %v387_v13 = vshll.u32 %v4003_v7, 16  ;;  %v391_v25 = vshrl.u32 %v4003_v7, 16  ;;  %v3120_v26 = vcombine.low %v535_v19, %v346_v10  ;;  %v4053_v38 = vld [vmem:[%s3992_s10 + $0x8] sm:$0xf]  ;;  %s4667_s17 = smov (!%p326_p8, %s323_s17), 7 }
  0x1b   : > { %v372_v15 = vshrl.u32 %v3109_v11, 16  ;;  %v374_v16 = vshll.u32 %v3109_v11, 16  ;;  %v545_v36 = vrot.slane %v4003_v7, 1  ;;  %v3125_v41 = vcombine.low %v622_v37, %v4053_v38  ;;  %v350_v47 = vld [vmem:[%s3992_s10 + $0x14] sm:$0x7]  ;;  %s3103_s25 = sshll.u32 %s4667_s17, 3 }
  0x1c   : > { %v385_v17 = vor.u32 %v383_v9, %v381_v12  ;;  %v389_v18 = vrot.slane %v387_v13, 1  ;;  %v542_v30 = vrot.slane %v3120_v26, 1  ;;  %v732_v46 = vshll.u32 %v4067_v42, 16  ;;  %v626_v48 = vld [vmem:[%s3992_s10 + $0x14] sm:$0xf]  ;;  %s330_s26 = sadd.s32 %s3103_s25, %s3983_s29  ;;  %s4669_s18 = smov (!%p336_p9, %s3885_s18), 5 }
  0x1d   : > { %v376_v21 = vrot.slane %v374_v16, 1  ;;  %v546_v40 = vsel %vm541_vm4, %v543_v31, %v545_v36  ;;  %v728_v43 = vshll.u32 %v3125_v41, 16  ;;  %v726_v44 = vshrl.u32 %v3125_v41, 16  ;;  %v720_v49 = vld [vmem:[%s3992_s10 + $0x18] sm:$0xf]  ;;  %s3105_s28 = sshll.u32 %s330_s26, 2 }
  0x1e   : > { %v390_v23 = vsel %vm370_vm2, %v385_v17, %v389_v18  ;;  %v393_v29 = vor.u32 %v391_v25, %v389_v18  ;;  %v544_v33 = vsel %vm541_vm4, %v542_v30, %v543_v31  ;;  %v3115_v50 = vcombine.low %v3998_v4, %v350_v47  ;;  %v822_v4 = vld [vmem:[%s3992_s10 + $0x4] sm:$0xe]  ;;  %v908_v6 = vld [vmem:[%s3992_s10 + $0x8] sm:$0xf]  ;;  %v909_v7 = vld [vmem:[%s3992_s10 + $0xc] sm:$0xf]  ;;  %s4162_s7 = scalar_lea.vmem %s4648_s2, %s3105_s28 }
  0x1f   : > { %3401 = vmatmul.mubr.msk.bf16.vlgmr.msra.gmra.mrb[0].mxu1 %vm394_vm3, %v390_v23  ;;  %v377_v24 = vor.u32 %v376_v21, %v372_v15  ;;  %v730_v45 = vrot.slane %v728_v43, 1  ;;  %v734_v52 = vrot.slane %v732_v46, 1  ;;  %v4081_v53 = vcombine.low %v626_v48, %v720_v49  ;;  %v3153_v9 = vld [vmem:[%s4649_s3 + $0x20] sm:$0xf]  ;;  %v3829_v17 = vld [vmem:[%s3992_s10 + $0x10] sm:$0xff]  }
  0x20   : > { %3409 = vmatpush3.bf16.msra.mxu1 %v476_v20  ;;  %3404 = vmatprep.mubr.msk.bf16.mxu1 %vm3904_vm1, %v3903_v1  ;;  %v736_v56 = vshrl.u32 %v4067_v42, 16  ;;  %v3137_v8 = vcombine.low %v822_v4, %v4053_v38  ;;  %v3142_v10 = vcombine.low %v908_v6, %v909_v7  ;;  %v1129_v13 = vsel %vm404_vm0, %v3153_v9, 0  ;;  %v912_v19 = vld [vmem:[%s3992_s10 + $0x18] sm:$0xf]  ;;  %v913_v20 = vld [vmem:[%s3992_s10 + $0x1c] sm:$0x7] }
  0x21   : > { %v382_v28 = vsel %vm370_vm2, %v377_v24, %v381_v12  ;;  %3436 = vmatprep.subr.bf16.mxu1 %v3903_v1  ;;  %v731_v51 = vor.u32 %v730_v45, %v726_v44  ;;  %v740_v57 = vshll.u32 %v4081_v53, 16  ;;  %v744_v0 = vshrl.u32 %v4081_v53, 16  ;;  %v1108_v22 = vld [vmem:[%s3992_s10 + $0x8] sm:$0xe]  ;;  %v1006_v26 = vld [vmem:[%s3992_s10 + $0x1c] sm:$0xf] }
  0x22   : > { %3397 = vmatmul.mubr.msk.bf16.vlgmr.msra.gmra.mrb[0].mxu0 %vm394_vm3, %v382_v28  ;;  %v738_v60 = vor.u32 %v736_v56, %v734_v52  ;;  %v829_v12 = vrot.slane %v4067_v42, 1  ;;  %v1043_v16 = vsel %vm404_vm0, %v3148_v14, 0  ;;  %v831_v18 = vrot.slane %v4081_v53, 1  ;;  %v3165_v30 = vld [vmem:[%s4649_s3 + $0x28] sm:$0xf] }
  0x23   : > { %3423 = vmatpush3.bf16.msra.mxu0 %v557_v27  ;;  %3424 = vmatprep.mubr.msk.bf16.mxu0 %vm3904_vm1, %v3903_v1  ;;  %v735_v55 = vsel %vm370_vm2, %v731_v51, %v734_v52  ;;  %v742_v61 = vrot.slane %v740_v57, 1  ;;  %v3144_v23 = vcombine.low %v912_v19, %v913_v20  ;;  %v3154_v24 = vcombine.low %v1108_v22, %v909_v7  ;;  %v3158_v38 = vld [vmem:[%s4649_s3 + $0x24] sm:$0xf]  ;;  %v1194_v43 = vld [vmem:[%s4030_s27] sm:$0xf] }
  0x24   : > { %3450 = vmatprep.subr.bf16.mxu0 %v3903_v1  ;;  %v832_v21 = vsel %vm541_vm4, %v829_v12, %v831_v18  ;;  %v1014_v25 = vshll.u32 %v3142_v10, 16  ;;  %v1115_v28 = vrot.slane %v3829_v17, 1  ;;  %v1018_v32 = vshll.u32 %v3829_v17, 16  ;;  %v4183_v44 = vld [vmem:[%s4030_s27 + $0x4] sm:$0xf] }
  0x25   : > { %v743_v63 = vsel %vm370_vm2, %v738_v60, %v742_v61  ;;  %v746_v2 = vor.u32 %v744_v0, %v742_v61  ;;  %v1114_v27 = vrot.slane %v3154_v24, 1  ;;  %v1329_v37 = vsel %vm404_vm0, %v3165_v30, 0  ;;  %v1198_v57 = vld [vmem:[%s4030_s27 + $0x10] sm:$0xf] }
  0x26   : > { %v1016_v31 = vrot.slane %v1014_v25, 1  ;;  %v1227_v45 = vsel %vm404_vm0, %v3158_v38, 0  ;;  %v3159_v47 = vcombine.low %v1194_v43, %v4183_v44 }
  0x27   : > { %3405 = vmatmul.mubr.msk.bf16.gmra.mrb[4].mxu1 %vm394_vm3, %v393_v29  ;;  %v1012_v29 = vshrl.u32 %v3142_v10, 16 }
  0x28   : > { %3410 = vmatprep.mubr.msk.bf16.mxu1 %vm3904_vm1, %v3903_v1  ;;  %v1300_v51 = vshll.u32 %v3159_v47, 16  ;;  %v1298_v54 = vshrl.u32 %v3159_v47, 16 }
  0x29   : > { %v1017_v35 = vor.u32 %v1016_v31, %v1012_v29  ;;  %v1485_v29 = vld [vmem:[%s4030_s27 + $0x18] sm:$0x7]  ;;  %v1680_v31 = vld [vmem:[%s4030_s27 + $0x4] sm:$0xe] }
  0x2a   : > { %3425 = vmatmul.mubr.msk.bf16.vlgmr.msra.gmra.mrb[4].mxu0 %vm394_vm3, %v544_v33  ;;  %v3149_v33 = vcombine.low %v912_v19, %v1006_v26  ;;  %v3839_v26 = vld [vmem:[%s4030_s27 + $0xc] sm:$0xff]  }
  0x2b   : > { %3451 = vmatpush3.bf16.msra.mxu0 %v757_v34  ;;  %3428 = vmatprep.mubr.msk.bf16.mxu0 %vm3904_vm1, %v3903_v1  ;;  %v1116_v34 = vsel %vm541_vm4, %v1114_v27, %v1115_v28 }
  0x2c   : > { %3478 = vmatprep.subr.bf16.mxu0 %v3903_v1  ;;  %v1030_v53 = vshrl.u32 %v3149_v33, 16 }
  0x2f   : > { %3411 = vmatmul.mubr.msk.bf16.vlgmr.msra.gmra.mrb[8].mxu1 %vm394_vm3, %v3109_v11  ;;  %v828_v11 = vrot.slane %v3137_v8, 1 }
  0x30   : > { %3437 = vmatpush3.bf16.msra.mxu1 %v655_v39  ;;  %3414 = vmatprep.mubr.msk.bf16.mxu1 %vm3904_vm1, %v3903_v1  ;;  %v1117_v39 = vrot.slane %v3149_v33, 1 }
  0x31   : > { %3464 = vmatprep.subr.bf16.mxu1 %v3903_v1  ;;  %v830_v15 = vsel %vm541_vm4, %v828_v11, %v829_v12  ;;  %v1199_v12 = vld [vmem:[%s4030_s27 + $0x14] sm:$0x7] }
  0x32   : > { %3429 = vmatmul.mubr.msk.bf16.gmra.mrb[8].mxu0 %vm394_vm3, %v546_v40  ;;  %v1118_v46 = vsel %vm541_vm4, %v1115_v28, %v1117_v39  ;;  %v3161_v14 = vcombine.low %v1198_v57, %v1199_v12  ;;  %v1484_v28 = vld [vmem:[%s4030_s27 + $0x14] sm:$0xf] }
  0x33   : > { %3432 = vmatprep.mubr.msk.bf16.mxu0 %vm3904_vm1, %v3903_v1 }
  0x37   : > { %3415 = vmatmul.mubr.msk.bf16.gmra.mrb[12].mxu1 %vm394_vm3, %v3995_v3  ;;  %v627_v3 = vld [vmem:[%s3992_s10 + $0x18] sm:$0x7]  ;;  %s3106_s10 = sshll.u32 %s4669_s18, 3 }
  0x38   : > { %3418 = vmatprep.mubr.msk.bf16.mxu1 %vm3904_vm1, %v3903_v1  ;;  %v3127_v5 = vcombine.low %v626_v48, %v627_v3 }
  0x3a   : > { %3433 = vmatmul.mubr.msk.bf16.gmra.mrb[12].mxu0 %vm394_vm3, %v545_v36  ;;  %v1020_v36 = vrot.slane %v1018_v32, 1  ;;  %v3178_v32 = vcombine.low %v1484_v28, %v1485_v29 }
  0x3b   : > { %3452 = vmatprep.mubr.msk.bf16.mxu0 %vm3904_vm1, %v3903_v1 }
  0x3c   : > { %v1021_v40 = vsel %vm370_vm2, %v1017_v35, %v1020_v36 }
  0x3f   : > { %3419 = vmatmul.mubr.msk.bf16.gmra.mrb[16].mxu1 %vm394_vm3, %v3115_v50  ;;  %v4197_v50 = vld [vmem:[%s4030_s27 + $0x8] sm:$0xff]  }
  0x40   : > { %3438 = vmatprep.mubr.msk.bf16.mxu1 %vm3904_vm1, %v3903_v1  ;;  %v1304_v56 = vshll.u32 %v4197_v50, 16 }
  0x42   : > { %3453 = vmatmul.mubr.msk.bf16.vlgmr.msra.gmra.mrb[16].mxu0 %vm394_vm3, %v735_v55  ;;  %v1302_v55 = vrot.slane %v1300_v51, 1  ;;  %v1306_v61 = vrot.slane %v1304_v56, 1 }
  0x43   : > { %3479 = vmatpush3.bf16.msra.mxu0 %v941_v58  ;;  %3456 = vmatprep.mubr.msk.bf16.mxu0 %vm3904_vm1, %v3903_v1  ;;  %v1292_v58 = vld [vmem:[%s4030_s27 + $0x14] sm:$0xf] }
  0x44   : > { %3506 = vmatprep.subr.bf16.mxu0 %v3903_v1  ;;  %v1303_v60 = vor.u32 %v1302_v55, %v1298_v54 }
  0x46   : > { %v1307_v0 = vsel %vm370_vm2, %v1303_v60, %v1306_v61 }
  0x47   : > { %3439 = vmatmul.mubr.msk.bf16.vlgmr.msra.gmra.mrb[20].mxu1 %vm394_vm3, %v3125_v41  ;;  %v1022_v41 = vshrl.u32 %v3829_v17, 16 }
  0x48   : > { %3465 = vmatpush3.bf16.msra.mxu1 %v843_v62  ;;  %3442 = vmatprep.mubr.msk.bf16.mxu1 %vm3904_vm1, %v3903_v1  ;;  %v4209_v62 = vcombine.low %v1198_v57, %v1292_v58 }
  0x49   : > { %3492 = vmatprep.subr.bf16.mxu1 %v3903_v1  ;;  %v1024_v48 = vor.u32 %v1022_v41, %v1020_v36  ;;  %v1687_v36 = vrot.slane %v3839_v26, 1  ;;  %v3199_v41 = vld [vmem:[%s4649_s3 + $0x40] sm:$0xf] }
  0x4a   : > { %3457 = vmatmul.mubr.msk.bf16.gmra.mrb[20].mxu0 %vm394_vm3, %v743_v63  ;;  %v3175_v63 = vld [vmem:[%s4649_s3 + $0x30] sm:$0xf]  ;;  %v1312_v3 = vshll.u32 %v4209_v62, 16  ;;  %v1403_v27 = vrot.slane %v4209_v62, 1 }
  0x4b   : > { %3460 = vmatprep.mubr.msk.bf16.mxu0 %vm3904_vm1, %v3903_v1  ;;  %v1513_v4 = vsel %vm404_vm0, %v3175_v63, 0 }
  0x4c   : > { %v1314_v7 = vrot.slane %v1312_v3, 1  ;;  %v1770_v3 = vld [vmem:[%s4030_s27 + $0x18] sm:$0xf] }
  0x4f   : > { %3443 = vmatmul.mubr.msk.bf16.gmra.mrb[24].mxu1 %vm394_vm3, %v4067_v42  ;;  %v1026_v42 = vshll.u32 %v3149_v33, 16 }
  0x50   : > { %3446 = vmatprep.mubr.msk.bf16.mxu1 %vm3904_vm1, %v3903_v1 }
  0x51   : > { %v1028_v49 = vrot.slane %v1026_v42, 1 }
  0x52   : > { %3461 = vmatmul.mubr.msk.bf16.gmra.mrb[24].mxu0 %vm394_vm3, %v746_v2  ;;  %v1308_v2 = vshrl.u32 %v4197_v50, 16 }
  0x53   : > { %3480 = vmatprep.mubr.msk.bf16.mxu0 %vm3904_vm1, %v3903_v1  ;;  %v1029_v52 = vsel %vm370_vm2, %v1024_v48, %v1028_v49  ;;  %v1032_v59 = vor.u32 %v1030_v53, %v1028_v49  ;;  %v4304_v53 = vld [vmem:[%s4030_s27 + $0xc] sm:$0xf] }
  0x54   : > { %v1310_v6 = vor.u32 %v1308_v2, %v1306_v61 }
  0x56   : > { %v1315_v9 = vsel %vm370_vm2, %v1310_v6, %v1314_v7 }
  0x57   : > { %3447 = vmatmul.mubr.msk.bf16.gmra.mrb[28].mxu1 %vm394_vm3, %v3127_v5  ;;  %v3170_v5 = vld [vmem:[%s4649_s3 + $0x2c] sm:$0xf] }
  0x58   : > { %3466 = vmatprep.mubr.msk.bf16.mxu1 %vm3904_vm1, %v3903_v1  ;;  %v1415_v8 = vsel %vm404_vm0, %v3170_v5, 0 }
  0x5a   : > { %3481 = vmatmul.mubr.msk.bf16.vlgmr.msra.gmra.mrb[28].mxu0 %vm394_vm3, %v3142_v10  ;;  %v1316_v10 = vshrl.u32 %v4209_v62, 16 }
  0x5b   : > { %3507 = vmatpush3.bf16.msra.mxu0 %v1129_v13  ;;  %3484 = vmatprep.mubr.msk.bf16.mxu0 %vm3904_vm1, %v3903_v1  ;;  %v1394_v13 = vld [vmem:[%s4030_s27] sm:$0xe] }
  0x5c   : > { %3534 = vmatprep.subr.bf16.mxu0 %v3903_v1  ;;  %v1318_v11 = vor.u32 %v1316_v10, %v1314_v7 }
  0x5f   : > { %3467 = vmatmul.mubr.msk.bf16.vlgmr.msra.gmra.mrb[32].mxu1 %vm394_vm3, %v830_v15  ;;  %v1480_v15 = vld [vmem:[%s4030_s27 + $0x4] sm:$0xf] }
  0x60   : > { %3493 = vmatpush3.bf16.msra.mxu1 %v1043_v16  ;;  %3470 = vmatprep.mubr.msk.bf16.mxu1 %vm3904_vm1, %v3903_v1  ;;  %v1481_v16 = vld [vmem:[%s4030_s27 + $0x8] sm:$0xf] }
  0x61   : > { %3520 = vmatprep.subr.bf16.mxu1 %v3903_v1  ;;  %v3176_v19 = vcombine.low %v1480_v15, %v1481_v16  ;;  %v3188_v33 = vcombine.low %v1680_v31, %v1481_v16 }
  0x62   : > { %3485 = vmatmul.mubr.msk.bf16.gmra.mrb[32].mxu0 %vm394_vm3, %v3829_v17  ;;  %v3171_v17 = vcombine.low %v1394_v13, %v4183_v44 }
  0x63   : > { %3488 = vmatprep.mubr.msk.bf16.mxu0 %vm3904_vm1, %v3903_v1  ;;  %v1686_v35 = vrot.slane %v3188_v33, 1  ;;  %v1584_v38 = vshrl.u32 %v3176_v19, 16 }
  0x64   : > { %v1400_v20 = vrot.slane %v3171_v17, 1 }
  0x65   : > { %v1688_v43 = vsel %vm541_vm4, %v1686_v35, %v1687_v36  ;;  %v4389_v35 = vld [vmem:[%s4162_s7 + $0x8] sm:$0xff]  }
  0x67   : > { %3471 = vmatmul.mubr.msk.bf16.gmra.mrb[36].mxu1 %vm394_vm3, %v832_v21  ;;  %v1401_v21 = vrot.slane %v4197_v50, 1 }
  0x68   : > { %3474 = vmatprep.mubr.msk.bf16.mxu1 %vm3904_vm1, %v3903_v1 }
  0x69   : > { %v1402_v24 = vsel %vm541_vm4, %v1400_v20, %v1401_v21  ;;  %v1404_v30 = vsel %vm541_vm4, %v1401_v21, %v1403_v27  ;;  %v1771_v21 = vld [vmem:[%s4030_s27 + $0x1c] sm:$0x7] }
  0x6a   : > { %3489 = vmatmul.mubr.msk.bf16.gmra.mrb[36].mxu0 %vm394_vm3, %v3144_v23  ;;  %v3182_v23 = vld [vmem:[%s4649_s3 + $0x34] sm:$0xf] }
  0x6b   : > { %3508 = vmatprep.mubr.msk.bf16.mxu0 %vm3904_vm1, %v3903_v1  ;;  %v1615_v25 = vsel %vm404_vm0, %v3182_v23, 0  ;;  %v3195_v23 = vcombine.low %v1770_v3, %v1771_v21 }
  0x6f   : > { %3475 = vmatmul.mubr.msk.bf16.gmra.mrb[40].mxu1 %vm394_vm3, %v831_v18  ;;  %v3187_v18 = vld [vmem:[%s4649_s3 + $0x38] sm:$0xf] }
  0x70   : > { %3494 = vmatprep.mubr.msk.bf16.mxu1 %vm3904_vm1, %v3903_v1  ;;  %v1701_v22 = vsel %vm404_vm0, %v3187_v18, 0 }
  0x72   : > { %3509 = vmatmul.mubr.msk.bf16.vlgmr.msra.gmra.mrb[40].mxu0 %vm394_vm3, %v1116_v34  ;;  %v1586_v34 = vshll.u32 %v3176_v19, 16 }
  0x73   : > { %3535 = vmatpush3.bf16.msra.mxu0 %v1329_v37  ;;  %3512 = vmatprep.mubr.msk.bf16.mxu0 %vm3904_vm1, %v3903_v1  ;;  %v1578_v37 = vld [vmem:[%s4030_s27 + $0x18] sm:$0xf] }
  0x74   : > { %3562 = vmatprep.subr.bf16.mxu0 %v3903_v1  ;;  %v3183_v42 = vcombine.low %v1484_v28, %v1578_v37 }
  0x76   : > { %v1689_v48 = vrot.slane %v3183_v42, 1  ;;  %v1598_v51 = vshll.u32 %v3183_v42, 16  ;;  %v1602_v62 = vshrl.u32 %v3183_v42, 16 }
  0x77   : > { %3495 = vmatmul.mubr.msk.bf16.vlgmr.msra.gmra.mrb[44].mxu1 %vm394_vm3, %v1021_v40  ;;  %v1590_v40 = vshll.u32 %v3839_v26, 16 }
  0x78   : > { %3521 = vmatpush3.bf16.msra.mxu1 %v1227_v45  ;;  %3498 = vmatprep.mubr.msk.bf16.mxu1 %vm3904_vm1, %v3903_v1  ;;  %v1690_v55 = vsel %vm541_vm4, %v1687_v36, %v1689_v48  ;;  %v1600_v58 = vrot.slane %v1598_v51, 1 }
  0x79   : > { %3548 = vmatprep.subr.bf16.mxu1 %v3903_v1  ;;  %v1592_v45 = vrot.slane %v1590_v40, 1  ;;  %v2057_v40 = vld [vmem:[%s4162_s7 + $0x14] sm:$0x7] }
  0x7a   : > { %3513 = vmatmul.mubr.msk.bf16.gmra.mrb[44].mxu0 %vm394_vm3, %v1118_v46  ;;  %v1901_v46 = vsel %vm404_vm0, %v3199_v41, 0  ;;  %v1604_v5 = vor.u32 %v1602_v62, %v1600_v58 }
  0x7b   : > { %3516 = vmatprep.mubr.msk.bf16.mxu0 %vm3904_vm1, %v3903_v1 }
  0x7f   : > { %3499 = vmatmul.mubr.msk.bf16.gmra.mrb[48].mxu1 %vm394_vm3, %v1029_v52  ;;  %v1766_v52 = vld [vmem:[%s4030_s27 + $0x8] sm:$0xf] }
  0x80   : > { %3502 = vmatprep.mubr.msk.bf16.mxu1 %vm3904_vm1, %v3903_v1  ;;  %v3193_v56 = vcombine.low %v1766_v52, %v4304_v53 }
  0x82   : > { %3517 = vmatmul.mubr.msk.bf16.gmra.mrb[48].mxu0 %vm394_vm3, %v1117_v39  ;;  %v1588_v39 = vrot.slane %v1586_v34, 1  ;;  %v1872_v60 = vshll.u32 %v3193_v56, 16  ;;  %v1870_v63 = vshrl.u32 %v3193_v56, 16 }
  0x83   : > { %3536 = vmatprep.mubr.msk.bf16.mxu0 %vm3904_vm1, %v3903_v1 }
  0x84   : > { %v1589_v44 = vor.u32 %v1588_v39, %v1584_v38  ;;  %v2056_v39 = vld [vmem:[%s4162_s7 + $0x10] sm:$0xf] }
  0x86   : > { %v1593_v49 = vsel %vm370_vm2, %v1589_v44, %v1592_v45 }
  0x87   : > { %3503 = vmatmul.mubr.msk.bf16.gmra.mrb[52].mxu1 %vm394_vm3, %v1032_v59  ;;  %v4318_v59 = vld [vmem:[%s4030_s27 + $0x10] sm:$0xff]  }
  0x88   : > { %3522 = vmatprep.mubr.msk.bf16.mxu1 %vm3904_vm1, %v3903_v1  ;;  %v1876_v2 = vshll.u32 %v4318_v59, 16 }
  0x8a   : > { %3537 = vmatmul.mubr.msk.bf16.vlgmr.msra.gmra.mrb[52].mxu0 %vm394_vm3, %v1307_v0  ;;  %v1874_v0 = vrot.slane %v1872_v60, 1  ;;  %v1878_v7 = vrot.slane %v1876_v2, 1  ;;  %v2162_v60 = vshll.u32 %v4389_v35, 16 }
  0x8b   : > { %3563 = vmatpush3.bf16.msra.mxu0 %v1513_v4  ;;  %3540 = vmatprep.mubr.msk.bf16.mxu0 %vm3904_vm1, %v3903_v1  ;;  %v1864_v4 = vld [vmem:[%s4030_s27 + $0x1c] sm:$0xf] }
  0x8c   : > { %3590 = vmatprep.subr.bf16.mxu0 %v3903_v1  ;;  %v1875_v6 = vor.u32 %v1874_v0, %v1870_v63  ;;  %v3233_v63 = vld [vmem:[%s4649_s3 + $0x58] sm:$0xf] }
  0x8e   : > { %v1879_v10 = vsel %vm370_vm2, %v1875_v6, %v1878_v7 }
  0x8f   : > { %3523 = vmatmul.mubr.msk.bf16.vlgmr.msra.gmra.mrb[56].mxu1 %vm394_vm3, %v3159_v47  ;;  %v3192_v47 = vld [vmem:[%s4649_s3 + $0x3c] sm:$0xf] }
  0x90   : > { %3549 = vmatpush3.bf16.msra.mxu1 %v1415_v8  ;;  %3526 = vmatprep.mubr.msk.bf16.mxu1 %vm3904_vm1, %v3903_v1  ;;  %v1799_v54 = vsel %vm404_vm0, %v3192_v47, 0  ;;  %v4330_v8 = vcombine.low %v1770_v3, %v1864_v4  ;;  %v3212_v47 = vcombine.low %v2056_v39, %v2057_v40 }
  0x91   : > { %3576 = vmatprep.subr.bf16.mxu1 %v3903_v1 }
  0x92   : > { %3541 = vmatmul.mubr.msk.bf16.gmra.mrb[56].mxu0 %vm394_vm3, %v1315_v9  ;;  %v3209_v9 = vld [vmem:[%s4649_s3 + $0x48] sm:$0xf]  ;;  %v1884_v12 = vshll.u32 %v4330_v8, 16  ;;  %v1975_v36 = vrot.slane %v4330_v8, 1 }
  0x93   : > { %3544 = vmatprep.mubr.msk.bf16.mxu0 %vm3904_vm1, %v3903_v1  ;;  %v2085_v13 = vsel %vm404_vm0, %v3209_v9, 0 }
  0x94   : > { %v1886_v16 = vrot.slane %v1884_v12, 1 }
  0x97   : > { %3527 = vmatmul.mubr.msk.bf16.gmra.mrb[60].mxu1 %vm394_vm3, %v4197_v50  ;;  %v1594_v50 = vshrl.u32 %v3839_v26, 16 }
  0x98   : > { %3530 = vmatprep.mubr.msk.bf16.mxu1 %vm3904_vm1, %v3903_v1 }
  0x99   : > { %v1596_v57 = vor.u32 %v1594_v50, %v1592_v45 }
  0x9a   : > { %3545 = vmatmul.mubr.msk.bf16.gmra.mrb[60].mxu0 %vm394_vm3, %v1318_v11  ;;  %v1880_v11 = vshrl.u32 %v4318_v59, 16 }
  0x9b   : > { %3564 = vmatprep.mubr.msk.bf16.mxu0 %vm3904_vm1, %v3903_v1  ;;  %v1601_v61 = vsel %vm370_vm2, %v1596_v57, %v1600_v58  ;;  %v2150_v57 = vld [vmem:[%s4162_s7 + $0x14] sm:$0xf] }
  0x9c   : > { %v1882_v15 = vor.u32 %v1880_v11, %v1878_v7  ;;  %v4424_v2 = vcombine.low %v2056_v39, %v2150_v57  ;;  %v2164_v7 = vrot.slane %v2162_v60, 1 }
  0x9e   : > { %v1887_v18 = vsel %vm370_vm2, %v1882_v15, %v1886_v16 }
  0x9f   : > { %3531 = vmatmul.mubr.msk.bf16.gmra.mrb[64].mxu1 %vm394_vm3, %v3161_v14  ;;  %v3204_v14 = vld [vmem:[%s4649_s3 + $0x44] sm:$0xf] }
  0xa0   : > { %3550 = vmatprep.mubr.msk.bf16.mxu1 %vm3904_vm1, %v3903_v1  ;;  %v1987_v17 = vsel %vm404_vm0, %v3204_v14, 0  ;;  %v2166_v14 = vshrl.u32 %v4389_v35, 16 }
  0xa2   : > { %3565 = vmatmul.mubr.msk.bf16.vlgmr.msra.gmra.mrb[64].mxu0 %vm394_vm3, %v3176_v19  ;;  %v1888_v19 = vshrl.u32 %v4330_v8, 16  ;;  %v2473_v8 = vsel %vm404_vm0, %v3233_v63, 0 }
  0xa3   : > { %3591 = vmatpush3.bf16.msra.mxu0 %v1701_v22  ;;  %3568 = vmatprep.mubr.msk.bf16.mxu0 %vm3904_vm1, %v3903_v1  ;;  %v1966_v22 = vld [vmem:[%s4030_s27 + $0x8] sm:$0xe] }
  0xa4   : > { %3618 = vmatprep.subr.bf16.mxu0 %v3903_v1  ;;  %v1890_v20 = vor.u32 %v1888_v19, %v1886_v16  ;;  %v4443_v19 = vld [vmem:[%s4162_s7 + $0x8] sm:$0xf] }
  0xa7   : > { %3551 = vmatmul.mubr.msk.bf16.vlgmr.msra.gmra.mrb[68].mxu1 %vm394_vm3, %v1402_v24  ;;  %v2052_v24 = vld [vmem:[%s4162_s7] sm:$0xf] }
  0xa8   : > { %3577 = vmatpush3.bf16.msra.mxu1 %v1615_v25  ;;  %3554 = vmatprep.mubr.msk.bf16.mxu1 %vm3904_vm1, %v3903_v1  ;;  %v2053_v25 = vld [vmem:[%s4162_s7 + $0x4] sm:$0xf] }
  0xa9   : > { %3604 = vmatprep.subr.bf16.mxu1 %v3903_v1  ;;  %v3210_v28 = vcombine.low %v2052_v24, %v2053_v25 }
  0xaa   : > { %3569 = vmatmul.mubr.msk.bf16.gmra.mrb[68].mxu0 %vm394_vm3, %v3839_v26  ;;  %v3205_v26 = vcombine.low %v1966_v22, %v4304_v53 }
  0xab   : > { %3572 = vmatprep.mubr.msk.bf16.mxu0 %vm3904_vm1, %v3903_v1  ;;  %v2158_v51 = vshll.u32 %v3210_v28, 16  ;;  %v2156_v58 = vshrl.u32 %v3210_v28, 16 }
  0xac   : > { %v1972_v29 = vrot.slane %v3205_v26, 1 }
  0xaf   : > { %3555 = vmatmul.mubr.msk.bf16.gmra.mrb[72].mxu1 %vm394_vm3, %v1404_v30  ;;  %v1973_v30 = vrot.slane %v4318_v59, 1 }
  0xb0   : > { %3558 = vmatprep.mubr.msk.bf16.mxu1 %vm3904_vm1, %v3903_v1 }
  0xb1   : > { %v1974_v33 = vsel %vm541_vm4, %v1972_v29, %v1973_v30  ;;  %v1976_v42 = vsel %vm541_vm4, %v1973_v30, %v1975_v36 }
  0xb2   : > { %3573 = vmatmul.mubr.msk.bf16.gmra.mrb[72].mxu0 %vm394_vm3, %v3178_v32  ;;  %v3216_v32 = vld [vmem:[%s4649_s3 + $0x4c] sm:$0xf] }
  0xb3   : > { %3592 = vmatprep.mubr.msk.bf16.mxu0 %vm3904_vm1, %v3903_v1  ;;  %v2187_v34 = vsel %vm404_vm0, %v3216_v32, 0 }
  0xb7   : > { %3559 = vmatmul.mubr.msk.bf16.gmra.mrb[76].mxu1 %vm394_vm3, %v1403_v27  ;;  %v3221_v27 = vld [vmem:[%s4649_s3 + $0x50] sm:$0xf] }
  0xb8   : > { %3578 = vmatprep.mubr.msk.bf16.mxu1 %vm3904_vm1, %v3903_v1  ;;  %v2273_v31 = vsel %vm404_vm0, %v3221_v27, 0 }
  0xba   : > { %3593 = vmatmul.mubr.msk.bf16.vlgmr.msra.gmra.mrb[76].mxu0 %vm394_vm3, %v1688_v43  ;;  %v2252_v43 = vld [vmem:[%s4162_s7] sm:$0xe] }
  0xbb   : > { %3619 = vmatpush3.bf16.msra.mxu0 %v1901_v46  ;;  %3596 = vmatprep.mubr.msk.bf16.mxu0 %vm3904_vm1, %v3903_v1 }
  0xbc   : > { %3646 = vmatprep.subr.bf16.mxu0 %v3903_v1 }
  0xbf   : > { %3579 = vmatmul.mubr.msk.bf16.vlgmr.msra.gmra.mrb[80].mxu1 %vm394_vm3, %v1593_v49  ;;  %v3222_v49 = vcombine.low %v2252_v43, %v2053_v25 }
  0xc0   : > { %3605 = vmatpush3.bf16.msra.mxu1 %v1799_v54  ;;  %3582 = vmatprep.mubr.msk.bf16.mxu1 %vm3904_vm1, %v3903_v1 }
  0xc1   : > { %3632 = vmatprep.subr.bf16.mxu1 %v3903_v1  ;;  %v2258_v54 = vrot.slane %v3222_v49, 1 }
  0xc2   : > { %3597 = vmatmul.mubr.msk.bf16.gmra.mrb[80].mxu0 %vm394_vm3, %v1690_v55  ;;  %v2259_v55 = vrot.slane %v4389_v35, 1 }
  0xc3   : > { %3600 = vmatprep.mubr.msk.bf16.mxu0 %vm3904_vm1, %v3903_v1 }
  0xc4   : > { %v2260_v4 = vsel %vm541_vm4, %v2258_v54, %v2259_v55  ;;  %v2436_v54 = vld [vmem:[%s4162_s7 + $0x18] sm:$0xf] }
  0xc7   : > { %3583 = vmatmul.mubr.msk.bf16.gmra.mrb[84].mxu1 %vm394_vm3, %v1601_v61 }
  0xc8   : > { %3586 = vmatprep.mubr.msk.bf16.mxu1 %vm3904_vm1, %v3903_v1 }
  0xca   : > { %3601 = vmatmul.mubr.msk.bf16.gmra.mrb[84].mxu0 %vm394_vm3, %v1689_v48 }
  0xcb   : > { %3620 = vmatprep.mubr.msk.bf16.mxu0 %vm3904_vm1, %v3903_v1 }
  0xcf   : > { %3587 = vmatmul.mubr.msk.bf16.gmra.mrb[88].mxu1 %vm394_vm3, %v1604_v5 }
  0xd0   : > { %3606 = vmatprep.mubr.msk.bf16.mxu1 %vm3904_vm1, %v3903_v1 }
  0xd2   : > { %3621 = vmatmul.mubr.msk.bf16.vlgmr.msra.gmra.mrb[88].mxu0 %vm394_vm3, %v1879_v10  ;;  %v3226_v10 = vld [vmem:[%s4649_s3 + $0x54] sm:$0xf] }
  0xd3   : > { %3647 = vmatpush3.bf16.msra.mxu0 %v2085_v13  ;;  %3624 = vmatprep.mubr.msk.bf16.mxu0 %vm3904_vm1, %v3903_v1  ;;  %v2261_v13 = vrot.slane %v4424_v2, 1  ;;  %v2371_v22 = vsel %vm404_vm0, %v3226_v10, 0 }
  0xd4   : > { %3674 = vmatprep.subr.bf16.mxu0 %v3903_v1 }
  0xd5   : > { %v2262_v27 = vsel %vm541_vm4, %v2259_v55, %v2261_v13 }
  0xd7   : > { %3607 = vmatmul.mubr.msk.bf16.vlgmr.msra.gmra.mrb[92].mxu1 %vm394_vm3, %v3193_v56 }
  0xd8   : > { %3633 = vmatpush3.bf16.msra.mxu1 %v1987_v17  ;;  %3610 = vmatprep.mubr.msk.bf16.mxu1 %vm3904_vm1, %v3903_v1  ;;  %v2170_v17 = vshll.u32 %v4424_v2, 16 }
  0xd9   : > { %3660 = vmatprep.subr.bf16.mxu1 %v3903_v1 }
  0xda   : > { %3625 = vmatmul.mubr.msk.bf16.gmra.mrb[92].mxu0 %vm394_vm3, %v1887_v18  ;;  %v2338_v18 = vld [vmem:[%s4162_s7 + $0x4] sm:$0xf]  ;;  %v2172_v32 = vrot.slane %v2170_v17, 1 }
  0xdb   : > { %3628 = vmatprep.mubr.msk.bf16.mxu0 %vm3904_vm1, %v3903_v1  ;;  %v4454_v29 = vcombine.low %v2338_v18, %v4443_v19 }
  0xdf   : > { %3611 = vmatmul.mubr.msk.bf16.gmra.mrb[96].mxu1 %vm394_vm3, %v4318_v59  ;;  %v2160_v59 = vrot.slane %v2158_v51, 1 }
  0xe0   : > { %3614 = vmatprep.mubr.msk.bf16.mxu1 %vm3904_vm1, %v3903_v1 }
  0xe1   : > { %v2161_v6 = vor.u32 %v2160_v59, %v2156_v58 }
  0xe2   : > { %3629 = vmatmul.mubr.msk.bf16.gmra.mrb[96].mxu0 %vm394_vm3, %v1890_v20 }
  0xe3   : > { %3648 = vmatprep.mubr.msk.bf16.mxu0 %vm3904_vm1, %v3903_v1  ;;  %v2165_v16 = vsel %vm370_vm2, %v2161_v6, %v2164_v7 }
  0xe7   : > { %3615 = vmatmul.mubr.msk.bf16.gmra.mrb[100].mxu1 %vm394_vm3, %v3195_v23 }
  0xe8   : > { %3634 = vmatprep.mubr.msk.bf16.mxu1 %vm3904_vm1, %v3903_v1 }
  0xea   : > { %3649 = vmatmul.mubr.msk.bf16.vlgmr.msra.gmra.mrb[100].mxu0 %vm394_vm3, %v3210_v28 }
  0xeb   : > { %3675 = vmatpush3.bf16.msra.mxu0 %v2273_v31  ;;  %3652 = vmatprep.mubr.msk.bf16.mxu0 %vm3904_vm1, %v3903_v1  ;;  %v2168_v31 = vor.u32 %v2166_v14, %v2164_v7 }
  0xec   : > { %3702 = vmatprep.subr.bf16.mxu0 %v3903_v1 }
  0xed   : > { %v2173_v40 = vsel %vm370_vm2, %v2168_v31, %v2172_v32 }
  0xef   : > { %3635 = vmatmul.mubr.msk.bf16.vlgmr.msra.gmra.mrb[104].mxu1 %vm394_vm3, %v1974_v33 }
  0xf0   : > { %3661 = vmatpush3.bf16.msra.mxu1 %v2187_v34  ;;  %3638 = vmatprep.mubr.msk.bf16.mxu1 %vm3904_vm1, %v3903_v1 }
  0xf1   : > { %3688 = vmatprep.subr.bf16.mxu1 %v3903_v1 }
  0xf2   : > { %v4396_v37 = vpop.f32.mrb[0].mxu1  ;;  %3653 = vmatmul.mubr.msk.bf16.gmra.mrb[104].mxu0 %vm394_vm3, %v4389_v35 }
  0xf3   : > { %v3402_v38 = vpop.f32.mrb[1].mxu1  ;;  %3656 = vmatprep.mubr.msk.bf16.mxu0 %vm3904_vm1, %v3903_v1 }
  0xf4   : > { %v4404_v41 = vpop.f32.mrb[2].mxu1  ;;  %v2444_v38 = vshll.u32 %v4454_v29, 16 }
  0xf5   : > { %v3403_v44 = vpop.f32.mrb[3].mxu1  ;;  %v442_v45 = vpop.f32.mrb[0].mxu0 }
  0xf6   : > { %v3398_v46 = vpop.f32.mrb[1].mxu0  ;;  %v2446_v49 = vrot.slane %v2444_v38, 1 }
  0xf7   : > { %3639 = vmatmul.mubr.msk.bf16.gmra.mrb[108].mxu1 %vm394_vm3, %v1976_v42  ;;  %v445_v48 = vpop.f32.mrb[2].mxu0  ;;  %v2174_v46 = vshrl.u32 %v4424_v2, 16 }
  0xf8   : > { %v3399_v50 = vpop.f32.mrb[3].mxu0  ;;  %3642 = vmatprep.mubr.msk.bf16.mxu1 %vm3904_vm1, %v3903_v1 }
  0xf9   : > { %v2176_v57 = vor.u32 %v2174_v46, %v2172_v32  ;;  %v2343_v46 = vld [vmem:[%s4162_s7 + $0x18] sm:$0x7] }
  0xfa   : > { %v4411_v52 = vpop.f32.mrb[4].mxu1  ;;  %3657 = vmatmul.mubr.msk.bf16.gmra.mrb[108].mxu0 %vm394_vm3, %v3212_v47 }
  0xfb   : > { %v3406_v53 = vpop.f32.mrb[5].mxu1  ;;  %3676 = vmatprep.mubr.msk.bf16.mxu0 %vm3904_vm1, %v3903_v1 }
  0xfc   : > { %v4417_v56 = vpop.f32.mrb[6].mxu1 }
  0xfd   : > { %v3407_v61 = vpop.f32.mrb[7].mxu1  ;;  %v593_v62 = vpop.f32.mrb[4].mxu0 }
  0xfe   : > { %v3426_v0 = vpop.f32.mrb[5].mxu0 }
  0xff   : > { %3643 = vmatmul.mubr.msk.bf16.gmra.mrb[112].mxu1 %vm394_vm3, %v1975_v36  ;;  %v596_v3 = vpop.f32.mrb[6].mxu0  ;;  %v4464_v36 = vld [vmem:[%s4162_s7 + $0xc] sm:$0xff]  }
 0x100   : > { %v3427_v5 = vpop.f32.mrb[7].mxu0  ;;  %3662 = vmatprep.mubr.msk.bf16.mxu1 %vm3904_vm1, %v3903_v1  ;;  %v2448_v50 = vshll.u32 %v4464_v36, 16 }
 0x102   : > { %v512_v9 = vpop.f32.mrb[8].mxu1  ;;  %3677 = vmatmul.mubr.msk.bf16.vlgmr.msra.gmra.mrb[112].mxu0 %vm394_vm3, %v2260_v4  ;;  %v2450_v61 = vrot.slane %v2448_v50, 1  ;;  %v3243_v4 = vld [vmem:[%s4649_s3 + $0x60] sm:$0xf] }
 0x103   : > { %v513_v11 = vadd.f32 %v512_v9, %v442_v45  ;;  %v3412_v12 = vpop.f32.mrb[9].mxu1  ;;  %3703 = vmatpush3.bf16.msra.mxu0 %v2473_v8  ;;  %3680 = vmatprep.mubr.msk.bf16.mxu0 %vm3904_vm1, %v3903_v1  ;;  %v2452_v8 = vshrl.u32 %v4464_v36, 16 }
 0x104   : > { %v515_v15 = vpop.f32.mrb[10].mxu1  ;;  %3730 = vmatprep.subr.bf16.mxu0 %v3903_v1 }
 0x105   : > { %v516_v20 = vadd.f32 %v515_v15, %v445_v48  ;;  %v3413_v21 = vpop.f32.mrb[11].mxu1  ;;  %v601_v23 = vpop.f32.mrb[8].mxu0  ;;  %v4447_v24 = vadd.f32 %v593_v62, %v513_v11  ;;  %v2442_v48 = vshrl.u32 %v4454_v29, 16 }
 0x106   : > { %v3430_v25 = vpop.f32.mrb[9].mxu0 }
 0x107   : > { %3663 = vmatmul.mubr.msk.bf16.vlgmr.msra.gmra.mrb[116].mxu1 %vm394_vm3, %v2165_v16  ;;  %v604_v26 = vpop.f32.mrb[10].mxu0  ;;  %v4451_v28 = vadd.f32 %v596_v3, %v516_v20  ;;  %v2447_v60 = vor.u32 %v2446_v49, %v2442_v48  ;;  %v2454_v16 = vor.u32 %v2452_v8, %v2450_v61 }
 0x108   : > { %3689 = vmatpush3.bf16.msra.mxu1 %v2371_v22  ;;  %v3431_v30 = vpop.f32.mrb[11].mxu0  ;;  %3666 = vmatprep.mubr.msk.bf16.mxu1 %vm3904_vm1, %v3903_v1 }
 0x109   : > { %3716 = vmatprep.subr.bf16.mxu1 %v3903_v1  ;;  %v2451_v7 = vsel %vm370_vm2, %v2447_v60, %v2450_v61  ;;  %v3255_v61 = vld [vmem:[%s4649_s3 + $0x68] sm:$0xf] }
 0x10a   : > { %v520_v33 = vpop.f32.mrb[12].mxu1  ;;  %3681 = vmatmul.mubr.msk.bf16.gmra.mrb[116].mxu0 %vm394_vm3, %v2262_v27 }
 0x10b   : > { %v521_v34 = vadd.f32 %v520_v33, %v4396_v37  ;;  %v3416_v35 = vpop.f32.mrb[13].mxu1  ;;  %3684 = vmatprep.mubr.msk.bf16.mxu0 %vm3904_vm1, %v3903_v1 }
 0x10c   : > { %v523_v39 = vpop.f32.mrb[14].mxu1 }
 0x10d   : > { %v524_v42 = vadd.f32 %v523_v39, %v4404_v41  ;;  %v3417_v43 = vpop.f32.mrb[15].mxu1  ;;  %v609_v44 = vpop.f32.mrb[12].mxu0  ;;  %v4469_v45 = vadd.f32 %v601_v23, %v521_v34  ;;  %v4478_v41 = vld [vmem:[%s4162_s7 + $0x14] sm:$0xf] }
 0x10e   : > { %v3434_v37 = vpop.f32.mrb[13].mxu0  ;;  %v4486_v62 = vcombine.low %v4478_v41, %v2436_v54  ;;  %v4534_v54 = vld [vmem:[%s4162_s7 + $0xc] sm:$0xf] }
 0x10f   : > { %3667 = vmatmul.mubr.msk.bf16.gmra.mrb[120].mxu1 %vm394_vm3, %v2173_v40  ;;  %v612_v47 = vpop.f32.mrb[14].mxu0  ;;  %v619_v51 = vadd.f32 %v604_v26, %v524_v42 }
 0x110   : > { %v3435_v53 = vpop.f32.mrb[15].mxu0  ;;  %3670 = vmatprep.mubr.msk.bf16.mxu1 %vm3904_vm1, %v3903_v1  ;;  %v2456_v9 = vshll.u32 %v4486_v62, 16  ;;  %v2460_v32 = vshrl.u32 %v4486_v62, 16 }
 0x111   : > { %v2624_v53 = vld [vmem:[%s4162_s7 + $0x8] sm:$0xf] }
 0x112   : > { %v528_v55 = vpop.f32.mrb[16].mxu1  ;;  %3685 = vmatmul.mubr.msk.bf16.gmra.mrb[120].mxu0 %vm394_vm3, %v2261_v13  ;;  %v3238_v13 = vld [vmem:[%s4649_s3 + $0x5c] sm:$0xf]  ;;  %v2458_v17 = vrot.slane %v2456_v9, 1 }
 0x113   : > { %v529_v58 = vadd.f32 %v528_v55, %v4411_v52  ;;  %v3420_v59 = vpop.f32.mrb[17].mxu1  ;;  %3704 = vmatprep.mubr.msk.bf16.mxu0 %vm3904_vm1, %v3903_v1  ;;  %v2559_v22 = vsel %vm404_vm0, %v3238_v13, 0 }
 0x114   : > { %v531_v63 = vpop.f32.mrb[18].mxu1  ;;  %v2459_v27 = vsel %vm370_vm2, %v2454_v16, %v2458_v17  ;;  %v2462_v43 = vor.u32 %v2460_v32, %v2458_v17  ;;  %v4560_v16 = vld [vmem:[%s4162_s7 + $0x10] sm:$0xff]  }
 0x115   : > { %v532_v0 = vadd.f32 %v531_v63, %v4417_v56  ;;  %v3421_v2 = vpop.f32.mrb[19].mxu1  ;;  %v793_v3 = vpop.f32.mrb[16].mxu0  ;;  %v620_v5 = vadd.f32 %v609_v44, %v529_v58  ;;  %v2657_v56 = vsel %vm404_vm0, %v3243_v4, 0 }
 0x116   : > { %v3454_v52 = vpop.f32.mrb[17].mxu0 }
 0x117   : > { %3671 = vmatmul.mubr.msk.bf16.gmra.mrb[124].mxu1 %vm394_vm3, %v2176_v57  ;;  %v796_v6 = vpop.f32.mrb[18].mxu0  ;;  %v621_v10 = vadd.f32 %v612_v47, %v532_v0  ;;  %v2538_v47 = vld [vmem:[%s4162_s7 + $0x4] sm:$0xe]  ;;  %v2845_v52 = vsel %vm404_vm0, %v3255_v61, 0 }
 0x118   : > { %v3455_v11 = vpop.f32.mrb[19].mxu0  ;;  %3690 = vmatprep.mubr.msk.bf16.mxu1 %vm3904_vm1, %v3903_v1  ;;  %v3239_v57 = vcombine.low %v2538_v47, %v4443_v19 }
 0x11a   : > { %v691_v12 = vpop.f32.mrb[20].mxu1  ;;  %3705 = vmatmul.mubr.msk.bf16.vlgmr.msra.gmra.mrb[124].mxu0 %vm394_vm3, %v2451_v7  ;;  %v2544_v19 = vrot.slane %v3239_v57, 1  ;;  %v3250_v7 = vld [vmem:[%s4649_s3 + $0x64] sm:$0xf] }
 0x11b   : > { %v714_v14 = vadd.f32 %v691_v12, %v4447_v24  ;;  %v3440_v15 = vpop.f32.mrb[21].mxu1  ;;  %3731 = vmatpush3.bf16.msra.mxu0 %v2657_v56  ;;  %3708 = vmatprep.mubr.msk.bf16.mxu0 %vm3904_vm1, %v3903_v1  ;;  %v2759_v12 = vsel %vm404_vm0, %v3250_v7, 0  ;;  %v2738_v7 = vshrl.u32 %v4560_v16, 16 }
 0x11c   : > { %v694_v18 = vpop.f32.mrb[22].mxu1  ;;  %3758 = vmatprep.subr.bf16.mxu0 %v3903_v1 }
 0x11d   : > { %v715_v20 = vadd.f32 %v694_v18, %v4451_v28  ;;  %v3441_v21 = vpop.f32.mrb[23].mxu1  ;;  %v801_v23 = vpop.f32.mrb[20].mxu0  ;;  %v816_v25 = vadd.f32 %v793_v3, %v714_v14 }
 0x11e   : > { %v3458_v26 = vpop.f32.mrb[21].mxu0  ;;  %v2547_v21 = vrot.slane %v4486_v62, 1 }
 0x11f   : > { %3691 = vmatmul.mubr.msk.bf16.vlgmr.msra.gmra.mrb[128].mxu1 %vm394_vm3, %v4454_v29  ;;  %v804_v24 = vpop.f32.mrb[22].mxu0  ;;  %v817_v30 = vadd.f32 %v796_v6, %v715_v20  ;;  %v2628_v26 = vld [vmem:[%s4162_s7 + $0x18] sm:$0xf] }
 0x120   : > { %3717 = vmatpush3.bf16.msra.mxu1 %v2559_v22  ;;  %v3459_v31 = vpop.f32.mrb[23].mxu0  ;;  %3694 = vmatprep.mubr.msk.bf16.mxu1 %vm3904_vm1, %v3903_v1 }
 0x121   : > { %3744 = vmatprep.subr.bf16.mxu1 %v3903_v1  ;;  %v2824_v31 = vld [vmem:[%s4162_s7 + $0x8] sm:$0xe] }
 0x122   : > { %v699_v28 = vpop.f32.mrb[24].mxu1  ;;  %3709 = vmatmul.mubr.msk.bf16.gmra.mrb[128].mxu0 %vm394_vm3, %v2459_v27 }
 0x123   : > { %v716_v33 = vadd.f32 %v699_v28, %v4469_v45  ;;  %v3444_v29 = vpop.f32.mrb[25].mxu1  ;;  %3712 = vmatprep.mubr.msk.bf16.mxu0 %vm3904_vm1, %v3903_v1 }
 0x124   : > { %v702_v34 = vpop.f32.mrb[26].mxu1 }
 0x125   : > { %v717_v35 = vadd.f32 %v702_v34, %v619_v51  ;;  %v3445_v38 = vpop.f32.mrb[27].mxu1  ;;  %v809_v39 = vpop.f32.mrb[24].mxu0  ;;  %v818_v40 = vadd.f32 %v801_v23, %v716_v33  ;;  %v3229_v51 = vcombine.low %v4478_v41, %v2343_v46  ;;  %v4541_v41 = vcombine.low %v2624_v53, %v4534_v54 }
 0x126   : > { %v3462_v42 = vpop.f32.mrb[25].mxu0  ;;  %v3256_v38 = vcombine.low %v2824_v31, %v4534_v54  ;;  %v2831_v46 = vrot.slane %v4560_v16, 1 }
 0x127   : > { %3695 = vmatmul.mubr.msk.bf16.gmra.mrb[132].mxu1 %vm394_vm3, %v4464_v36  ;;  %v812_v44 = vpop.f32.mrb[26].mxu0  ;;  %v4522_v37 = vadd.f32 %v804_v24, %v717_v35  ;;  %v2629_v24 = vld [vmem:[%s4162_s7 + $0x1c] sm:$0x7]  ;;  %v2730_v42 = vshll.u32 %v4541_v41, 16 }
 0x128   : > { %v3463_v45 = vpop.f32.mrb[27].mxu0  ;;  %3698 = vmatprep.mubr.msk.bf16.mxu1 %vm3904_vm1, %v3903_v1  ;;  %v3246_v34 = vcombine.low %v2628_v26, %v2629_v24 }
 0x129   : > { %v2830_v45 = vrot.slane %v3256_v38, 1 }
 0x12a   : > { %v707_v48 = vpop.f32.mrb[28].mxu1  ;;  %3713 = vmatmul.mubr.msk.bf16.gmra.mrb[132].mxu0 %vm394_vm3, %v2462_v43 }
 0x12b   : > { %v718_v49 = vadd.f32 %v707_v48, %v620_v5  ;;  %v3448_v50 = vpop.f32.mrb[29].mxu1  ;;  %3732 = vmatprep.mubr.msk.bf16.mxu0 %vm3904_vm1, %v3903_v1  ;;  %v2545_v5 = vrot.slane %v4464_v36, 1  ;;  %v2722_v48 = vld [vmem:[%s4162_s7 + $0x1c] sm:$0xf]  ;;  %v2832_v61 = vsel %vm541_vm4, %v2830_v45, %v2831_v46  ;;  %s3774_s7 = smul.u32 48, %s4663_s19 }
 0x12c   : > { %v710_v55 = vpop.f32.mrb[30].mxu1  ;;  %v2732_v50 = vrot.slane %v2730_v42, 1 }
 0x12d   : > { %v719_v58 = vadd.f32 %v710_v55, %v621_v10  ;;  %v3449_v59 = vpop.f32.mrb[31].mxu1  ;;  %v977_v60 = vpop.f32.mrb[28].mxu0  ;;  %v820_v63 = vadd.f32 %v809_v39, %v718_v49  ;;  %v2546_v36 = vsel %vm541_vm4, %v2544_v19, %v2545_v5  ;;  %v2728_v49 = vshrl.u32 %v4541_v41, 16  ;;  %s340_s11 = sadd.s32 %s3774_s7, %s3106_s10 }
 0x12e   : > { %v3482_v0 = vpop.f32.mrb[29].mxu0  ;;  %v3251_v59 = vcombine.low %v2628_v26, %v2722_v48  ;;  %s3107_s12 = sshll.u32 %s340_s11, 2 }
 0x12f   : > { %3699 = vmatmul.mubr.msk.bf16.gmra.mrb[136].mxu1 %vm394_vm3, %v3229_v51  ;;  %v980_v2 = vpop.f32.mrb[30].mxu0  ;;  %v4544_v3 = vadd.f32 %v812_v44, %v719_v58  ;;  %v2734_v51 = vshll.u32 %v4560_v16, 16  ;;  %s4619_s14 = scalar_lea.vmem %s4651_s5, %s3107_s12 }
 0x130   : > { %v3483_v4 = vpop.f32.mrb[31].mxu0  ;;  %3718 = vmatprep.mubr.msk.bf16.mxu1 %vm3904_vm1, %v3903_v1 }
 0x132   : > { %v879_v6 = vpop.f32.mrb[32].mxu1  ;;  %3733 = vmatmul.mubr.msk.bf16.vlgmr.msra.gmra.mrb[136].mxu0 %vm394_vm3, %v4541_v41  ;;  %v2733_v41 = vor.u32 %v2732_v50, %v2728_v49 }
 0x133   : > { %v902_v8 = vadd.f32 %v879_v6, %v816_v25  ;;  %v3468_v9 = vpop.f32.mrb[33].mxu1  ;;  %3759 = vmatpush3.bf16.msra.mxu0 %v2845_v52  ;;  %3736 = vmatprep.mubr.msk.bf16.mxu0 %vm3904_vm1, %v3903_v1 }
 0x134   : > { %v882_v10 = vpop.f32.mrb[34].mxu1 }
 0x135   : > { %v903_v11 = vadd.f32 %v882_v10, %v817_v30  ;;  %v3469_v56 = vpop.f32.mrb[35].mxu1  ;;  %v985_v13 = vpop.f32.mrb[32].mxu0  ;;  %v1000_v14 = vadd.f32 %v977_v60, %v902_v8  ;;  %v2548_v30 = vsel %vm541_vm4, %v2545_v5, %v2547_v21  ;;  %v2833_v5 = vrot.slane %v3251_v59, 1 }
 0x136   : > { %v3486_v15 = vpop.f32.mrb[33].mxu0  ;;  %v2742_v8 = vshll.u32 %v3251_v59, 16 }
 0x137   : > { %3719 = vmatmul.mubr.msk.bf16.vlgmr.msra.gmra.mrb[140].mxu1 %vm394_vm3, %v2546_v36  ;;  %v988_v17 = vpop.f32.mrb[34].mxu0  ;;  %v4563_v18 = vadd.f32 %v980_v2, %v903_v11  ;;  %v2736_v2 = vrot.slane %v2734_v51, 1 }
 0x138   : > { %3745 = vmatpush3.bf16.msra.mxu1 %v2759_v12  ;;  %v3487_v20 = vpop.f32.mrb[35].mxu0  ;;  %3722 = vmatprep.mubr.msk.bf16.mxu1 %vm3904_vm1, %v3903_v1 }
 0x139   : > { %v2737_v6 = vsel %vm370_vm2, %v2733_v41, %v2736_v2  ;;  %v2744_v20 = vrot.slane %v2742_v8, 1 }
 0x13a   : > { %v887_v22 = vpop.f32.mrb[36].mxu1  ;;  %3737 = vmatmul.mubr.msk.bf16.gmra.mrb[140].mxu0 %vm394_vm3, %v4560_v16 }
 0x13b   : > { %v904_v23 = vadd.f32 %v887_v22, %v818_v40  ;;  %v3472_v25 = vpop.f32.mrb[37].mxu1  ;;  %3740 = vmatprep.mubr.msk.bf16.mxu0 %vm3904_vm1, %v3903_v1 }
 0x13c   : > { %v890_v27 = vpop.f32.mrb[38].mxu1 }
 0x13d   : > { %v905_v28 = vadd.f32 %v890_v27, %v4522_v37  ;;  %v3473_v32 = vpop.f32.mrb[39].mxu1  ;;  %v993_v33 = vpop.f32.mrb[36].mxu0  ;;  %v1002_v62 = vadd.f32 %v985_v13, %v904_v23  ;;  %v2834_v13 = vsel %vm541_vm4, %v2831_v46, %v2833_v5 }
 0x13e   : > { %v3490_v29 = vpop.f32.mrb[37].mxu0 }
 0x13f   : > { %3723 = vmatmul.mubr.msk.bf16.gmra.mrb[144].mxu1 %vm394_vm3, %v2548_v30  ;;  %v996_v35 = vpop.f32.mrb[38].mxu0  ;;  %v1003_v39 = vadd.f32 %v988_v17, %v905_v28  ;;  %v2740_v17 = vor.u32 %v2738_v7, %v2736_v2  ;;  %v2746_v28 = vshrl.u32 %v3251_v59, 16 }
 0x140   : > { %v3491_v40 = vpop.f32.mrb[39].mxu0  ;;  %3726 = vmatprep.mubr.msk.bf16.mxu1 %vm3904_vm1, %v3903_v1 }
 0x141   : > { %v2745_v23 = vsel %vm370_vm2, %v2740_v17, %v2744_v20 }
 0x142   : > { %v895_v43 = vpop.f32.mrb[40].mxu1  ;;  %3741 = vmatmul.mubr.msk.bf16.gmra.mrb[144].mxu0 %vm394_vm3, %v3246_v34 }
 0x143   : > { %v906_v44 = vadd.f32 %v895_v43, %v820_v63  ;;  %v3476_v37 = vpop.f32.mrb[41].mxu1  ;;  %3760 = vmatprep.mubr.msk.bf16.mxu0 %vm3904_vm1, %v3903_v1 }
 0x144   : > { %v898_v47 = vpop.f32.mrb[42].mxu1 }
 0x145   : > { %v907_v53 = vadd.f32 %v898_v47, %v4544_v3  ;;  %v3477_v54 = vpop.f32.mrb[43].mxu1  ;;  %v1165_v55 = vpop.f32.mrb[40].mxu0  ;;  %v1004_v57 = vadd.f32 %v993_v33, %v906_v44 }
 0x146   : > { %v3510_v58 = vpop.f32.mrb[41].mxu0 }
 0x147   : > { %3727 = vmatmul.mubr.msk.bf16.gmra.mrb[148].mxu1 %vm394_vm3, %v2547_v21  ;;  %v1168_v60 = vpop.f32.mrb[42].mxu0  ;;  %v1005_v63 = vadd.f32 %v996_v35, %v907_v53  ;;  %v2748_v35 = vor.u32 %v2746_v28, %v2744_v20 }
 0x148   : > { %v3511_v0 = vpop.f32.mrb[43].mxu0  ;;  %3746 = vmatprep.mubr.msk.bf16.mxu1 %vm3904_vm1, %v3903_v1 }
 0x14a   : > { %v1079_v4 = vpop.f32.mrb[44].mxu1  ;;  %3761 = vmatmul.mubr.msk.bf16.vlgmr.msra.gmra.mrb[148].mxu0 %vm394_vm3, %v2832_v61 }
 0x14b   : > { %v1102_v3 = vadd.f32 %v1079_v4, %v1000_v14  ;;  %v3496_v19 = vpop.f32.mrb[45].mxu1  ;;  %3764 = vmatprep.mubr.msk.bf16.mxu0 %vm3904_vm1, %v3903_v1 }
 0x14c   : > { %v1082_v52 = vpop.f32.mrb[46].mxu1 }
 0x14d   : > { %v1103_v9 = vadd.f32 %v1082_v52, %v4563_v18  ;;  %v3497_v10 = vpop.f32.mrb[47].mxu1  ;;  %v1173_v36 = vpop.f32.mrb[44].mxu0  ;;  %v1188_v11 = vadd.f32 %v1165_v55, %v1102_v3 }
 0x14e   : > { %v3514_v56 = vpop.f32.mrb[45].mxu0 }
 0x14f   : > { %3747 = vmatmul.mubr.msk.bf16.vlgmr.msra.gmra.mrb[152].mxu1 %vm394_vm3, %v2737_v6  ;;  %v1176_v12 = vpop.f32.mrb[46].mxu0  ;;  %v1189_v14 = vadd.f32 %v1168_v60, %v1103_v9 }
 0x150   : > { %v3515_v15 = vpop.f32.mrb[47].mxu0  ;;  %3750 = vmatprep.mubr.msk.bf16.mxu1 %vm3904_vm1, %v3903_v1 }
 0x152   : > { %v1087_v16 = vpop.f32.mrb[48].mxu1  ;;  %3765 = vmatmul.mubr.msk.bf16.gmra.mrb[152].mxu0 %vm394_vm3, %v2834_v13 }
 0x153   : > { %v1104_v18 = vadd.f32 %v1087_v16, %v1002_v62  ;;  %v3500_v21 = vpop.f32.mrb[49].mxu1  ;;  %3768 = vmatprep.mubr.msk.bf16.mxu0 %vm3904_vm1, %v3903_v1 }
 0x154   : > { %v1090_v22 = vpop.f32.mrb[50].mxu1 }
 0x155   : > { %v1105_v25 = vadd.f32 %v1090_v22, %v1003_v39  ;;  %v3501_v26 = vpop.f32.mrb[51].mxu1  ;;  %v1181_v24 = vpop.f32.mrb[48].mxu0  ;;  %v1190_v27 = vadd.f32 %v1173_v36, %v1104_v18 }
 0x156   : > { %v3518_v30 = vpop.f32.mrb[49].mxu0 }
 0x157   : > { %3751 = vmatmul.mubr.msk.bf16.gmra.mrb[156].mxu1 %vm394_vm3, %v2745_v23  ;;  %v1184_v31 = vpop.f32.mrb[50].mxu0  ;;  %v1191_v32 = vadd.f32 %v1176_v12, %v1105_v25 }
 0x158   : > { %v3519_v33 = vpop.f32.mrb[51].mxu0  ;;  %3754 = vmatprep.mubr.msk.bf16.mxu1 %vm3904_vm1, %v3903_v1 }
 0x15a   : > { %v1095_v62 = vpop.f32.mrb[52].mxu1  ;;  %3769 = vmatmul.mubr.msk.bf16.gmra.mrb[156].mxu0 %vm394_vm3, %v2833_v5 }
 0x15b   : > { %v1106_v29 = vadd.f32 %v1095_v62, %v1004_v57  ;;  %v3504_v34 = vpop.f32.mrb[53].mxu1 }
 0x15c   : > { %v1098_v38 = vpop.f32.mrb[54].mxu1 }
 0x15d   : > { %v1107_v39 = vadd.f32 %v1098_v38, %v1005_v63  ;;  %v3505_v40 = vpop.f32.mrb[55].mxu1  ;;  %v1365_v42 = vpop.f32.mrb[52].mxu0  ;;  %v1192_v43 = vadd.f32 %v1181_v24, %v1106_v29 }
 0x15e   : > { %v3538_v44 = vpop.f32.mrb[53].mxu0 }
 0x15f   : > { %3755 = vmatmul.mubr.msk.bf16.gmra.mrb[160].mxu1 %vm394_vm3, %v2748_v35  ;;  %v1368_v37 = vpop.f32.mrb[54].mxu0  ;;  %v1193_v45 = vadd.f32 %v1184_v31, %v1107_v39 }
 0x160   : > { %v3539_v46 = vpop.f32.mrb[55].mxu0 }
 0x162   : > { %v1263_v47 = vpop.f32.mrb[56].mxu1 }
 0x163   : > { %v1286_v48 = vadd.f32 %v1263_v47, %v1188_v11  ;;  %v3524_v1 = vpop.f32.mrb[57].mxu1 }
 0x164   : > { %v1266_v49 = vpop.f32.mrb[58].mxu1 }
 0x165   : > { %v1287_v50 = vadd.f32 %v1266_v49, %v1189_v14  ;;  %v3525_v51 = vpop.f32.mrb[59].mxu1  ;;  %v1373_v53 = vpop.f32.mrb[56].mxu0  ;;  %v1388_v54 = vadd.f32 %v1365_v42, %v1286_v48 }
 0x166   : > { %v3542_v55 = vpop.f32.mrb[57].mxu0 }
 0x167   : > { %v1376_v57 = vpop.f32.mrb[58].mxu0  ;;  %v1389_v58 = vadd.f32 %v1368_v37, %v1287_v50 }
 0x168   : > { %v3543_v59 = vpop.f32.mrb[59].mxu0 }
 0x16a   : > { %v1271_v60 = vpop.f32.mrb[60].mxu1 }
 0x16b   : > { %v1288_v61 = vadd.f32 %v1271_v60, %v1190_v27  ;;  %v3528_v63 = vpop.f32.mrb[61].mxu1 }
 0x16c   : > { %v1274_v0 = vpop.f32.mrb[62].mxu1 }
 0x16d   : > { %v1289_v41 = vadd.f32 %v1274_v0, %v1191_v32  ;;  %v3529_v2 = vpop.f32.mrb[63].mxu1  ;;  %v1381_v4 = vpop.f32.mrb[60].mxu0  ;;  %v1390_v3 = vadd.f32 %v1373_v53, %v1288_v61 }
 0x16e   : > { %v3546_v19 = vpop.f32.mrb[61].mxu0 }
 0x16f   : > { %v1384_v5 = vpop.f32.mrb[62].mxu0  ;;  %v1391_v52 = vadd.f32 %v1376_v57, %v1289_v41 }
 0x170   : > { %v3547_v6 = vpop.f32.mrb[63].mxu0 }
 0x172   : > { %v1279_v7 = vpop.f32.mrb[64].mxu1 }
 0x173   : > { %v1290_v8 = vadd.f32 %v1279_v7, %v1192_v43  ;;  %v3532_v9 = vpop.f32.mrb[65].mxu1 }
 0x174   : > { %v1282_v10 = vpop.f32.mrb[66].mxu1 }
 0x175   : > { %v1291_v36 = vadd.f32 %v1282_v10, %v1193_v45  ;;  %v3533_v11 = vpop.f32.mrb[67].mxu1  ;;  %v1549_v56 = vpop.f32.mrb[64].mxu0  ;;  %v1392_v12 = vadd.f32 %v1381_v4, %v1290_v8 }
 0x176   : > { %v3566_v13 = vpop.f32.mrb[65].mxu0 }
 0x177   : > { %v1552_v14 = vpop.f32.mrb[66].mxu0  ;;  %v1393_v15 = vadd.f32 %v1384_v5, %v1291_v36 }
 0x178   : > { %v3567_v17 = vpop.f32.mrb[67].mxu0 }
 0x17a   : > { %v1451_v20 = vpop.f32.mrb[68].mxu1 }
 0x17b   : > { %v1474_v16 = vadd.f32 %v1451_v20, %v1388_v54  ;;  %v3552_v18 = vpop.f32.mrb[69].mxu1 }
 0x17c   : > { %v1454_v21 = vpop.f32.mrb[70].mxu1 }
 0x17d   : > { %v1475_v22 = vadd.f32 %v1454_v21, %v1389_v58  ;;  %v3553_v23 = vpop.f32.mrb[71].mxu1  ;;  %v1557_v25 = vpop.f32.mrb[68].mxu0  ;;  %v1572_v26 = vadd.f32 %v1549_v56, %v1474_v16 }
 0x17e   : > { %v3570_v24 = vpop.f32.mrb[69].mxu0 }
 0x17f   : > { %v1560_v27 = vpop.f32.mrb[70].mxu0  ;;  %v1573_v30 = vadd.f32 %v1552_v14, %v1475_v22 }
 0x180   : > { %v3571_v31 = vpop.f32.mrb[71].mxu0 }
 0x182   : > { %v1459_v28 = vpop.f32.mrb[72].mxu1 }
 0x183   : > { %v1476_v32 = vadd.f32 %v1459_v28, %v1390_v3  ;;  %v3556_v33 = vpop.f32.mrb[73].mxu1 }
 0x184   : > { %v1462_v62 = vpop.f32.mrb[74].mxu1 }
 0x185   : > { %v1477_v29 = vadd.f32 %v1462_v62, %v1391_v52  ;;  %v3557_v34 = vpop.f32.mrb[75].mxu1  ;;  %v1565_v35 = vpop.f32.mrb[72].mxu0  ;;  %v1574_v38 = vadd.f32 %v1557_v25, %v1476_v32 }
 0x186   : > { %v3574_v39 = vpop.f32.mrb[73].mxu0  ;;  %v3905_v34 = vmov 0  }
 0x187   : > { %v1568_v40 = vpop.f32.mrb[74].mxu0  ;;  %v1575_v42 = vadd.f32 %v1560_v27, %v1477_v29  ;;  %2952 = vst [vmem:[%s4619_s14 + $0x14] sm:$0x8] %v3905_v34  ;;  %2953 = vst [vmem:[%s4619_s14 + $0x18] sm:$0xf] %v3905_v34 }
 0x188   : > { %v3575_v43 = vpop.f32.mrb[75].mxu0  ;;  %2954 = vst [vmem:[%s4619_s14 + $0x1c] sm:$0xf] %v3905_v34 }
 0x18a   : > { %v1467_v44 = vpop.f32.mrb[76].mxu1 }
 0x18b   : > { %v1478_v37 = vadd.f32 %v1467_v44, %v1392_v12  ;;  %v3560_v45 = vpop.f32.mrb[77].mxu1 }
 0x18c   : > { %v1470_v46 = vpop.f32.mrb[78].mxu1 }
 0x18d   : > { %v1479_v47 = vadd.f32 %v1470_v46, %v1393_v15  ;;  %v3561_v48 = vpop.f32.mrb[79].mxu1  ;;  %v1737_v1 = vpop.f32.mrb[76].mxu0  ;;  %v1576_v49 = vadd.f32 %v1565_v35, %v1478_v37 }
 0x18e   : > { %v3594_v50 = vpop.f32.mrb[77].mxu0 }
 0x18f   : > { %v1740_v51 = vpop.f32.mrb[78].mxu0  ;;  %v1577_v53 = vadd.f32 %v1568_v40, %v1479_v47 }
 0x190   : > { %v3595_v54 = vpop.f32.mrb[79].mxu0 }
 0x192   : > { %v1651_v55 = vpop.f32.mrb[80].mxu1 }
 0x193   : > { %v1674_v57 = vadd.f32 %v1651_v55, %v1572_v26  ;;  %v3580_v58 = vpop.f32.mrb[81].mxu1 }
 0x194   : > { %v1654_v59 = vpop.f32.mrb[82].mxu1 }
 0x195   : > { %v1675_v60 = vadd.f32 %v1654_v59, %v1573_v30  ;;  %v3581_v61 = vpop.f32.mrb[83].mxu1  ;;  %v1745_v63 = vpop.f32.mrb[80].mxu0  ;;  %v1760_v0 = vadd.f32 %v1737_v1, %v1674_v57 }
 0x196   : > { %v3598_v41 = vpop.f32.mrb[81].mxu0 }
 0x197   : > { %v1748_v2 = vpop.f32.mrb[82].mxu0  ;;  %v1761_v4 = vadd.f32 %v1740_v51, %v1675_v60 }
 0x198   : > { %v3599_v3 = vpop.f32.mrb[83].mxu0 }
 0x19a   : > { %v1659_v19 = vpop.f32.mrb[84].mxu1 }
 0x19b   : > { %v1676_v5 = vadd.f32 %v1659_v19, %v1574_v38  ;;  %v3584_v52 = vpop.f32.mrb[85].mxu1 }
 0x19c   : > { %v1662_v6 = vpop.f32.mrb[86].mxu1 }
 0x19d   : > { %v1677_v7 = vadd.f32 %v1662_v6, %v1575_v42  ;;  %v3585_v8 = vpop.f32.mrb[87].mxu1  ;;  %v1753_v9 = vpop.f32.mrb[84].mxu0  ;;  %v1762_v10 = vadd.f32 %v1745_v63, %v1676_v5 }
 0x19e   : > { %v3602_v36 = vpop.f32.mrb[85].mxu0 }
 0x19f   : > { %v1756_v11 = vpop.f32.mrb[86].mxu0  ;;  %v1763_v56 = vadd.f32 %v1748_v2, %v1677_v7 }
 0x1a0   : > { %v3603_v12 = vpop.f32.mrb[87].mxu0 }
 0x1a2   : > { %v1667_v13 = vpop.f32.mrb[88].mxu1 }
 0x1a3   : > { %v1678_v14 = vadd.f32 %v1667_v13, %v1576_v49  ;;  %v3588_v15 = vpop.f32.mrb[89].mxu1 }
 0x1a4   : > { %v1670_v17 = vpop.f32.mrb[90].mxu1 }
 0x1a5   : > { %v1679_v20 = vadd.f32 %v1670_v17, %v1577_v53  ;;  %v3589_v16 = vpop.f32.mrb[91].mxu1  ;;  %v1937_v18 = vpop.f32.mrb[88].mxu0  ;;  %v1764_v21 = vadd.f32 %v1753_v9, %v1678_v14 }
 0x1a6   : > { %v3622_v22 = vpop.f32.mrb[89].mxu0 }
 0x1a7   : > { %v1940_v23 = vpop.f32.mrb[90].mxu0  ;;  %v1765_v25 = vadd.f32 %v1756_v11, %v1679_v20 }
 0x1a8   : > { %v3623_v26 = vpop.f32.mrb[91].mxu0 }
 0x1aa   : > { %v1835_v24 = vpop.f32.mrb[92].mxu1 }
 0x1ab   : > { %v1858_v27 = vadd.f32 %v1835_v24, %v1760_v0  ;;  %v3608_v30 = vpop.f32.mrb[93].mxu1 }
 0x1ac   : > { %v1838_v31 = vpop.f32.mrb[94].mxu1 }
 0x1ad   : > { %v1859_v28 = vadd.f32 %v1838_v31, %v1761_v4  ;;  %v3609_v32 = vpop.f32.mrb[95].mxu1  ;;  %v1945_v33 = vpop.f32.mrb[92].mxu0  ;;  %v1960_v62 = vadd.f32 %v1937_v18, %v1858_v27 }
 0x1ae   : > { %v3626_v29 = vpop.f32.mrb[93].mxu0 }
 0x1af   : > { %v1948_v35 = vpop.f32.mrb[94].mxu0  ;;  %v1961_v38 = vadd.f32 %v1940_v23, %v1859_v28 }
 0x1b0   : > { %v3627_v39 = vpop.f32.mrb[95].mxu0 }
 0x1b2   : > { %v1843_v40 = vpop.f32.mrb[96].mxu1 }
 0x1b3   : > { %v1860_v42 = vadd.f32 %v1843_v40, %v1762_v10  ;;  %v3612_v43 = vpop.f32.mrb[97].mxu1 }
 0x1b4   : > { %v1846_v44 = vpop.f32.mrb[98].mxu1 }
 0x1b5   : > { %v1861_v37 = vadd.f32 %v1846_v44, %v1763_v56  ;;  %v3613_v45 = vpop.f32.mrb[99].mxu1  ;;  %v1953_v46 = vpop.f32.mrb[96].mxu0  ;;  %v1962_v47 = vadd.f32 %v1945_v33, %v1860_v42 }
 0x1b6   : > { %v3630_v48 = vpop.f32.mrb[97].mxu0 }
 0x1b7   : > { %v1956_v1 = vpop.f32.mrb[98].mxu0  ;;  %v1963_v49 = vadd.f32 %v1948_v35, %v1861_v37 }
 0x1b8   : > { %v3631_v50 = vpop.f32.mrb[99].mxu0 }
 0x1ba   : > { %v1851_v51 = vpop.f32.mrb[100].mxu1 }
 0x1bb   : > { %v1862_v53 = vadd.f32 %v1851_v51, %v1764_v21  ;;  %v3616_v54 = vpop.f32.mrb[101].mxu1 }
 0x1bc   : > { %v1854_v55 = vpop.f32.mrb[102].mxu1 }
 0x1bd   : > { %v1863_v57 = vadd.f32 %v1854_v55, %v1765_v25  ;;  %v3617_v58 = vpop.f32.mrb[103].mxu1  ;;  %v2121_v59 = vpop.f32.mrb[100].mxu0  ;;  %v1964_v60 = vadd.f32 %v1953_v46, %v1862_v53 }
 0x1be   : > { %v3650_v61 = vpop.f32.mrb[101].mxu0 }
 0x1bf   : > { %v2124_v63 = vpop.f32.mrb[102].mxu0  ;;  %v1965_v0 = vadd.f32 %v1956_v1, %v1863_v57 }
 0x1c0   : > { %v3651_v41 = vpop.f32.mrb[103].mxu0 }
 0x1c2   : > { %v2023_v2 = vpop.f32.mrb[104].mxu1 }
 0x1c3   : > { %v2046_v4 = vadd.f32 %v2023_v2, %v1960_v62  ;;  %v3636_v3 = vpop.f32.mrb[105].mxu1 }
 0x1c4   : > { %v2026_v19 = vpop.f32.mrb[106].mxu1 }
 0x1c5   : > { %v2047_v5 = vadd.f32 %v2026_v19, %v1961_v38  ;;  %v3637_v52 = vpop.f32.mrb[107].mxu1  ;;  %v2129_v6 = vpop.f32.mrb[104].mxu0  ;;  %v2144_v7 = vadd.f32 %v2121_v59, %v2046_v4 }
 0x1c6   : > { %v3654_v8 = vpop.f32.mrb[105].mxu0 }
 0x1c7   : > { %v2132_v9 = vpop.f32.mrb[106].mxu0  ;;  %v2145_v10 = vadd.f32 %v2124_v63, %v2047_v5 }
 0x1c8   : > { %v3655_v36 = vpop.f32.mrb[107].mxu0 }
 0x1ca   : > { %v2031_v11 = vpop.f32.mrb[108].mxu1 }
 0x1cb   : > { %v2048_v56 = vadd.f32 %v2031_v11, %v1962_v47  ;;  %v3640_v12 = vpop.f32.mrb[109].mxu1 }
 0x1cc   : > { %v2034_v13 = vpop.f32.mrb[110].mxu1 }
 0x1cd   : > { %v2049_v14 = vadd.f32 %v2034_v13, %v1963_v49  ;;  %v3641_v15 = vpop.f32.mrb[111].mxu1  ;;  %v2137_v17 = vpop.f32.mrb[108].mxu0  ;;  %v2146_v20 = vadd.f32 %v2129_v6, %v2048_v56 }
 0x1ce   : > { %v3658_v16 = vpop.f32.mrb[109].mxu0 }
 0x1cf   : > { %v2140_v18 = vpop.f32.mrb[110].mxu0  ;;  %v2147_v21 = vadd.f32 %v2132_v9, %v2049_v14 }
 0x1d0   : > { %v3659_v22 = vpop.f32.mrb[111].mxu0 }
 0x1d2   : > { %v2039_v23 = vpop.f32.mrb[112].mxu1 }
 0x1d3   : > { %v2050_v25 = vadd.f32 %v2039_v23, %v1964_v60  ;;  %v3644_v26 = vpop.f32.mrb[113].mxu1 }
 0x1d4   : > { %v2042_v24 = vpop.f32.mrb[114].mxu1 }
 0x1d5   : > { %v2051_v27 = vadd.f32 %v2042_v24, %v1965_v0  ;;  %v3645_v30 = vpop.f32.mrb[115].mxu1  ;;  %v2309_v31 = vpop.f32.mrb[112].mxu0  ;;  %v2148_v28 = vadd.f32 %v2137_v17, %v2050_v25 }
 0x1d6   : > { %v3678_v32 = vpop.f32.mrb[113].mxu0 }
 0x1d7   : > { %v2312_v33 = vpop.f32.mrb[114].mxu0  ;;  %v2149_v62 = vadd.f32 %v2140_v18, %v2051_v27 }
 0x1d8   : > { %v3679_v29 = vpop.f32.mrb[115].mxu0 }
 0x1da   : > { %v2223_v34 = vpop.f32.mrb[116].mxu1 }
 0x1db   : > { %v2246_v35 = vadd.f32 %v2223_v34, %v2144_v7  ;;  %v3664_v38 = vpop.f32.mrb[117].mxu1 }
 0x1dc   : > { %v2226_v39 = vpop.f32.mrb[118].mxu1 }
 0x1dd   : > { %v2247_v40 = vadd.f32 %v2226_v39, %v2145_v10  ;;  %v3665_v42 = vpop.f32.mrb[119].mxu1  ;;  %v2317_v43 = vpop.f32.mrb[116].mxu0  ;;  %v2332_v44 = vadd.f32 %v2309_v31, %v2246_v35 }
 0x1de   : > { %v3682_v37 = vpop.f32.mrb[117].mxu0 }
 0x1df   : > { %v2320_v45 = vpop.f32.mrb[118].mxu0  ;;  %v2333_v46 = vadd.f32 %v2312_v33, %v2247_v40 }
 0x1e0   : > { %v3683_v47 = vpop.f32.mrb[119].mxu0 }
 0x1e2   : > { %v2231_v48 = vpop.f32.mrb[120].mxu1 }
 0x1e3   : > { %v2248_v1 = vadd.f32 %v2231_v48, %v2146_v20  ;;  %v3668_v49 = vpop.f32.mrb[121].mxu1 }
 0x1e4   : > { %v2234_v50 = vpop.f32.mrb[122].mxu1 }
 0x1e5   : > { %v2249_v51 = vadd.f32 %v2234_v50, %v2147_v21  ;;  %v3669_v53 = vpop.f32.mrb[123].mxu1  ;;  %v2325_v54 = vpop.f32.mrb[120].mxu0  ;;  %v2334_v55 = vadd.f32 %v2317_v43, %v2248_v1 }
 0x1e6   : > { %v3686_v57 = vpop.f32.mrb[121].mxu0 }
 0x1e7   : > { %v2328_v58 = vpop.f32.mrb[122].mxu0  ;;  %v2335_v59 = vadd.f32 %v2320_v45, %v2249_v51 }
 0x1e8   : > { %v3687_v60 = vpop.f32.mrb[123].mxu0 }
 0x1ea   : > { %v2239_v61 = vpop.f32.mrb[124].mxu1 }
 0x1eb   : > { %v2250_v63 = vadd.f32 %v2239_v61, %v2148_v28  ;;  %v3672_v0 = vpop.f32.mrb[125].mxu1 }
 0x1ec   : > { %v2242_v41 = vpop.f32.mrb[126].mxu1 }
 0x1ed   : > { %v2251_v2 = vadd.f32 %v2242_v41, %v2149_v62  ;;  %v3673_v4 = vpop.f32.mrb[127].mxu1  ;;  %v2509_v3 = vpop.f32.mrb[124].mxu0  ;;  %v2336_v19 = vadd.f32 %v2325_v54, %v2250_v63 }
 0x1ee   : > { %v3706_v5 = vpop.f32.mrb[125].mxu0 }
 0x1ef   : > { %v2512_v52 = vpop.f32.mrb[126].mxu0  ;;  %v2337_v6 = vadd.f32 %v2328_v58, %v2251_v2 }
 0x1f0   : > { %v3707_v7 = vpop.f32.mrb[127].mxu0 }
 0x1f2   : > { %v2407_v8 = vpop.f32.mrb[128].mxu1 }
 0x1f3   : > { %v2430_v9 = vadd.f32 %v2407_v8, %v2332_v44  ;;  %v3692_v10 = vpop.f32.mrb[129].mxu1 }
 0x1f4   : > { %v2410_v36 = vpop.f32.mrb[130].mxu1 }
 0x1f5   : > { %v2431_v11 = vadd.f32 %v2410_v36, %v2333_v46  ;;  %v3693_v56 = vpop.f32.mrb[131].mxu1  ;;  %v2517_v12 = vpop.f32.mrb[128].mxu0  ;;  %v2532_v13 = vadd.f32 %v2509_v3, %v2430_v9 }
 0x1f6   : > { %v3710_v14 = vpop.f32.mrb[129].mxu0 }
 0x1f7   : > { %v2520_v15 = vpop.f32.mrb[130].mxu0  ;;  %v2533_v17 = vadd.f32 %v2512_v52, %v2431_v11 }
 0x1f8   : > { %v3711_v20 = vpop.f32.mrb[131].mxu0 }
 0x1fa   : > { %v2415_v16 = vpop.f32.mrb[132].mxu1 }
 0x1fb   : > { %v2432_v18 = vadd.f32 %v2415_v16, %v2334_v55  ;;  %v3696_v21 = vpop.f32.mrb[133].mxu1 }
 0x1fc   : > { %v2418_v22 = vpop.f32.mrb[134].mxu1 }
 0x1fd   : > { %v2433_v23 = vadd.f32 %v2418_v22, %v2335_v59  ;;  %v3697_v25 = vpop.f32.mrb[135].mxu1  ;;  %v2525_v26 = vpop.f32.mrb[132].mxu0  ;;  %v2534_v24 = vadd.f32 %v2517_v12, %v2432_v18 }
 0x1fe   : > { %v3714_v27 = vpop.f32.mrb[133].mxu0 }
 0x1ff   : > { %v2528_v30 = vpop.f32.mrb[134].mxu0  ;;  %v2535_v31 = vadd.f32 %v2520_v15, %v2433_v23  ;;  %v3260_v23 = vld [vmem:[%s4650_s4] ss:$0 sm:$0xff] }
 0x200   : > { %v3715_v28 = vpop.f32.mrb[135].mxu0 }
 0x202   : > { %v2423_v32 = vpop.f32.mrb[136].mxu1 }
 0x203   : > { %v2434_v33 = vadd.f32 %v2423_v32, %v2336_v19  ;;  %v3700_v62 = vpop.f32.mrb[137].mxu1 }
 0x204   : > { %v2426_v29 = vpop.f32.mrb[138].mxu1 }
 0x205   : > { %v2435_v34 = vadd.f32 %v2426_v29, %v2337_v6  ;;  %v3701_v35 = vpop.f32.mrb[139].mxu1  ;;  %v2693_v38 = vpop.f32.mrb[136].mxu0  ;;  %v2536_v39 = vadd.f32 %v2525_v26, %v2434_v33 }
 0x206   : > { %v3734_v40 = vpop.f32.mrb[137].mxu0 }
 0x207   : > { %v2696_v42 = vpop.f32.mrb[138].mxu0  ;;  %v2537_v43 = vadd.f32 %v2528_v30, %v2435_v34 }
 0x208   : > { %v3735_v44 = vpop.f32.mrb[139].mxu0 }
 0x20a   : > { %v2595_v37 = vpop.f32.mrb[140].mxu1 }
 0x20b   : > { %v2618_v45 = vadd.f32 %v2595_v37, %v2532_v13  ;;  %v3720_v46 = vpop.f32.mrb[141].mxu1 }
 0x20c   : > { %v2598_v47 = vpop.f32.mrb[142].mxu1 }
 0x20d   : > { %v2619_v48 = vadd.f32 %v2598_v47, %v2533_v17  ;;  %v3721_v1 = vpop.f32.mrb[143].mxu1  ;;  %v2701_v49 = vpop.f32.mrb[140].mxu0  ;;  %v2716_v50 = vadd.f32 %v2693_v38, %v2618_v45 }
 0x20e   : > { %v3738_v51 = vpop.f32.mrb[141].mxu0 }
 0x20f   : > { %v2704_v53 = vpop.f32.mrb[142].mxu0  ;;  %v2717_v54 = vadd.f32 %v2696_v42, %v2619_v48 }
 0x210   : > { %v3739_v55 = vpop.f32.mrb[143].mxu0 }
 0x212   : > { %v2603_v57 = vpop.f32.mrb[144].mxu1 }
 0x213   : > { %v2620_v58 = vadd.f32 %v2603_v57, %v2534_v24  ;;  %v3724_v59 = vpop.f32.mrb[145].mxu1 }
 0x214   : > { %v2606_v60 = vpop.f32.mrb[146].mxu1 }
 0x215   : > { %v2621_v61 = vadd.f32 %v2606_v60, %v2535_v31  ;;  %v3725_v63 = vpop.f32.mrb[147].mxu1  ;;  %v2709_v0 = vpop.f32.mrb[144].mxu0  ;;  %v2718_v41 = vadd.f32 %v2701_v49, %v2620_v58 }
 0x216   : > { %v3742_v2 = vpop.f32.mrb[145].mxu0 }
 0x217   : > { %v2712_v4 = vpop.f32.mrb[146].mxu0  ;;  %v2719_v3 = vadd.f32 %v2704_v53, %v2621_v61 }
 0x218   : > { %v3743_v19 = vpop.f32.mrb[147].mxu0 }
 0x21a   : > { %v2611_v5 = vpop.f32.mrb[148].mxu1 }
 0x21b   : > { %v2622_v52 = vadd.f32 %v2611_v5, %v2536_v39  ;;  %v3728_v6 = vpop.f32.mrb[149].mxu1 }
 0x21c   : > { %v2614_v7 = vpop.f32.mrb[150].mxu1 }
 0x21d   : > { %v2623_v8 = vadd.f32 %v2614_v7, %v2537_v43  ;;  %v3729_v9 = vpop.f32.mrb[151].mxu1  ;;  %v2881_v10 = vpop.f32.mrb[148].mxu0  ;;  %v2720_v36 = vadd.f32 %v2709_v0, %v2622_v52 }
 0x21e   : > { %v3762_v11 = vpop.f32.mrb[149].mxu0 }
 0x21f   : > { %v2884_v56 = vpop.f32.mrb[150].mxu0  ;;  %v2721_v12 = vadd.f32 %v2712_v4, %v2623_v8 }
 0x220   : > { %v3763_v13 = vpop.f32.mrb[151].mxu0 }
 0x222   : > { %v2795_v14 = vpop.f32.mrb[152].mxu1 }
 0x223   : > { %v2818_v15 = vadd.f32 %v2795_v14, %v2716_v50  ;;  %v3748_v17 = vpop.f32.mrb[153].mxu1 }
 0x224   : > { %v2798_v20 = vpop.f32.mrb[154].mxu1 }
 0x225   : > { %v2904_v16 = vadd.f32 %v2881_v10, %v2818_v15  ;;  %v2819_v18 = vadd.f32 %v2798_v20, %v2717_v54  ;;  %v3749_v21 = vpop.f32.mrb[155].mxu1  ;;  %v2889_v22 = vpop.f32.mrb[152].mxu0 }
 0x226   : > { %v3766_v25 = vpop.f32.mrb[153].mxu0 }
 0x227   : > { %v2905_v26 = vadd.f32 %v2884_v56, %v2819_v18  ;;  %v2892_v24 = vpop.f32.mrb[154].mxu0  ;;  %v2916_v30 = vadd.f32 %v3260_v23, %v2904_v16 }
 0x228   : > { %v3767_v27 = vpop.f32.mrb[155].mxu0 }
 0x229   : > { %v2917_v31 = vadd.f32 %v3260_v23, %v2905_v26 }
 0x22a   : > { %v2803_v28 = vpop.f32.mrb[156].mxu1 }
 0x22b   : > { %v3278_v32 = vpack.c.bf16 %v2917_v31, %v2916_v30  ;;  %v2820_v33 = vadd.f32 %v2803_v28, %v2718_v41  ;;  %v3752_v62 = vpop.f32.mrb[157].mxu1 }
 0x22c   : > { %v2806_v29 = vpop.f32.mrb[158].mxu1 }
 0x22d   : > { %3279 = vst [vmem:[%s4619_s14] sm:$0xff] %v3278_v32   ;;  %v2906_v34 = vadd.f32 %v2889_v22, %v2820_v33  ;;  %v2821_v35 = vadd.f32 %v2806_v29, %v2719_v3  ;;  %v3753_v38 = vpop.f32.mrb[159].mxu1  ;;  %v2897_v39 = vpop.f32.mrb[156].mxu0 }
 0x22e   : > { %v3770_v40 = vpop.f32.mrb[157].mxu0 }
 0x22f   : > { %v2907_v42 = vadd.f32 %v2892_v24, %v2821_v35  ;;  %v2900_v43 = vpop.f32.mrb[158].mxu0  ;;  %v2918_v37 = vadd.f32 %v3260_v23, %v2906_v34 }
 0x230   : > { %v3771_v44 = vpop.f32.mrb[159].mxu0 }
 0x231   : > { %v2919_v45 = vadd.f32 %v3260_v23, %v2907_v42 }
 0x232   : > { %v2811_v46 = vpop.f32.mrb[160].mxu1 }
 0x233   : > { %v3283_v47 = vpack.c.bf16 %v2919_v45, %v2918_v37  ;;  %v2822_v48 = vadd.f32 %v2811_v46, %v2720_v36  ;;  %v3756_v1 = vpop.f32.mrb[161].mxu1 }
 0x234   : > { %v2814_v49 = vpop.f32.mrb[162].mxu1 }
 0x235   : > { %3285 = vst [vmem:[%s4619_s14 + $0x8] sm:$0xff] %v3283_v47   ;;  %v2908_v50 = vadd.f32 %v2897_v39, %v2822_v48  ;;  %v2823_v51 = vadd.f32 %v2814_v49, %v2721_v12  ;;  %v3757_v53 = vpop.f32.mrb[163].mxu1 }
 0x237   : > { %v2920_v54 = vadd.f32 %v3260_v23, %v2908_v50  ;;  %v2909_v55 = vadd.f32 %v2900_v43, %v2823_v51 }
 0x239   : > { %v3273_v57 = vpack.c.bf16 %v2920_v54, %v2920_v54  ;;  %v2921_v58 = vadd.f32 %v3260_v23, %v2909_v55 }
 0x23b   : > { %2950 = vst [vmem:[%s4619_s14 + $0x10] sm:$0xf] %v3273_v57  ;;  %v3274_v59 = vpack.c.bf16 %v2921_v58, %v2921_v58 }
 0x23d   : > { %2951 = vst [vmem:[%s4619_s14 + $0x14] sm:$0x7] %v3274_v59 }
 0x23e PF: > { %s15_s22 = sadd.s32 1, %s3901_s22   ;;  %s4652_s18 = smov %s3893_s20 }
 0x23f   : > { %p12_p10 = scmp.ge.s32.totalorder %s15_s22, 14   ;;  %s4653_s19 = smov %s3897_s21 }
 0x240   : > { %s4654_s20 = smov %s4657_s23  ;;  %s4655_s21 = smov %s4661_s24 }
 0x241   :  { %14 = sbr.rel (!%p12_p10) target bundleno = 3 (0x3), region = 102 }

// kernel: encoder_forward.3
= control target key start
LH: loop header
LB: loop body
LE: loop exit
PB: predicated region body
PF: predicated region fallthrough
CT: control target
= control target key end

     0   :  { %s6681_s18 = smov 0   ;;  %s6683_s19 = smov 0   ;;  %s8203_s0 = inlined_call_operand.vmem [shape: bf16[2,6,64,128], index: 0, kind: input, shape index: {}, may-alias: {0,1,2}]   ;;  %s8204_s1 = inlined_call_operand.vmem [shape: bf16[2,6,64,128], index: 1, kind: input, shape index: {}, may-alias: {0,1,2}]   ;;  %s8205_s2 = inlined_call_operand.vmem [shape: bf16[2,6,64,128], index: 2, kind: input, shape index: {}, may-alias: {0,1,2}]   ;;  %s8206_s3 = inlined_call_operand.vmem [shape: bf16[27,128,128], index: 3, kind: input, shape index: {}]   ;;  %s8207_s4 = inlined_call_operand.vmem [shape: f32[1,128], index: 4, kind: input, shape index: {}]   ;;  %s8208_s5 = inlined_call_operand.vmem [shape: f32[2,4,64,128], index: 5, kind: output, shape index: {}]  }
   0x1   :  { %s6685_s20 = smov 0   ;;  %s6687_s21 = smov 0  }
   0x2   :  { %s6689_s22 = smov 0  }
   0x3 LB: > { %s24_s23 = sadd.s32 1, %s6639_s20  ;;  %s27_s24 = sadd.s32 1, %s6643_s21  ;;  %s6647_s22 = sphi %s6689_s22, %s15_s22   ;;  %s6643_s21 = sphi %s6687_s21, %s8212_s21   ;;  %s6639_s20 = sphi %s6685_s20, %s8211_s20   ;;  %s6635_s19 = sphi %s6683_s19, %s8210_s19   ;;  %s6631_s18 = sphi %s6681_s18, %s8209_s18  }
   0x4   : > { %p25_p0 = scmp.ge.s32.totalorder %s24_s23, 4  ;;  %p4546_p1 = scmp.ge.s32.totalorder %s6647_s22, 1 }
   0x5   : > { %p247_p2 = scmp.lt.s32.totalorder %s6647_s22, 9 }
   0x6   : > { %s8214_s23 = smov (%p25_p0, %s24_s23), 0  ;;  %s8216_s24 = smov (!%p25_p0, %s27_s24), %s6643_s21 }
   0x7   : > { %p248_p3 = pnand %p4546_p1, %p247_p2  ;;  %p29_p4 = scmp.ge.s32.totalorder %s8216_s24, 2 }
   0x8   : > { %v6348_v0 = vld [vmem:[%s8206_s3 + $0x40] sm:$0xff] (!%p248_p3)   ;;  %v6649_v1 = vmov (!%p248_p3), 0.0   ;;  %v6350_v3 = vld [vmem:[%s8206_s3 + $0x48] sm:$0xff] (!%p248_p3)   ;;  %vm6650_vm0 = vmmov (!%p248_p3), 0   ;;  %p303_p5 = scmp.lt.s32.totalorder (!%p248_p3), %s6635_s19, 1  ;;  %p305_p6 = scmp.lt.s32.totalorder (!%p248_p3), %s6631_s18, 5 }
   0x9   : > { %s8218_s24 = smov (%p29_p4, %s8216_s24), 0  ;;  %251 = sbr.rel (%p248_p3) target bundleno = 686 (0x2ae), region = 40 }
   0xa   : > { %5533 = vmatprep.subr.bf16.mxu0 (!%p248_p3), %v6649_v1  ;;  %5561 = vmatprep.subr.bf16.mxu1 (!%p248_p3), %v6649_v1  ;;  %v6349_v2 = vld [vmem:[%s8206_s3] sm:$0xff] (!%p248_p3)   ;;  %v6351_v4 = vld [vmem:[%s8206_s3 + $0x8] sm:$0xff] (!%p248_p3)   ;;  %v6352_v5 = vld [vmem:[%s8206_s3 + $0x50] sm:$0xff] (!%p248_p3)   ;;  %vm400_vm1 = vsmask.f32 (!%p248_p3), 7424  ;;  %vm664_vm2 = vcmask (!%p248_p3), 1046528  }
   0xb   : > { %5534 = vmatpush3.bf16.msra.mxu0 (!%p248_p3), %v6348_v0  ;;  %5549 = vmatprep.mubr.msk.bf16.mxu0 (!%p248_p3), %vm6650_vm0, %v6649_v1  ;;  %v6353_v6 = vld [vmem:[%s8206_s3 + $0x10] sm:$0xff] (!%p248_p3)   ;;  %v6354_v7 = vld [vmem:[%s8206_s3 + $0x58] sm:$0xff] (!%p248_p3)   ;;  %v6356_v9 = vld [vmem:[%s8206_s3 + $0x60] sm:$0xff] (!%p248_p3)   ;;  %s323_s6 = sadd.s32 (!%p248_p3), 2, %s6631_s18  ;;  %p336_p9 = scmp.lt.s32.totalorder (!%p248_p3), %s6631_s18, 3 }
   0xc   : > { %5562 = vmatpush3.bf16.msra.mxu1 (!%p248_p3), %v6349_v2  ;;  %5535 = vmatprep.subr.bf16.mxu0 (!%p248_p3), %v6649_v1  ;;  %v6355_v8 = vld [vmem:[%s8206_s3 + $0x18] sm:$0xff] (!%p248_p3)   ;;  %v6357_v10 = vld [vmem:[%s8206_s3 + $0x20] sm:$0xff] (!%p248_p3)   ;;  %v6358_v13 = vld [vmem:[%s8206_s3 + $0x68] sm:$0xff] (!%p248_p3)   ;;  %p326_p8 = scmp.lt.s32.totalorder (!%p248_p3), %s323_s6, 5 }
   0xd   : > { %5563 = vmatprep.subr.bf16.mxu1 (!%p248_p3), %v6649_v1  ;;  %5577 = vmatprep.mubr.msk.bf16.mxu1 (!%p248_p3), %vm6650_vm0, %v6649_v1  ;;  %v6359_v16 = vld [vmem:[%s8206_s3 + $0x28] sm:$0xff] (!%p248_p3)   ;;  %v6360_v18 = vld [vmem:[%s8206_s3 + $0x70] sm:$0xff] (!%p248_p3)   ;;  %v6362_v23 = vld [vmem:[%s8206_s3 + $0x78] sm:$0xff] (!%p248_p3)  }
   0xe   : > { %v6361_v22 = vld [vmem:[%s8206_s3 + $0x30] sm:$0xff] (!%p248_p3)   ;;  %v6363_v24 = vld [vmem:[%s8206_s3 + $0x38] sm:$0xff] (!%p248_p3)   ;;  %v6366_v30 = vld [vmem:[%s8206_s3 + $0x80] sm:$0xff] (!%p248_p3)  }
   0xf   : > { %5536 = vmatpush3.bf16.msra.mxu0 (!%p248_p3), %v6350_v3  ;;  %v6367_v34 = vld [vmem:[%s8206_s3 + $0xc0] sm:$0xff] (!%p248_p3)   ;;  %v6368_v35 = vld [vmem:[%s8206_s3 + $0x88] sm:$0xff] (!%p248_p3)   ;;  %v6370_v39 = vld [vmem:[%s8206_s3 + $0x90] sm:$0xff] (!%p248_p3)  }
  0x10   : > { %s8220_s19 = smov (!%p303_p5, %s6635_s19), 1  ;;  %5564 = vmatpush3.bf16.msra.mxu1 %v6351_v4  ;;  %5537 = vmatprep.subr.bf16.mxu0 %v6649_v1  ;;  %v6369_v38 = vld [vmem:[%s8206_s3 + $0xc8] sm:$0xff]   ;;  %v6371_v41 = vld [vmem:[%s8206_s3 + $0xd0] sm:$0xff]   ;;  %v6372_v42 = vld [vmem:[%s8206_s3 + $0x98] sm:$0xff]   ;;  %s8224_s6 = smov (!%p326_p8, %s323_s6), 5 }
  0x11   : > { %s306_s8 = scalar_select %p305_p6, %s6631_s18, 5  ;;  %5565 = vmatprep.subr.bf16.mxu1 %v6649_v1  ;;  %v6373_v44 = vld [vmem:[%s8206_s3 + $0xd8] sm:$0xff]   ;;  %v6375_v47 = vld [vmem:[%s8206_s3 + $0xa0] sm:$0xff]   ;;  %v6377_v50 = vld [vmem:[%s8206_s3 + $0xa8] sm:$0xff]  }
  0x12   : > { %s6745_s11 = smul.u32 48, %s8220_s19  ;;  %v6376_v49 = vld [vmem:[%s8206_s3 + $0xe0] sm:$0xff]   ;;  %v6378_v51 = vld [vmem:[%s8206_s3 + $0xe8] sm:$0xff]   ;;  %v6380_v53 = vld [vmem:[%s8206_s3 + $0xb0] sm:$0xff]   ;;  %s4551_s13 = sshll.u32 %s8224_s6, 3 }
  0x13   : > { %s4547_s14 = sshll.u32 %s306_s8, 3  ;;  %5538 = vmatpush3.bf16.msra.mxu0 %v6352_v5  ;;  %v6381_v55 = vld [vmem:[%s8206_s3 + $0xf0] sm:$0xff]   ;;  %v6382_v56 = vld [vmem:[%s8206_s3 + $0xb8] sm:$0xff]   ;;  %v6386_v0 = vld [vmem:[%s8206_s3 + $0x100] sm:$0xff]  }
  0x14   : > { %s309_s15 = sadd.s32 %s6745_s11, %s4547_s14  ;;  %5566 = vmatpush3.bf16.msra.mxu1 %v6353_v6  ;;  %5539 = vmatprep.subr.bf16.mxu0 %v6649_v1  ;;  %v6383_v59 = vld [vmem:[%s8206_s3 + $0xf8] sm:$0xff]   ;;  %v6387_v2 = vld [vmem:[%s8206_s3 + $0x140] sm:$0xff]   ;;  %v6388_v3 = vld [vmem:[%s8206_s3 + $0x108] sm:$0xff]   ;;  %s330_s14 = sadd.s32 %s6745_s11, %s4551_s13 }
  0x15   : > { %s4548_s25 = sshll.u32 %s309_s15, 2  ;;  %5567 = vmatprep.subr.bf16.mxu1 %v6649_v1  ;;  %v6389_v5 = vld [vmem:[%s8206_s3 + $0x148] sm:$0xff]   ;;  %s312_s15 = sadd.s32 1, %s6631_s18 }
  0x16   : > { %s6764_s30 = scalar_lea.vmem %s8203_s0, %s4548_s25  ;;  %p315_p7 = scmp.lt.s32.totalorder %s312_s15, 5 }
  0x17   : > { %5540 = vmatpush3.bf16.msra.mxu0 %v6354_v7  ;;  %v345_v11 = vld [vmem:[%s6764_s30] sm:$0xf]  ;;  %v6776_v12 = vld [vmem:[%s6764_s30 + $0x4] sm:$0xf]  ;;  %v6783_v15 = vld [vmem:[%s6764_s30 + $0x8] sm:$0xff]   ;;  %s4552_s16 = sshll.u32 %s330_s14, 2 }
  0x18   : > { %5568 = vmatpush3.bf16.msra.mxu1 %v6355_v8  ;;  %5541 = vmatprep.subr.bf16.mxu0 %v6649_v1  ;;  %v4572_v14 = vcombine.low %v345_v11, %v6776_v12  ;;  %v409_v21 = vshll.u32 %v6783_v15, 16  ;;  %v349_v27 = vld [vmem:[%s6764_s30 + $0x10] sm:$0xf]  ;;  %v367_v28 = vld [vmem:[%s6764_s30 + $0x14] sm:$0xf]  ;;  %v413_v32 = vshrl.u32 %v6783_v15, 16  ;;  %s7290_s26 = scalar_lea.vmem %s8205_s2, %s4552_s16 }
  0x19   : > { %5569 = vmatprep.subr.bf16.mxu1 %v6649_v1  ;;  %v6808_v29 = vcombine.low %v349_v27, %v367_v28  ;;  %v350_v45 = vld [vmem:[%s6764_s30 + $0x14] sm:$0x7]  ;;  %v643_v52 = vld [vmem:[%s6764_s30] sm:$0xe]  ;;  %v666_v57 = vrot.slane %v6783_v15, 1  ;;  %v6933_v8 = vld [vmem:[%s6764_s30 + $0xc] sm:$0xff]  }
  0x1a   : > { %v404_v17 = vshll.u32 %v4572_v14, 16  ;;  %v402_v19 = vshrl.u32 %v4572_v14, 16  ;;  %v411_v26 = vrot.slane %v409_v21, 1  ;;  %v4583_v48 = vcombine.low %v349_v27, %v350_v45  ;;  %v784_v58 = vld [vmem:[%s6764_s30 + $0x4] sm:$0xf]  ;;  %v6390_v7 = vld [vmem:[%s8206_s3 + $0x110] sm:$0xff]  }
  0x1b   : > { %5542 = vmatpush3.bf16.msra.mxu0 %v6356_v9  ;;  %v417_v33 = vshll.u32 %v6808_v29, 16  ;;  %v421_v43 = vshrl.u32 %v6808_v29, 16  ;;  %v4608_v54 = vcombine.low %v643_v52, %v6776_v12  ;;  %v6898_v61 = vld [vmem:[%s6764_s30 + $0x8] sm:$0xf]  ;;  %v668_v4 = vrot.slane %v6808_v29, 1  ;;  %v6391_v9 = vld [vmem:[%s8206_s3 + $0x150] sm:$0xff]  }
  0x1c   : > { %5570 = vmatpush3.bf16.msra.mxu1 %v6357_v10  ;;  %5543 = vmatprep.subr.bf16.mxu0 %v6649_v1  ;;  %v406_v20 = vrot.slane %v404_v17, 1  ;;  %v415_v36 = vor.u32 %v413_v32, %v411_v26  ;;  %v6903_v63 = vcombine.low %v784_v58, %v6898_v61  ;;  %v6393_v10 = vld [vmem:[%s8206_s3 + $0x118] sm:$0xff]   ;;  %v788_v12 = vld [vmem:[%s6764_s30 + $0x14] sm:$0xf]  ;;  %s8222_s15 = smov (!%p315_p7, %s312_s15), 5  ;;  %v1116_v32 = vrot.slane %v6933_v8, 1 }
  0x1d   : > { %5571 = vmatprep.subr.bf16.mxu1 %v6649_v1  ;;  %v419_v37 = vrot.slane %v417_v33, 1  ;;  %v665_v60 = vrot.slane %v4608_v54, 1  ;;  %v669_v6 = vsel %vm664_vm2, %v666_v57, %v668_v4  ;;  %v6394_v11 = vld [vmem:[%s8206_s3 + $0x158] sm:$0xff]   ;;  %s4549_s12 = sshll.u32 %s8222_s15, 3  ;;  %v7054_v54 = vld [vmem:[%s6764_s30 + $0xc] sm:$0xf] }
  0x1e   : > { %v407_v25 = vor.u32 %v406_v20, %v402_v19  ;;  %v960_v17 = vshll.u32 %v6903_v63, 16  ;;  %v958_v19 = vshrl.u32 %v6903_v63, 16  ;;  %v6400_v20 = vld [vmem:[%s8206_s3 + $0x168] sm:$0xff]   ;;  %s319_s28 = sadd.s32 %s6745_s11, %s4549_s12  ;;  %v6403_v29 = vld [vmem:[%s8206_s3 + $0x138] sm:$0xff]   ;;  %v6415_v58 = vld [vmem:[%s8206_s3 + $0x1e0] sm:$0xff]   ;;  %s4554_s12 = sshll.u32 %s8220_s19, 5 }
  0x1f   : > { %5544 = vmatpush3.bf16.msra.mxu0 %v6358_v13  ;;  %v420_v40 = vsel %vm400_vm1, %v415_v36, %v419_v37  ;;  %v423_v46 = vor.u32 %v421_v43, %v419_v37  ;;  %v667_v62 = vsel %vm664_vm2, %v665_v60, %v666_v57  ;;  %v789_v13 = vld [vmem:[%s6764_s30 + $0x18] sm:$0x7]  ;;  %s4550_s9 = sshll.u32 %s319_s28, 2  ;;  %v6406_v37 = vld [vmem:[%s8206_s3 + $0x180] sm:$0xff]   ;;  %v7074_v60 = vld [vmem:[%s6764_s30 + $0x10] sm:$0xff]   ;;  %s8226_s18 = smov (!%p336_p9, %s6631_s18), 3 }
  0x20   : > { %5572 = vmatpush3.bf16.msra.mxu1 %v6359_v16  ;;  %5545 = vmatprep.subr.bf16.mxu0 %v6649_v1  ;;  %v412_v31 = vsel %vm400_vm1, %v407_v25, %v411_v26  ;;  %v6396_v16 = vld [vmem:[%s8206_s3 + $0x160] sm:$0xff]   ;;  %v962_v21 = vrot.slane %v960_v17, 1  ;;  %v965_v25 = vshll.u32 %v6933_v8, 16  ;;  %v6402_v26 = vld [vmem:[%s8206_s3 + $0x170] sm:$0xff]   ;;  %v6404_v33 = vld [vmem:[%s8206_s3 + $0x178] sm:$0xff]   ;;  %s7018_s15 = scalar_lea.vmem %s8204_s1, %s4550_s9  ;;  %s4553_s13 = sshll.u32 %s8226_s18, 3 }
  0x21   : > { %5573 = vmatprep.subr.bf16.mxu1 %v6649_v1  ;;  %v6426_v17 = vld [vmem:[%s8206_s3 + $0x208] sm:$0xff]   ;;  %s340_s14 = sadd.s32 %s4554_s12, %s4553_s13 }
  0x22   : > { %s4555_s16 = sshll.u32 %s340_s14, 3 }
  0x23   : > { %5546 = vmatpush3.bf16.msra.mxu0 %v6360_v18  ;;  %v6399_v18 = vld [vmem:[%s8206_s3 + $0x128] sm:$0xff]  }
  0x24   : > { %5574 = vmatpush3.bf16.msra.mxu1 %v6361_v22  ;;  %5547 = vmatprep.subr.bf16.mxu0 %v6649_v1  ;;  %v1094_v22 = vld [vmem:[%s6764_s30 + $0x4] sm:$0xe] }
  0x25   : > { %5575 = vmatprep.subr.bf16.mxu1 %v6649_v1  ;;  %v4685_v27 = vcombine.low %v1094_v22, %v6898_v61  ;;  %v6429_v22 = vld [vmem:[%s8206_s3 + $0x250] sm:$0xff]  }
  0x27   : > { %5548 = vmatpush3.bf16.msra.mxu0 %v6362_v23  ;;  %v936_v23 = vld [vmem:[%s6764_s30 + $0x18] sm:$0xf] }
  0x28   : > { %5576 = vmatpush3.bf16.msra.mxu1 %v6363_v24  ;;  %5589 = vmatprep.subr.bf16.mxu0 %v6649_v1  ;;  %v6401_v24 = vld [vmem:[%s8206_s3 + $0x130] sm:$0xff]   ;;  %v6993_v28 = vcombine.low %v788_v12, %v936_v23 }
  0x29   : > { %5617 = vmatprep.subr.bf16.mxu1 %v6649_v1 }
  0x2a   : > { %5550 = vmatmul.mubr.bf16.vlgmr.msra.gmra.mrb[0].mxu0 %v412_v31  ;;  %v967_v31 = vrot.slane %v965_v25, 1  ;;  %v1118_v45 = vrot.slane %v6993_v28, 1  ;;  %v977_v52 = vshrl.u32 %v6993_v28, 16  ;;  %v6432_v25 = vld [vmem:[%s8206_s3 + $0x258] sm:$0xff]  }
  0x2b   : > { %5578 = vmatmul.mubr.bf16.vlgmr.msra.gmra.mrb[0].mxu1 %v4572_v14  ;;  %5590 = vmatpush3.bf16.msra.mxu0 %v6366_v30  ;;  %v6395_v14 = vld [vmem:[%s8206_s3 + $0x120] sm:$0xff]   ;;  %v963_v30 = vor.u32 %v962_v21, %v958_v19  ;;  %v6428_v21 = vld [vmem:[%s8206_s3 + $0x210] sm:$0xff]  }
  0x2c   : > { %5618 = vmatpush3.bf16.msra.mxu1 %v6367_v34  ;;  %5591 = vmatprep.subr.bf16.mxu0 %v6649_v1  ;;  %v1115_v34 = vrot.slane %v4685_v27, 1 }
  0x2d   : > { %5619 = vmatprep.subr.bf16.mxu1 %v6649_v1  ;;  %5581 = vmatprep.mubr.msk.bf16.mxu1 %vm6650_vm0, %v6649_v1  ;;  %v968_v36 = vsel %vm400_vm1, %v963_v30, %v967_v31 }
  0x2e   : > { %5553 = vmatprep.mubr.msk.bf16.mxu0 %vm6650_vm0, %v6649_v1 }
  0x2f   : > { %5592 = vmatpush3.bf16.msra.mxu0 %v6368_v35  ;;  %v969_v35 = vshrl.u32 %v6933_v8, 16 }
  0x30   : > { %5620 = vmatpush3.bf16.msra.mxu1 %v6369_v38  ;;  %5593 = vmatprep.subr.bf16.mxu0 %v6649_v1  ;;  %v973_v38 = vshll.u32 %v6993_v28, 16 }
  0x31   : > { %5621 = vmatprep.subr.bf16.mxu1 %v6649_v1 }
  0x32   : > { %5554 = vmatmul.mubr.bf16.gmra.mrb[4].mxu0 %v420_v40  ;;  %v6407_v40 = vld [vmem:[%s8206_s3 + $0x1c0] sm:$0xff]   ;;  %v975_v43 = vrot.slane %v973_v38, 1  ;;  %v6440_v38 = vld [vmem:[%s8206_s3 + $0x238] sm:$0xff]  }
  0x33   : > { %5594 = vmatpush3.bf16.msra.mxu0 %v6370_v39  ;;  %5582 = vmatmul.mubr.bf16.gmra.mrb[4].mxu1 %v6783_v15  ;;  %v4635_v15 = vcombine.low %v788_v12, %v789_v13  ;;  %v1117_v39 = vsel %vm664_vm2, %v1115_v34, %v1116_v32  ;;  %v6424_v12 = vld [vmem:[%s8206_s3 + $0x200] sm:$0xff]   ;;  %v1544_v34 = vld [vmem:[%s6764_s30 + $0x8] sm:$0xe] }
  0x34   : > { %5622 = vmatpush3.bf16.msra.mxu1 %v6371_v41  ;;  %5595 = vmatprep.subr.bf16.mxu0 %v6649_v1  ;;  %v6408_v41 = vld [vmem:[%s8206_s3 + $0x188] sm:$0xff]   ;;  %v6425_v13 = vld [vmem:[%s8206_s3 + $0x240] sm:$0xff]  }
  0x35   : > { %5623 = vmatprep.subr.bf16.mxu1 %v6649_v1  ;;  %5585 = vmatprep.mubr.msk.bf16.mxu1 %vm6650_vm0, %v6649_v1 }
  0x36   : > { %5557 = vmatprep.mubr.msk.bf16.mxu0 %vm6650_vm0, %v6649_v1 }
  0x37   : > { %5596 = vmatpush3.bf16.msra.mxu0 %v6372_v42  ;;  %v971_v42 = vor.u32 %v969_v35, %v967_v31  ;;  %v6435_v31 = vld [vmem:[%s8206_s3 + $0x260] sm:$0xff]   ;;  %v6438_v35 = vld [vmem:[%s8206_s3 + $0x230] sm:$0xff]  }
  0x38   : > { %5624 = vmatpush3.bf16.msra.mxu1 %v6373_v44  ;;  %5597 = vmatprep.subr.bf16.mxu0 %v6649_v1  ;;  %v6409_v44 = vld [vmem:[%s8206_s3 + $0x1c8] sm:$0xff]  }
  0x39   : > { %5625 = vmatprep.subr.bf16.mxu1 %v6649_v1 }
  0x3a   : > { %5558 = vmatmul.mubr.bf16.gmra.mrb[8].mxu0 %v423_v46  ;;  %v976_v46 = vsel %vm400_vm1, %v971_v42, %v975_v43 }
  0x3b   : > { %5598 = vmatpush3.bf16.msra.mxu0 %v6375_v47  ;;  %5586 = vmatmul.mubr.bf16.gmra.mrb[8].mxu1 %v4583_v48  ;;  %v6410_v47 = vld [vmem:[%s8206_s3 + $0x190] sm:$0xff]  }
  0x3c   : > { %5626 = vmatpush3.bf16.msra.mxu1 %v6376_v49  ;;  %5599 = vmatprep.subr.bf16.mxu0 %v6649_v1  ;;  %v6411_v48 = vld [vmem:[%s8206_s3 + $0x1d0] sm:$0xff]   ;;  %v1119_v49 = vsel %vm664_vm2, %v1116_v32, %v1118_v45  ;;  %v6436_v32 = vld [vmem:[%s8206_s3 + $0x228] sm:$0xff]  }
  0x3d   : > { %5627 = vmatprep.subr.bf16.mxu1 %v6649_v1  ;;  %5605 = vmatprep.mubr.msk.bf16.mxu0 %vm6650_vm0, %v6649_v1 }
  0x3e   : > { %5633 = vmatprep.mubr.msk.bf16.mxu1 %vm6650_vm0, %v6649_v1 }
  0x3f   : > { %5600 = vmatpush3.bf16.msra.mxu0 %v6377_v50  ;;  %v6412_v50 = vld [vmem:[%s8206_s3 + $0x198] sm:$0xff]  }
  0x40   : > { %5628 = vmatpush3.bf16.msra.mxu1 %v6378_v51  ;;  %5601 = vmatprep.subr.bf16.mxu0 %v6649_v1  ;;  %v6413_v51 = vld [vmem:[%s8206_s3 + $0x1d8] sm:$0xff]  }
  0x41   : > { %5629 = vmatprep.subr.bf16.mxu1 %v6649_v1 }
  0x43   : > { %5602 = vmatpush3.bf16.msra.mxu0 %v6380_v53  ;;  %v1234_v53 = vld [vmem:[%s6764_s30 + $0x8] sm:$0xf] }
  0x44   : > { %5630 = vmatpush3.bf16.msra.mxu1 %v6381_v55  ;;  %5603 = vmatprep.subr.bf16.mxu0 %v6649_v1  ;;  %v979_v55 = vor.u32 %v977_v52, %v975_v43  ;;  %v4710_v57 = vcombine.low %v1234_v53, %v7054_v54  ;;  %v7193_v43 = vld [vmem:[%s7018_s15 + $0x4] sm:$0xf]  ;;  %v7227_v53 = vld [vmem:[%s7018_s15 + $0x8] sm:$0xff]  }
  0x45   : > { %5631 = vmatprep.subr.bf16.mxu1 %v6649_v1 }
  0x46   : > { %v1410_v61 = vshll.u32 %v4710_v57, 16 }
  0x47   : > { %5604 = vmatpush3.bf16.msra.mxu0 %v6382_v56  ;;  %v6414_v56 = vld [vmem:[%s8206_s3 + $0x1a0] sm:$0xff]  }
  0x48   : > { %5632 = vmatpush3.bf16.msra.mxu1 %v6383_v59  ;;  %5645 = vmatprep.subr.bf16.mxu0 %v6649_v1  ;;  %v6416_v59 = vld [vmem:[%s8206_s3 + $0x1a8] sm:$0xff]  }
  0x49   : > { %5673 = vmatprep.subr.bf16.mxu1 %v6649_v1 }
  0x4a   : > { %5606 = vmatmul.mubr.bf16.vlgmr.msra.gmra.mrb[12].mxu0 %v667_v62  ;;  %v6417_v62 = vld [vmem:[%s8206_s3 + $0x1e8] sm:$0xff]  }
  0x4b   : > { %5634 = vmatmul.mubr.bf16.vlgmr.msra.gmra.mrb[12].mxu1 %v6903_v63  ;;  %5646 = vmatpush3.bf16.msra.mxu0 %v6386_v0  ;;  %v6418_v63 = vld [vmem:[%s8206_s3 + $0x1b0] sm:$0xff]  }
  0x4c   : > { %5674 = vmatpush3.bf16.msra.mxu1 %v6387_v2  ;;  %5647 = vmatprep.subr.bf16.mxu0 %v6649_v1  ;;  %v6419_v0 = vld [vmem:[%s8206_s3 + $0x1f0] sm:$0xff]   ;;  %v1408_v2 = vshrl.u32 %v4710_v57, 16 }
  0x4d   : > { %5675 = vmatprep.subr.bf16.mxu1 %v6649_v1  ;;  %5609 = vmatprep.mubr.msk.bf16.mxu0 %vm6650_vm0, %v6649_v1 }
  0x4e   : > { %5637 = vmatprep.mubr.msk.bf16.mxu1 %vm6650_vm0, %v6649_v1 }
  0x4f   : > { %5648 = vmatpush3.bf16.msra.mxu0 %v6388_v3  ;;  %v1412_v3 = vrot.slane %v1410_v61, 1 }
  0x50   : > { %5676 = vmatpush3.bf16.msra.mxu1 %v6389_v5  ;;  %5649 = vmatprep.subr.bf16.mxu0 %v6649_v1  ;;  %v1238_v5 = vld [vmem:[%s6764_s30 + $0x18] sm:$0xf] }
  0x51   : > { %5677 = vmatprep.subr.bf16.mxu1 %v6649_v1 }
  0x52   : > { %5610 = vmatmul.mubr.bf16.gmra.mrb[16].mxu0 %v669_v6  ;;  %v1386_v6 = vld [vmem:[%s6764_s30 + $0x1c] sm:$0xf] }
  0x53   : > { %5650 = vmatpush3.bf16.msra.mxu0 %v6390_v7  ;;  %5638 = vmatmul.mubr.bf16.gmra.mrb[16].mxu1 %v6933_v8  ;;  %v6420_v7 = vld [vmem:[%s8206_s3 + $0x1b8] sm:$0xff]  }
  0x54   : > { %5678 = vmatpush3.bf16.msra.mxu1 %v6391_v9  ;;  %5651 = vmatprep.subr.bf16.mxu0 %v6649_v1  ;;  %v6421_v8 = vld [vmem:[%s8206_s3 + $0x1f8] sm:$0xff]   ;;  %v1413_v9 = vor.u32 %v1412_v3, %v1408_v2  ;;  %v6458_v2 = vld [vmem:[%s8206_s3 + $0x2e8] sm:$0xff]   ;;  %v1994_v3 = vld [vmem:[%s7018_s15] sm:$0xe] }
  0x55   : > { %5679 = vmatprep.subr.bf16.mxu1 %v6649_v1  ;;  %5613 = vmatprep.mubr.msk.bf16.mxu0 %vm6650_vm0, %v6649_v1 }
  0x56   : > { %5641 = vmatprep.mubr.msk.bf16.mxu1 %vm6650_vm0, %v6649_v1 }
  0x57   : > { %5652 = vmatpush3.bf16.msra.mxu0 %v6393_v10 }
  0x58   : > { %5680 = vmatpush3.bf16.msra.mxu1 %v6394_v11  ;;  %5653 = vmatprep.subr.bf16.mxu0 %v6649_v1  ;;  %v7103_v11 = vcombine.low %v1238_v5, %v1386_v6  ;;  %v6459_v6 = vld [vmem:[%s8206_s3 + $0x2b0] sm:$0xff]  }
  0x59   : > { %5681 = vmatprep.subr.bf16.mxu1 %v6649_v1 }
  0x5a   : > { %5614 = vmatmul.mubr.bf16.gmra.mrb[20].mxu0 %v668_v4  ;;  %v1415_v4 = vshll.u32 %v7074_v60, 16  ;;  %v1427_v27 = vshrl.u32 %v7103_v11, 16 }
  0x5b   : > { %5654 = vmatpush3.bf16.msra.mxu0 %v6395_v14  ;;  %5642 = vmatmul.mubr.bf16.gmra.mrb[20].mxu1 %v4635_v15  ;;  %v1419_v15 = vshrl.u32 %v7074_v60, 16 }
  0x5c   : > { %5682 = vmatpush3.bf16.msra.mxu1 %v6396_v16  ;;  %5655 = vmatprep.subr.bf16.mxu0 %v6649_v1  ;;  %v1417_v10 = vrot.slane %v1415_v4, 1  ;;  %v1423_v16 = vshll.u32 %v7103_v11, 16 }
  0x5d   : > { %5683 = vmatprep.subr.bf16.mxu1 %v6649_v1  ;;  %5661 = vmatprep.mubr.msk.bf16.mxu0 %vm6650_vm0, %v6649_v1 }
  0x5e   : > { %5689 = vmatprep.mubr.msk.bf16.mxu1 %vm6650_vm0, %v6649_v1  ;;  %v1418_v14 = vsel %vm400_vm1, %v1413_v9, %v1417_v10  ;;  %v1421_v19 = vor.u32 %v1419_v15, %v1417_v10  ;;  %v4839_v9 = vcombine.low %v1994_v3, %v7193_v43  ;;  %v6462_v15 = vld [vmem:[%s8206_s3 + $0x2f8] sm:$0xff]   ;;  %v6486_v3 = vld [vmem:[%s8206_s3 + $0x390] sm:$0xff]  }
  0x5f   : > { %5656 = vmatpush3.bf16.msra.mxu0 %v6399_v18  ;;  %v6427_v18 = vld [vmem:[%s8206_s3 + $0x248] sm:$0xff]  }
  0x60   : > { %5684 = vmatpush3.bf16.msra.mxu1 %v6400_v20  ;;  %5657 = vmatprep.subr.bf16.mxu0 %v6649_v1  ;;  %v1425_v20 = vrot.slane %v1423_v16, 1  ;;  %v2015_v16 = vrot.slane %v4839_v9, 1  ;;  %v6490_v9 = vld [vmem:[%s8206_s3 + $0x3d8] sm:$0xff]  }
  0x61   : > { %5685 = vmatprep.subr.bf16.mxu1 %v6649_v1 }
  0x62   : > { %v1426_v23 = vsel %vm400_vm1, %v1421_v19, %v1425_v20  ;;  %v1429_v30 = vor.u32 %v1427_v27, %v1425_v20 }
  0x63   : > { %5658 = vmatpush3.bf16.msra.mxu0 %v6401_v24  ;;  %v6431_v24 = vld [vmem:[%s8206_s3 + $0x218] sm:$0xff]  }
  0x64   : > { %5686 = vmatpush3.bf16.msra.mxu1 %v6402_v26  ;;  %5659 = vmatprep.subr.bf16.mxu0 %v6649_v1  ;;  %v1239_v26 = vld [vmem:[%s6764_s30 + $0x1c] sm:$0x7] }
  0x65   : > { %5687 = vmatprep.subr.bf16.mxu1 %v6649_v1  ;;  %v4712_v28 = vcombine.low %v1238_v5, %v1239_v26  ;;  %v1836_v5 = vld [vmem:[%s7018_s15 + $0x14] sm:$0xf] }
  0x67   : > { %5660 = vmatpush3.bf16.msra.mxu0 %v6403_v29  ;;  %v6434_v29 = vld [vmem:[%s8206_s3 + $0x220] sm:$0xff]  }
  0x68   : > { %5688 = vmatpush3.bf16.msra.mxu1 %v6404_v33  ;;  %5701 = vmatprep.subr.bf16.mxu0 %v6649_v1  ;;  %v6437_v33 = vld [vmem:[%s8206_s3 + $0x268] sm:$0xff]  }
  0x69   : > { %5729 = vmatprep.subr.bf16.mxu1 %v6649_v1 }
  0x6a   : > { %5662 = vmatmul.mubr.bf16.vlgmr.msra.gmra.mrb[24].mxu0 %v968_v36  ;;  %v4762_v36 = vcombine.low %v1544_v34, %v7054_v54  ;;  %v6449_v54 = vld [vmem:[%s8206_s3 + $0x2d0] sm:$0xff]   ;;  %v6470_v34 = vld [vmem:[%s8206_s3 + $0x318] sm:$0xff]  }
  0x6b   : > { %5690 = vmatmul.mubr.bf16.vlgmr.msra.gmra.mrb[24].mxu1 %v1117_v39  ;;  %5702 = vmatpush3.bf16.msra.mxu0 %v6406_v37  ;;  %v6439_v37 = vld [vmem:[%s8206_s3 + $0x270] sm:$0xff]   ;;  %v1566_v39 = vrot.slane %v7074_v60, 1 }
  0x6c   : > { %5730 = vmatpush3.bf16.msra.mxu1 %v6407_v40  ;;  %5703 = vmatprep.subr.bf16.mxu0 %v6649_v1  ;;  %v1684_v40 = vld [vmem:[%s7018_s15] sm:$0xf]  ;;  %v1565_v42 = vrot.slane %v4762_v36, 1 }
  0x6d   : > { %5731 = vmatprep.subr.bf16.mxu1 %v6649_v1  ;;  %5665 = vmatprep.mubr.msk.bf16.mxu0 %vm6650_vm0, %v6649_v1 }
  0x6e   : > { %5693 = vmatprep.mubr.msk.bf16.mxu1 %vm6650_vm0, %v6649_v1 }
  0x6f   : > { %5704 = vmatpush3.bf16.msra.mxu0 %v6408_v41  ;;  %v6441_v41 = vld [vmem:[%s8206_s3 + $0x278] sm:$0xff]  }
  0x70   : > { %5732 = vmatpush3.bf16.msra.mxu1 %v6409_v44  ;;  %5705 = vmatprep.subr.bf16.mxu0 %v6649_v1  ;;  %v1567_v44 = vsel %vm664_vm2, %v1565_v42, %v1566_v39  ;;  %v6473_v42 = vld [vmem:[%s8206_s3 + $0x360] sm:$0xff]  }
  0x71   : > { %5733 = vmatprep.subr.bf16.mxu1 %v6649_v1 }
  0x72   : > { %5666 = vmatmul.mubr.bf16.gmra.mrb[28].mxu0 %v976_v46  ;;  %v6444_v46 = vld [vmem:[%s8206_s3 + $0x280] sm:$0xff]  }
  0x73   : > { %5706 = vmatpush3.bf16.msra.mxu0 %v6410_v47  ;;  %5694 = vmatmul.mubr.bf16.gmra.mrb[28].mxu1 %v1119_v49  ;;  %v6445_v47 = vld [vmem:[%s8206_s3 + $0x2c0] sm:$0xff]   ;;  %v1568_v49 = vrot.slane %v7103_v11, 1  ;;  %v6461_v11 = vld [vmem:[%s8206_s3 + $0x2b8] sm:$0xff]  }
  0x74   : > { %5734 = vmatpush3.bf16.msra.mxu1 %v6411_v48  ;;  %5707 = vmatprep.subr.bf16.mxu0 %v6649_v1  ;;  %v6446_v48 = vld [vmem:[%s8206_s3 + $0x288] sm:$0xff]  }
  0x75   : > { %5735 = vmatprep.subr.bf16.mxu1 %v6649_v1  ;;  %5669 = vmatprep.mubr.msk.bf16.mxu0 %vm6650_vm0, %v6649_v1  ;;  %v1569_v52 = vsel %vm664_vm2, %v1566_v39, %v1568_v49 }
  0x76   : > { %5697 = vmatprep.mubr.msk.bf16.mxu1 %vm6650_vm0, %v6649_v1 }
  0x77   : > { %5708 = vmatpush3.bf16.msra.mxu0 %v6412_v50  ;;  %v6447_v50 = vld [vmem:[%s8206_s3 + $0x2c8] sm:$0xff]  }
  0x78   : > { %5736 = vmatpush3.bf16.msra.mxu1 %v6413_v51  ;;  %5709 = vmatprep.subr.bf16.mxu0 %v6649_v1  ;;  %v6448_v51 = vld [vmem:[%s8206_s3 + $0x290] sm:$0xff]  }
  0x79   : > { %5737 = vmatprep.subr.bf16.mxu1 %v6649_v1 }
  0x7a   : > { %5670 = vmatmul.mubr.bf16.gmra.mrb[32].mxu0 %v979_v55  ;;  %v6451_v55 = vld [vmem:[%s8206_s3 + $0x298] sm:$0xff]  }
  0x7b   : > { %5710 = vmatpush3.bf16.msra.mxu0 %v6414_v56  ;;  %5698 = vmatmul.mubr.bf16.gmra.mrb[32].mxu1 %v1118_v45  ;;  %v7198_v45 = vcombine.low %v1684_v40, %v7193_v43  ;;  %v6452_v56 = vld [vmem:[%s8206_s3 + $0x2d8] sm:$0xff]   ;;  %v7358_v40 = vld [vmem:[%s7018_s15 + $0xc] sm:$0xff]  }
  0x7c   : > { %5738 = vmatpush3.bf16.msra.mxu1 %v6415_v58  ;;  %5711 = vmatprep.subr.bf16.mxu0 %v6649_v1  ;;  %v1689_v58 = vld [vmem:[%s7018_s15 + $0x14] sm:$0x7]  ;;  %v6474_v43 = vld [vmem:[%s8206_s3 + $0x328] sm:$0xff]  }
  0x7d   : > { %5739 = vmatprep.subr.bf16.mxu1 %v6649_v1  ;;  %5717 = vmatprep.mubr.msk.bf16.mxu0 %vm6650_vm0, %v6649_v1 }
  0x7e   : > { %5745 = vmatprep.mubr.msk.bf16.mxu1 %vm6650_vm0, %v6649_v1 }
  0x7f   : > { %5712 = vmatpush3.bf16.msra.mxu0 %v6416_v59  ;;  %v6453_v59 = vld [vmem:[%s8206_s3 + $0x2a0] sm:$0xff]  }
  0x80   : > { %5740 = vmatpush3.bf16.msra.mxu1 %v6417_v62  ;;  %5713 = vmatprep.subr.bf16.mxu0 %v6649_v1  ;;  %v1860_v62 = vshll.u32 %v7198_v45, 16 }
  0x81   : > { %5741 = vmatprep.subr.bf16.mxu1 %v6649_v1 }
  0x82   : > { %v1862_v4 = vrot.slane %v1860_v62, 1  ;;  %v6484_v62 = vld [vmem:[%s8206_s3 + $0x388] sm:$0xff]  }
  0x83   : > { %5714 = vmatpush3.bf16.msra.mxu0 %v6418_v63  ;;  %v6457_v63 = vld [vmem:[%s8206_s3 + $0x2a8] sm:$0xff]  }
  0x84   : > { %5742 = vmatpush3.bf16.msra.mxu1 %v6419_v0  ;;  %5715 = vmatprep.subr.bf16.mxu0 %v6649_v1  ;;  %v1858_v0 = vshrl.u32 %v7198_v45, 16 }
  0x85   : > { %5743 = vmatprep.subr.bf16.mxu1 %v6649_v1 }
  0x87   : > { %5716 = vmatpush3.bf16.msra.mxu0 %v6420_v7  ;;  %v1865_v7 = vshll.u32 %v7227_v53, 16 }
  0x88   : > { %5744 = vmatpush3.bf16.msra.mxu1 %v6421_v8  ;;  %5757 = vmatprep.subr.bf16.mxu0 %v6649_v1  ;;  %v6460_v8 = vld [vmem:[%s8206_s3 + $0x2f0] sm:$0xff]  }
  0x89   : > { %5785 = vmatprep.subr.bf16.mxu1 %v6649_v1 }
  0x8a   : > { %5718 = vmatmul.mubr.bf16.vlgmr.msra.gmra.mrb[36].mxu0 %v4710_v57  ;;  %v1688_v57 = vld [vmem:[%s7018_s15 + $0x10] sm:$0xf] }
  0x8b   : > { %5746 = vmatmul.mubr.bf16.vlgmr.msra.gmra.mrb[36].mxu1 %v1418_v14  ;;  %5758 = vmatpush3.bf16.msra.mxu0 %v6424_v12  ;;  %v4789_v61 = vcombine.low %v1688_v57, %v1689_v58  ;;  %v7285_v10 = vcombine.low %v1688_v57, %v1836_v5  ;;  %v1863_v12 = vor.u32 %v1862_v4, %v1858_v0  ;;  %v2016_v14 = vrot.slane %v7227_v53, 1  ;;  %v6482_v57 = vld [vmem:[%s8206_s3 + $0x380] sm:$0xff]   ;;  %v6487_v4 = vld [vmem:[%s8206_s3 + $0x3d0] sm:$0xff]  }
  0x8c   : > { %5786 = vmatpush3.bf16.msra.mxu1 %v6425_v13  ;;  %5759 = vmatprep.subr.bf16.mxu0 %v6649_v1  ;;  %v1867_v13 = vrot.slane %v1865_v7, 1  ;;  %v2139_v7 = vld [vmem:[%s7018_s15 + $0x18] sm:$0x7] }
  0x8d   : > { %5787 = vmatprep.subr.bf16.mxu1 %v6649_v1  ;;  %5721 = vmatprep.mubr.msk.bf16.mxu0 %vm6650_vm0, %v6649_v1  ;;  %v1873_v19 = vshll.u32 %v7285_v10, 16  ;;  %v2018_v26 = vrot.slane %v7285_v10, 1  ;;  %v1877_v36 = vshrl.u32 %v7285_v10, 16 }
  0x8e   : > { %5749 = vmatprep.mubr.msk.bf16.mxu1 %vm6650_vm0, %v6649_v1  ;;  %v1868_v20 = vsel %vm400_vm1, %v1863_v12, %v1867_v13 }
  0x8f   : > { %5760 = vmatpush3.bf16.msra.mxu0 %v6426_v17  ;;  %v6464_v17 = vld [vmem:[%s8206_s3 + $0x300] sm:$0xff]  }
  0x90   : > { %5788 = vmatpush3.bf16.msra.mxu1 %v6427_v18  ;;  %5761 = vmatprep.subr.bf16.mxu0 %v6649_v1  ;;  %v1869_v18 = vshrl.u32 %v7227_v53, 16 }
  0x91   : > { %5789 = vmatprep.subr.bf16.mxu1 %v6649_v1 }
  0x92   : > { %5722 = vmatmul.mubr.bf16.gmra.mrb[40].mxu0 %v7074_v60  ;;  %v6454_v60 = vld [vmem:[%s8206_s3 + $0x2e0] sm:$0xff]   ;;  %v1871_v27 = vor.u32 %v1869_v18, %v1867_v13 }
  0x93   : > { %5762 = vmatpush3.bf16.msra.mxu0 %v6428_v21  ;;  %5750 = vmatmul.mubr.bf16.gmra.mrb[40].mxu1 %v1426_v23  ;;  %v2017_v21 = vsel %vm664_vm2, %v2015_v16, %v2016_v14  ;;  %v6466_v23 = vld [vmem:[%s8206_s3 + $0x308] sm:$0xff]   ;;  %v6493_v13 = vld [vmem:[%s8206_s3 + $0x3e0] sm:$0xff]  }
  0x94   : > { %5790 = vmatpush3.bf16.msra.mxu1 %v6429_v22  ;;  %5763 = vmatprep.subr.bf16.mxu0 %v6649_v1  ;;  %v6465_v22 = vld [vmem:[%s8206_s3 + $0x340] sm:$0xff]  }
  0x95   : > { %5791 = vmatprep.subr.bf16.mxu1 %v6649_v1  ;;  %5725 = vmatprep.mubr.msk.bf16.mxu0 %vm6650_vm0, %v6649_v1  ;;  %v2444_v16 = vld [vmem:[%s7018_s15 + $0x4] sm:$0xe] }
  0x96   : > { %5753 = vmatprep.mubr.msk.bf16.mxu1 %vm6650_vm0, %v6649_v1 }
  0x97   : > { %5764 = vmatpush3.bf16.msra.mxu0 %v6431_v24  ;;  %v6467_v24 = vld [vmem:[%s8206_s3 + $0x348] sm:$0xff]  }
  0x98   : > { %5792 = vmatpush3.bf16.msra.mxu1 %v6432_v25  ;;  %5765 = vmatprep.subr.bf16.mxu0 %v6649_v1  ;;  %v1875_v25 = vrot.slane %v1873_v19, 1 }
  0x99   : > { %5793 = vmatprep.subr.bf16.mxu1 %v6649_v1 }
  0x9a   : > { %5726 = vmatmul.mubr.bf16.gmra.mrb[44].mxu0 %v4712_v28  ;;  %v6468_v28 = vld [vmem:[%s8206_s3 + $0x310] sm:$0xff]   ;;  %v1879_v39 = vor.u32 %v1877_v36, %v1875_v25 }
  0x9b   : > { %5766 = vmatpush3.bf16.msra.mxu0 %v6434_v29  ;;  %5754 = vmatmul.mubr.bf16.gmra.mrb[44].mxu1 %v1429_v30  ;;  %v2134_v29 = vld [vmem:[%s7018_s15 + $0x4] sm:$0xf]  ;;  %v7331_v30 = vld [vmem:[%s7018_s15 + $0x8] sm:$0xf] }
  0x9c   : > { %5794 = vmatpush3.bf16.msra.mxu1 %v6435_v31  ;;  %5767 = vmatprep.subr.bf16.mxu0 %v6649_v1  ;;  %v1876_v31 = vsel %vm400_vm1, %v1871_v27, %v1875_v25 }
  0x9d   : > { %5795 = vmatprep.subr.bf16.mxu1 %v6649_v1  ;;  %5773 = vmatprep.mubr.msk.bf16.mxu0 %vm6650_vm0, %v6649_v1 }
  0x9e   : > { %5801 = vmatprep.mubr.msk.bf16.mxu1 %vm6650_vm0, %v6649_v1 }
  0x9f   : > { %5768 = vmatpush3.bf16.msra.mxu0 %v6436_v32  ;;  %v6469_v32 = vld [vmem:[%s8206_s3 + $0x350] sm:$0xff]  }
  0xa0   : > { %5796 = vmatpush3.bf16.msra.mxu1 %v6437_v33  ;;  %5769 = vmatprep.subr.bf16.mxu0 %v6649_v1  ;;  %v2019_v33 = vsel %vm664_vm2, %v2016_v14, %v2018_v26  ;;  %v6494_v14 = vld [vmem:[%s8206_s3 + $0x3a8] sm:$0xff]  }
  0xa1   : > { %5797 = vmatprep.subr.bf16.mxu1 %v6649_v1 }
  0xa3   : > { %5770 = vmatpush3.bf16.msra.mxu0 %v6438_v35  ;;  %v6471_v35 = vld [vmem:[%s8206_s3 + $0x358] sm:$0xff]  }
  0xa4   : > { %5798 = vmatpush3.bf16.msra.mxu1 %v6439_v37  ;;  %5771 = vmatprep.subr.bf16.mxu0 %v6649_v1  ;;  %v4864_v37 = vcombine.low %v2134_v29, %v7331_v30 }
  0xa5   : > { %5799 = vmatprep.subr.bf16.mxu1 %v6649_v1 }
  0xa7   : > { %5772 = vmatpush3.bf16.msra.mxu0 %v6440_v38  ;;  %v6472_v38 = vld [vmem:[%s8206_s3 + $0x320] sm:$0xff]  }
  0xa8   : > { %5800 = vmatpush3.bf16.msra.mxu1 %v6441_v41  ;;  %5813 = vmatprep.subr.bf16.mxu0 %v6649_v1  ;;  %v2310_v41 = vshll.u32 %v4864_v37, 16 }
  0xa9   : > { %5841 = vmatprep.subr.bf16.mxu1 %v6649_v1 }
  0xaa   : > { %5774 = vmatmul.mubr.bf16.vlgmr.msra.gmra.mrb[48].mxu0 %v1567_v44  ;;  %v6475_v44 = vld [vmem:[%s8206_s3 + $0x368] sm:$0xff]  }
  0xab   : > { %5802 = vmatmul.mubr.bf16.vlgmr.msra.gmra.mrb[48].mxu1 %v7198_v45  ;;  %5814 = vmatpush3.bf16.msra.mxu0 %v6444_v46  ;;  %v2308_v45 = vshrl.u32 %v4864_v37, 16  ;;  %v2312_v46 = vrot.slane %v2310_v41, 1  ;;  %v6502_v41 = vld [vmem:[%s8206_s3 + $0x400] sm:$0xff]  }
  0xac   : > { %5842 = vmatpush3.bf16.msra.mxu1 %v6445_v47  ;;  %5815 = vmatprep.subr.bf16.mxu0 %v6649_v1  ;;  %v2315_v47 = vshll.u32 %v7358_v40, 16 }
  0xad   : > { %5843 = vmatprep.subr.bf16.mxu1 %v6649_v1  ;;  %5777 = vmatprep.mubr.msk.bf16.mxu0 %vm6650_vm0, %v6649_v1 }
  0xae   : > { %5805 = vmatprep.mubr.msk.bf16.mxu1 %vm6650_vm0, %v6649_v1 }
  0xaf   : > { %5816 = vmatpush3.bf16.msra.mxu0 %v6446_v48  ;;  %v6476_v48 = vld [vmem:[%s8206_s3 + $0x330] sm:$0xff]  }
  0xb0   : > { %5844 = vmatpush3.bf16.msra.mxu1 %v6447_v50  ;;  %5817 = vmatprep.subr.bf16.mxu0 %v6649_v1  ;;  %v7385_v50 = vld [vmem:[%s7018_s15 + $0x14] sm:$0xf] }
  0xb1   : > { %5845 = vmatprep.subr.bf16.mxu1 %v6649_v1  ;;  %v4866_v10 = vcombine.low %v7385_v50, %v2139_v7  ;;  %v2589_v7 = vld [vmem:[%s7018_s15 + $0x1c] sm:$0x7] }
  0xb2   : > { %5778 = vmatmul.mubr.bf16.gmra.mrb[52].mxu0 %v1569_v52  ;;  %v6478_v52 = vld [vmem:[%s8206_s3 + $0x338] sm:$0xff]  }
  0xb3   : > { %5818 = vmatpush3.bf16.msra.mxu0 %v6448_v51  ;;  %5806 = vmatmul.mubr.bf16.gmra.mrb[52].mxu1 %v7227_v53  ;;  %v2286_v51 = vld [vmem:[%s7018_s15 + $0x18] sm:$0xf] }
  0xb4   : > { %5846 = vmatpush3.bf16.msra.mxu1 %v6449_v54  ;;  %5819 = vmatprep.subr.bf16.mxu0 %v6649_v1  ;;  %v6479_v53 = vld [vmem:[%s8206_s3 + $0x378] sm:$0xff]   ;;  %v2317_v54 = vrot.slane %v2315_v47, 1 }
  0xb5   : > { %5847 = vmatprep.subr.bf16.mxu1 %v6649_v1  ;;  %5781 = vmatprep.mubr.msk.bf16.mxu0 %vm6650_vm0, %v6649_v1 }
  0xb6   : > { %5809 = vmatprep.mubr.msk.bf16.mxu1 %vm6650_vm0, %v6649_v1 }
  0xb7   : > { %5820 = vmatpush3.bf16.msra.mxu0 %v6451_v55  ;;  %v7397_v55 = vcombine.low %v7385_v50, %v2286_v51  ;;  %v6504_v50 = vld [vmem:[%s8206_s3 + $0x408] sm:$0xff]  }
  0xb8   : > { %5848 = vmatpush3.bf16.msra.mxu1 %v6452_v56  ;;  %5821 = vmatprep.subr.bf16.mxu0 %v6649_v1  ;;  %v2313_v56 = vor.u32 %v2312_v46, %v2308_v45  ;;  %v6503_v45 = vld [vmem:[%s8206_s3 + $0x440] sm:$0xff]  }
  0xb9   : > { %5849 = vmatprep.subr.bf16.mxu1 %v6649_v1  ;;  %v2323_v58 = vshll.u32 %v7397_v55, 16  ;;  %v2468_v51 = vrot.slane %v7397_v55, 1 }
  0xba   : > { %5782 = vmatmul.mubr.bf16.gmra.mrb[56].mxu0 %v1568_v49  ;;  %v6477_v49 = vld [vmem:[%s8206_s3 + $0x370] sm:$0xff]  }
  0xbb   : > { %5822 = vmatpush3.bf16.msra.mxu0 %v6453_v59  ;;  %5810 = vmatmul.mubr.bf16.gmra.mrb[56].mxu1 %v4789_v61  ;;  %v2318_v59 = vsel %vm400_vm1, %v2313_v56, %v2317_v54  ;;  %v2319_v61 = vshrl.u32 %v7358_v40, 16  ;;  %v2325_v0 = vrot.slane %v2323_v58, 1 }
  0xbc   : > { %5850 = vmatpush3.bf16.msra.mxu1 %v6454_v60  ;;  %5823 = vmatprep.subr.bf16.mxu0 %v6649_v1  ;;  %v6483_v60 = vld [vmem:[%s8206_s3 + $0x3c0] sm:$0xff]  }
  0xbd   : > { %5851 = vmatprep.subr.bf16.mxu1 %v6649_v1  ;;  %5829 = vmatprep.mubr.msk.bf16.mxu0 %vm6650_vm0, %v6649_v1 }
  0xbe   : > { %5857 = vmatprep.mubr.msk.bf16.mxu1 %vm6650_vm0, %v6649_v1 }
  0xbf   : > { %5824 = vmatpush3.bf16.msra.mxu0 %v6457_v63  ;;  %v6485_v63 = vld [vmem:[%s8206_s3 + $0x3c8] sm:$0xff]  }
  0xc0   : > { %5852 = vmatpush3.bf16.msra.mxu1 %v6458_v2  ;;  %5825 = vmatprep.subr.bf16.mxu0 %v6649_v1  ;;  %v2321_v2 = vor.u32 %v2319_v61, %v2317_v54 }
  0xc1   : > { %5853 = vmatprep.subr.bf16.mxu1 %v6649_v1 }
  0xc2   : > { %v2326_v5 = vsel %vm400_vm1, %v2321_v2, %v2325_v0 }
  0xc3   : > { %5826 = vmatpush3.bf16.msra.mxu0 %v6459_v6  ;;  %v6489_v6 = vld [vmem:[%s8206_s3 + $0x398] sm:$0xff]  }
  0xc4   : > { %5854 = vmatpush3.bf16.msra.mxu1 %v6460_v8  ;;  %5827 = vmatprep.subr.bf16.mxu0 %v6649_v1  ;;  %v2327_v8 = vshrl.u32 %v7397_v55, 16 }
  0xc5   : > { %5855 = vmatprep.subr.bf16.mxu1 %v6649_v1 }
  0xc6   : > { %v2329_v12 = vor.u32 %v2327_v8, %v2325_v0  ;;  %v6511_v8 = vld [vmem:[%s8206_s3 + $0x420] sm:$0xff]  }
  0xc7   : > { %5828 = vmatpush3.bf16.msra.mxu0 %v6461_v11  ;;  %v6492_v11 = vld [vmem:[%s8206_s3 + $0x3a0] sm:$0xff]  }
  0xc8   : > { %5856 = vmatpush3.bf16.msra.mxu1 %v6462_v15  ;;  %5869 = vmatprep.subr.bf16.mxu0 %v6649_v1  ;;  %v6495_v15 = vld [vmem:[%s8206_s3 + $0x3e8] sm:$0xff]  }
  0xc9   : > { %5897 = vmatprep.subr.bf16.mxu1 %v6649_v1 }
  0xca   : > { %5830 = vmatmul.mubr.bf16.vlgmr.msra.gmra.mrb[60].mxu0 %v1868_v20 }
  0xcb   : > { %5858 = vmatmul.mubr.bf16.vlgmr.msra.gmra.mrb[60].mxu1 %v2017_v21  ;;  %5870 = vmatpush3.bf16.msra.mxu0 %v6464_v17 }
  0xcc   : > { %5898 = vmatpush3.bf16.msra.mxu1 %v6465_v22  ;;  %5871 = vmatprep.subr.bf16.mxu0 %v6649_v1 }
  0xcd   : > { %5899 = vmatprep.subr.bf16.mxu1 %v6649_v1  ;;  %5833 = vmatprep.mubr.msk.bf16.mxu0 %vm6650_vm0, %v6649_v1 }
  0xce   : > { %5861 = vmatprep.mubr.msk.bf16.mxu1 %vm6650_vm0, %v6649_v1 }
  0xcf   : > { %5872 = vmatpush3.bf16.msra.mxu0 %v6466_v23  ;;  %v6496_v23 = vld [vmem:[%s8206_s3 + $0x3b0] sm:$0xff]  }
  0xd0   : > { %5900 = vmatpush3.bf16.msra.mxu1 %v6467_v24  ;;  %5873 = vmatprep.subr.bf16.mxu0 %v6649_v1  ;;  %v4916_v24 = vcombine.low %v2444_v16, %v7331_v30  ;;  %v6498_v30 = vld [vmem:[%s8206_s3 + $0x3b8] sm:$0xff]  }
  0xd1   : > { %5901 = vmatprep.subr.bf16.mxu1 %v6649_v1 }
  0xd2   : > { %5834 = vmatmul.mubr.bf16.gmra.mrb[64].mxu0 %v1876_v31  ;;  %v2465_v31 = vrot.slane %v4916_v24, 1 }
  0xd3   : > { %5874 = vmatpush3.bf16.msra.mxu0 %v6468_v28  ;;  %5862 = vmatmul.mubr.bf16.gmra.mrb[64].mxu1 %v2019_v33  ;;  %v6499_v33 = vld [vmem:[%s8206_s3 + $0x3f8] sm:$0xff]  }
  0xd4   : > { %5902 = vmatpush3.bf16.msra.mxu1 %v6469_v32  ;;  %5875 = vmatprep.subr.bf16.mxu0 %v6649_v1  ;;  %v2466_v32 = vrot.slane %v7358_v40, 1 }
  0xd5   : > { %5903 = vmatprep.subr.bf16.mxu1 %v6649_v1  ;;  %5837 = vmatprep.mubr.msk.bf16.mxu0 %vm6650_vm0, %v6649_v1 }
  0xd6   : > { %5865 = vmatprep.mubr.msk.bf16.mxu1 %vm6650_vm0, %v6649_v1  ;;  %v2469_v55 = vsel %vm664_vm2, %v2466_v32, %v2468_v51 }
  0xd7   : > { %5876 = vmatpush3.bf16.msra.mxu0 %v6470_v34  ;;  %v2584_v34 = vld [vmem:[%s7018_s15 + $0x8] sm:$0xf] }
  0xd8   : > { %5904 = vmatpush3.bf16.msra.mxu1 %v6471_v35  ;;  %5877 = vmatprep.subr.bf16.mxu0 %v6649_v1  ;;  %v7493_v35 = vld [vmem:[%s7018_s15 + $0xc] sm:$0xf] }
  0xd9   : > { %5905 = vmatprep.subr.bf16.mxu1 %v6649_v1 }
  0xda   : > { %5838 = vmatmul.mubr.bf16.gmra.mrb[68].mxu0 %v1879_v39  ;;  %v2467_v39 = vsel %vm664_vm2, %v2465_v31, %v2466_v32 }
  0xdb   : > { %5878 = vmatpush3.bf16.msra.mxu0 %v6472_v38  ;;  %5866 = vmatmul.mubr.bf16.gmra.mrb[68].mxu1 %v2018_v26  ;;  %v6497_v26 = vld [vmem:[%s8206_s3 + $0x3f0] sm:$0xff]  }
  0xdc   : > { %5906 = vmatpush3.bf16.msra.mxu1 %v6473_v42  ;;  %5879 = vmatprep.subr.bf16.mxu0 %v6649_v1 }
  0xdd   : > { %5907 = vmatprep.subr.bf16.mxu1 %v6649_v1  ;;  %5885 = vmatprep.mubr.msk.bf16.mxu0 %vm6650_vm0, %v6649_v1 }
  0xde   : > { %5913 = vmatprep.mubr.msk.bf16.mxu1 %vm6650_vm0, %v6649_v1 }
  0xdf   : > { %5880 = vmatpush3.bf16.msra.mxu0 %v6474_v43 }
  0xe0   : > { %5908 = vmatpush3.bf16.msra.mxu1 %v6475_v44  ;;  %5881 = vmatprep.subr.bf16.mxu0 %v6649_v1 }
  0xe1   : > { %5909 = vmatprep.subr.bf16.mxu1 %v6649_v1 }
  0xe3   : > { %5882 = vmatpush3.bf16.msra.mxu0 %v6476_v48 }
  0xe4   : > { %5910 = vmatpush3.bf16.msra.mxu1 %v6477_v49  ;;  %5883 = vmatprep.subr.bf16.mxu0 %v6649_v1 }
  0xe5   : > { %5911 = vmatprep.subr.bf16.mxu1 %v6649_v1 }
  0xe7   : > { %5884 = vmatpush3.bf16.msra.mxu0 %v6478_v52  ;;  %v6505_v52 = vld [vmem:[%s8206_s3 + $0x448] sm:$0xff]  }
  0xe8   : > { %5912 = vmatpush3.bf16.msra.mxu1 %v6479_v53  ;;  %5925 = vmatprep.subr.bf16.mxu0 %v6649_v1 }
  0xe9   : > { %5953 = vmatprep.subr.bf16.mxu1 %v6649_v1 }
  0xea   : > { %5886 = vmatmul.mubr.bf16.vlgmr.msra.gmra.mrb[72].mxu0 %v4864_v37 }
  0xeb   : > { %5914 = vmatmul.mubr.bf16.vlgmr.msra.gmra.mrb[72].mxu1 %v2318_v59  ;;  %5926 = vmatpush3.bf16.msra.mxu0 %v6482_v57  ;;  %v6506_v57 = vld [vmem:[%s8206_s3 + $0x410] sm:$0xff]  }
  0xec   : > { %5954 = vmatpush3.bf16.msra.mxu1 %v6483_v60  ;;  %5927 = vmatprep.subr.bf16.mxu0 %v6649_v1  ;;  %v7533_v60 = vld [vmem:[%s7018_s15 + $0x10] sm:$0xff]  }
  0xed   : > { %5955 = vmatprep.subr.bf16.mxu1 %v6649_v1  ;;  %5889 = vmatprep.mubr.msk.bf16.mxu0 %vm6650_vm0, %v6649_v1 }
  0xee   : > { %5917 = vmatprep.mubr.msk.bf16.mxu1 %vm6650_vm0, %v6649_v1 }
  0xef   : > { %5928 = vmatpush3.bf16.msra.mxu0 %v6484_v62  ;;  %v6507_v62 = vld [vmem:[%s8206_s3 + $0x450] sm:$0xff]  }
  0xf0   : > { %5956 = vmatpush3.bf16.msra.mxu1 %v6485_v63  ;;  %5929 = vmatprep.subr.bf16.mxu0 %v6649_v1 }
  0xf1   : > { %5957 = vmatprep.subr.bf16.mxu1 %v6649_v1 }
  0xf2   : > { %5890 = vmatmul.mubr.bf16.gmra.mrb[76].mxu0 %v7358_v40  ;;  %v7498_v40 = vcombine.low %v2584_v34, %v7493_v35 }
  0xf3   : > { %5930 = vmatpush3.bf16.msra.mxu0 %v6486_v3  ;;  %5918 = vmatmul.mubr.bf16.gmra.mrb[76].mxu1 %v2326_v5  ;;  %v6510_v5 = vld [vmem:[%s8206_s3 + $0x458] sm:$0xff]  }
  0xf4   : > { %5958 = vmatpush3.bf16.msra.mxu1 %v6487_v4  ;;  %5931 = vmatprep.subr.bf16.mxu0 %v6649_v1  ;;  %v6509_v4 = vld [vmem:[%s8206_s3 + $0x418] sm:$0xff]  }
  0xf5   : > { %5959 = vmatprep.subr.bf16.mxu1 %v6649_v1  ;;  %5893 = vmatprep.mubr.msk.bf16.mxu0 %vm6650_vm0, %v6649_v1 }
  0xf6   : > { %5921 = vmatprep.mubr.msk.bf16.mxu1 %vm6650_vm0, %v6649_v1 }
  0xf7   : > { %5932 = vmatpush3.bf16.msra.mxu0 %v6489_v6  ;;  %v2588_v6 = vld [vmem:[%s7018_s15 + $0x18] sm:$0xf] }
  0xf8   : > { %5960 = vmatpush3.bf16.msra.mxu1 %v6490_v9  ;;  %5933 = vmatprep.subr.bf16.mxu0 %v6649_v1  ;;  %v4943_v9 = vcombine.low %v2588_v6, %v2589_v7 }
  0xf9   : > { %5961 = vmatprep.subr.bf16.mxu1 %v6649_v1 }
  0xfa   : > { %5894 = vmatmul.mubr.bf16.gmra.mrb[80].mxu0 %v4866_v10  ;;  %v6512_v10 = vld [vmem:[%s8206_s3 + $0x460] sm:$0xff]  }
  0xfb   : > { %5934 = vmatpush3.bf16.msra.mxu0 %v6492_v11  ;;  %5922 = vmatmul.mubr.bf16.gmra.mrb[80].mxu1 %v2329_v12  ;;  %v6515_v11 = vld [vmem:[%s8206_s3 + $0x428] sm:$0xff]   ;;  %v2760_v12 = vshll.u32 %v7498_v40, 16 }
  0xfc   : > { %5962 = vmatpush3.bf16.msra.mxu1 %v6493_v13  ;;  %5935 = vmatprep.subr.bf16.mxu0 %v6649_v1  ;;  %v6516_v13 = vld [vmem:[%s8206_s3 + $0x468] sm:$0xff]  }
  0xfd   : > { %v509_v17 = vpop.f32.mrb[0].mxu0  ;;  %5963 = vmatprep.subr.bf16.mxu1 %v6649_v1  ;;  %5941 = vmatprep.mubr.msk.bf16.mxu0 %vm6650_vm0, %v6649_v1  ;;  %v2762_v24 = vrot.slane %v2760_v12, 1 }
  0xfe   : > { %v620_v18 = vpop.f32.mrb[0].mxu1  ;;  %v5551_v19 = vpop.f32.mrb[1].mxu0  ;;  %5969 = vmatprep.mubr.msk.bf16.mxu1 %vm6650_vm0, %v6649_v1 }
  0xff   : > { %v7470_v20 = vadd.f32 %v620_v18, %v509_v17  ;;  %v5579_v21 = vpop.f32.mrb[1].mxu1  ;;  %v512_v22 = vpop.f32.mrb[2].mxu0  ;;  %5936 = vmatpush3.bf16.msra.mxu0 %v6494_v14 }
 0x100   : > { %v623_v25 = vpop.f32.mrb[2].mxu1  ;;  %5964 = vmatpush3.bf16.msra.mxu1 %v6495_v15  ;;  %5937 = vmatprep.subr.bf16.mxu0 %v6649_v1  ;;  %v5552_v27 = vpop.f32.mrb[3].mxu0  ;;  %v2894_v15 = vld [vmem:[%s7018_s15 + $0x8] sm:$0xe] }
 0x101   : > { %v7480_v28 = vadd.f32 %v623_v25, %v512_v22  ;;  %v5580_v29 = vpop.f32.mrb[3].mxu1  ;;  %5965 = vmatprep.subr.bf16.mxu1 %v6649_v1  ;;  %v6517_v22 = vld [vmem:[%s8206_s3 + $0x430] sm:$0xff]   ;;  %v2765_v25 = vshll.u32 %v7533_v60, 16  ;;  %v4993_v32 = vcombine.low %v2894_v15, %v7493_v35  ;;  %v6520_v35 = vld [vmem:[%s8206_s3 + $0x478] sm:$0xff]  }
 0x103   : > { %5938 = vmatpush3.bf16.msra.mxu0 %v6496_v23  ;;  %v2758_v23 = vshrl.u32 %v7498_v40, 16 }
 0x104   : > { %5966 = vmatpush3.bf16.msra.mxu1 %v6497_v26  ;;  %5939 = vmatprep.subr.bf16.mxu0 %v6649_v1  ;;  %v2736_v26 = vld [vmem:[%s7018_s15 + $0x1c] sm:$0xf]  ;;  %s8171_s15 = scalar_lea.vmem %s8208_s5, %s4555_s16 }
 0x105   : > { %5967 = vmatprep.subr.bf16.mxu1 %v6649_v1  ;;  %v517_v36 = vpop.f32.mrb[4].mxu0  ;;  %4402 = vst [vmem:[%s8171_s15 + $0x2e] sm:$0xff] %v6649_v1  ;;  %4403 = vst [vmem:[%s8171_s15 + $0x36] sm:$0xff] %v6649_v1 }
 0x106   : > { %v628_v37 = vpop.f32.mrb[4].mxu1  ;;  %v5555_v38 = vpop.f32.mrb[5].mxu0  ;;  %4404 = vst [vmem:[%s8171_s15 + $0x3e] sm:$0x3] %v6649_v1 }
 0x107   : > { %5940 = vmatpush3.bf16.msra.mxu0 %v6498_v30  ;;  %v7503_v42 = vadd.f32 %v628_v37, %v517_v36  ;;  %v5583_v43 = vpop.f32.mrb[5].mxu1  ;;  %v520_v44 = vpop.f32.mrb[6].mxu0  ;;  %v6518_v30 = vld [vmem:[%s8206_s3 + $0x470] sm:$0xff]   ;;  %v7597_v36 = vcombine.low %v2588_v6, %v2736_v26  ;;  %v2763_v37 = vor.u32 %v2762_v24, %v2758_v23  ;;  %v2767_v38 = vrot.slane %v2765_v25, 1  ;;  %v6530_v24 = vld [vmem:[%s8206_s3 + $0x4a0] sm:$0xff]  }
 0x108   : > { %5968 = vmatpush3.bf16.msra.mxu1 %v6499_v33  ;;  %5981 = vmatprep.subr.bf16.mxu0 %v6649_v1  ;;  %v631_v46 = vpop.f32.mrb[6].mxu1  ;;  %v5556_v47 = vpop.f32.mrb[7].mxu0  ;;  %v6531_v26 = vld [vmem:[%s8206_s3 + $0x4e0] sm:$0xff]  }
 0x109   : > { %6009 = vmatprep.subr.bf16.mxu1 %v6649_v1  ;;  %v7510_v48 = vadd.f32 %v631_v46, %v520_v44  ;;  %v5584_v49 = vpop.f32.mrb[7].mxu1 }
 0x10a   : > { %5942 = vmatmul.mubr.bf16.vlgmr.msra.gmra.mrb[84].mxu0 %v2467_v39  ;;  %v2915_v39 = vrot.slane %v4993_v32, 1  ;;  %v2768_v49 = vsel %vm400_vm1, %v2763_v37, %v2767_v38 }
 0x10b   : > { %5970 = vmatmul.mubr.bf16.vlgmr.msra.gmra.mrb[84].mxu1 %v7498_v40  ;;  %5982 = vmatpush3.bf16.msra.mxu0 %v6502_v41  ;;  %v2916_v40 = vrot.slane %v7533_v60, 1 }
 0x10c   : > { %6010 = vmatpush3.bf16.msra.mxu1 %v6503_v45  ;;  %5983 = vmatprep.subr.bf16.mxu0 %v6649_v1 }
 0x10d   : > { %6011 = vmatprep.subr.bf16.mxu1 %v6649_v1  ;;  %5945 = vmatprep.mubr.msk.bf16.mxu0 %vm6650_vm0, %v6649_v1  ;;  %v525_v53 = vpop.f32.mrb[8].mxu0 }
 0x10e   : > { %v636_v54 = vpop.f32.mrb[8].mxu1  ;;  %5973 = vmatprep.mubr.msk.bf16.mxu1 %vm6650_vm0, %v6649_v1  ;;  %v5559_v56 = vpop.f32.mrb[9].mxu0 }
 0x10f   : > { %5984 = vmatpush3.bf16.msra.mxu0 %v6504_v50  ;;  %v7530_v58 = vadd.f32 %v636_v54, %v525_v53  ;;  %v5587_v59 = vpop.f32.mrb[9].mxu1  ;;  %v528_v61 = vpop.f32.mrb[10].mxu0  ;;  %v6522_v50 = vld [vmem:[%s8206_s3 + $0x480] sm:$0xff]   ;;  %v2917_v56 = vsel %vm664_vm2, %v2915_v39, %v2916_v40 }
 0x110   : > { %6012 = vmatpush3.bf16.msra.mxu1 %v6505_v52  ;;  %5985 = vmatprep.subr.bf16.mxu0 %v6649_v1  ;;  %v639_v63 = vpop.f32.mrb[10].mxu1  ;;  %v5560_v0 = vpop.f32.mrb[11].mxu0  ;;  %v2773_v52 = vshll.u32 %v7597_v36, 16 }
 0x111   : > { %6013 = vmatprep.subr.bf16.mxu1 %v6649_v1  ;;  %v7540_v2 = vadd.f32 %v639_v63, %v528_v61  ;;  %v5588_v3 = vpop.f32.mrb[11].mxu1  ;;  %v6525_v63 = vld [vmem:[%s8206_s3 + $0x4c8] sm:$0xff]   ;;  %v2918_v0 = vrot.slane %v7597_v36, 1 }
 0x112   : > { %5946 = vmatmul.mubr.bf16.gmra.mrb[88].mxu0 %v2469_v55  ;;  %v6523_v55 = vld [vmem:[%s8206_s3 + $0x4c0] sm:$0xff]  }
 0x113   : > { %5986 = vmatpush3.bf16.msra.mxu0 %v6506_v57  ;;  %5974 = vmatmul.mubr.bf16.gmra.mrb[88].mxu1 %v7533_v60 }
 0x114   : > { %6014 = vmatpush3.bf16.msra.mxu1 %v6507_v62  ;;  %5987 = vmatprep.subr.bf16.mxu0 %v6649_v1  ;;  %v2775_v62 = vrot.slane %v2773_v52, 1 }
 0x115   : > { %6015 = vmatprep.subr.bf16.mxu1 %v6649_v1  ;;  %5949 = vmatprep.mubr.msk.bf16.mxu0 %vm6650_vm0, %v6649_v1 }
 0x116   : > { %5977 = vmatprep.mubr.msk.bf16.mxu1 %vm6650_vm0, %v6649_v1 }
 0x117   : > { %5988 = vmatpush3.bf16.msra.mxu0 %v6509_v4 }
 0x118   : > { %6016 = vmatpush3.bf16.msra.mxu1 %v6510_v5  ;;  %5989 = vmatprep.subr.bf16.mxu0 %v6649_v1 }
 0x119   : > { %6017 = vmatprep.subr.bf16.mxu1 %v6649_v1 }
 0x11a   : > { %5950 = vmatmul.mubr.bf16.gmra.mrb[92].mxu0 %v2468_v51  ;;  %v2769_v51 = vshrl.u32 %v7533_v60, 16 }
 0x11b   : > { %5990 = vmatpush3.bf16.msra.mxu0 %v6511_v8  ;;  %5978 = vmatmul.mubr.bf16.gmra.mrb[92].mxu1 %v4943_v9 }
 0x11c   : > { %6018 = vmatpush3.bf16.msra.mxu1 %v6512_v10  ;;  %5991 = vmatprep.subr.bf16.mxu0 %v6649_v1  ;;  %v2771_v61 = vor.u32 %v2769_v51, %v2767_v38  ;;  %v6526_v10 = vld [vmem:[%s8206_s3 + $0x490] sm:$0xff]  }
 0x11d   : > { %v755_v14 = vpop.f32.mrb[12].mxu0  ;;  %6019 = vmatprep.subr.bf16.mxu1 %v6649_v1  ;;  %5997 = vmatprep.mubr.msk.bf16.mxu0 %vm6650_vm0, %v6649_v1 }
 0x11e   : > { %v778_v16 = vadd.f32 %v755_v14, %v7470_v20  ;;  %v907_v17 = vpop.f32.mrb[12].mxu1  ;;  %v5607_v18 = vpop.f32.mrb[13].mxu0  ;;  %6025 = vmatprep.mubr.msk.bf16.mxu1 %vm6650_vm0, %v6649_v1  ;;  %v2776_v9 = vsel %vm400_vm1, %v2771_v61, %v2775_v62  ;;  %v2919_v14 = vsel %vm664_vm2, %v2916_v40, %v2918_v0 }
 0x11f   : > { %v5635_v19 = vpop.f32.mrb[13].mxu1  ;;  %v758_v21 = vpop.f32.mrb[14].mxu0  ;;  %5992 = vmatpush3.bf16.msra.mxu0 %v6515_v11  ;;  %v6528_v18 = vld [vmem:[%s8206_s3 + $0x498] sm:$0xff]  }
 0x120   : > { %v7586_v27 = vadd.f32 %v907_v17, %v778_v16  ;;  %v779_v20 = vadd.f32 %v758_v21, %v7480_v28  ;;  %v910_v29 = vpop.f32.mrb[14].mxu1  ;;  %6020 = vmatpush3.bf16.msra.mxu1 %v6516_v13  ;;  %5993 = vmatprep.subr.bf16.mxu0 %v6649_v1  ;;  %v5608_v31 = vpop.f32.mrb[15].mxu0  ;;  %v6519_v28 = vld [vmem:[%s8206_s3 + $0x438] sm:$0xff]   ;;  %v6527_v13 = vld [vmem:[%s8206_s3 + $0x4d0] sm:$0xff]   ;;  %v3034_v21 = vld [vmem:[%s7290_s26] sm:$0xf] }
 0x121   : > { %v5636_v33 = vpop.f32.mrb[15].mxu1  ;;  %6021 = vmatprep.subr.bf16.mxu1 %v6649_v1  ;;  %v6529_v19 = vld [vmem:[%s8206_s3 + $0x4d8] sm:$0xff]   ;;  %v6533_v31 = vld [vmem:[%s8206_s3 + $0x4e8] sm:$0xff]  }
 0x122   : > { %v7595_v34 = vadd.f32 %v910_v29, %v779_v20  ;;  %v6532_v20 = vld [vmem:[%s8206_s3 + $0x4a8] sm:$0xff]  }
 0x123   : > { %5994 = vmatpush3.bf16.msra.mxu0 %v6517_v22  ;;  %v7665_v22 = vld [vmem:[%s7290_s26 + $0x4] sm:$0xf]  ;;  %v7687_v29 = vld [vmem:[%s7290_s26 + $0x8] sm:$0xff]  }
 0x124   : > { %6022 = vmatpush3.bf16.msra.mxu1 %v6518_v30  ;;  %5995 = vmatprep.subr.bf16.mxu0 %v6649_v1  ;;  %v7676_v25 = vcombine.low %v3034_v21, %v7665_v22  ;;  %v6544_v21 = vld [vmem:[%s8206_s3 + $0x510] sm:$0xff]  }
 0x125   : > { %v763_v41 = vpop.f32.mrb[16].mxu0  ;;  %6023 = vmatprep.subr.bf16.mxu1 %v6649_v1 }
 0x126   : > { %v780_v43 = vadd.f32 %v763_v41, %v7503_v42  ;;  %v5611_v44 = vpop.f32.mrb[17].mxu0  ;;  %v915_v45 = vpop.f32.mrb[16].mxu1  ;;  %v3210_v30 = vshll.u32 %v7676_v25, 16  ;;  %v3208_v39 = vshrl.u32 %v7676_v25, 16  ;;  %v3215_v41 = vshll.u32 %v7687_v29, 16 }
 0x127   : > { %v766_v46 = vpop.f32.mrb[18].mxu0  ;;  %5996 = vmatpush3.bf16.msra.mxu0 %v6519_v28  ;;  %v5639_v47 = vpop.f32.mrb[17].mxu1 }
 0x128   : > { %v781_v53 = vadd.f32 %v766_v46, %v7510_v48  ;;  %v7616_v54 = vadd.f32 %v915_v45, %v780_v43  ;;  %6024 = vmatpush3.bf16.msra.mxu1 %v6520_v35  ;;  %v918_v42 = vpop.f32.mrb[18].mxu1  ;;  %6037 = vmatprep.subr.bf16.mxu0 %v6649_v1  ;;  %v5612_v57 = vpop.f32.mrb[19].mxu0  ;;  %v6524_v48 = vld [vmem:[%s8206_s3 + $0x488] sm:$0xff]   ;;  %v6534_v35 = vld [vmem:[%s8206_s3 + $0x4b0] sm:$0xff]   ;;  %v3212_v40 = vrot.slane %v3210_v30, 1 }
 0x129   : > { %6065 = vmatprep.subr.bf16.mxu1 %v6649_v1  ;;  %v5640_v59 = vpop.f32.mrb[19].mxu1  ;;  %v6535_v45 = vld [vmem:[%s8206_s3 + $0x4f0] sm:$0xff]  }
 0x12a   : > { %v7624_v60 = vadd.f32 %v918_v42, %v781_v53  ;;  %5998 = vmatmul.mubr.bf16.vlgmr.msra.gmra.mrb[96].mxu0 %v2768_v49  ;;  %v7714_v49 = vld [vmem:[%s7290_s26 + $0x10] sm:$0xf]  ;;  %v3213_v52 = vor.u32 %v3212_v40, %v3208_v39  ;;  %v3217_v53 = vrot.slane %v3215_v41, 1  ;;  %v6537_v42 = vld [vmem:[%s8206_s3 + $0x4f8] sm:$0xff]   ;;  %v6552_v39 = vld [vmem:[%s8206_s3 + $0x528] sm:$0xff]  }
 0x12b   : > { %6026 = vmatmul.mubr.bf16.vlgmr.msra.gmra.mrb[96].mxu1 %v2917_v56  ;;  %6038 = vmatpush3.bf16.msra.mxu0 %v6522_v50  ;;  %v3186_v50 = vld [vmem:[%s7290_s26 + $0x14] sm:$0xf]  ;;  %v6553_v40 = vld [vmem:[%s8206_s3 + $0x568] sm:$0xff]   ;;  %v3344_v41 = vld [vmem:[%s7290_s26] sm:$0xe] }
 0x12c   : > { %6066 = vmatpush3.bf16.msra.mxu1 %v6523_v55  ;;  %6039 = vmatprep.subr.bf16.mxu0 %v6649_v1  ;;  %v7727_v56 = vcombine.low %v7714_v49, %v3186_v50  ;;  %v6554_v50 = vld [vmem:[%s8206_s3 + $0x530] sm:$0xff]  }
 0x12d   : > { %v771_v3 = vpop.f32.mrb[20].mxu0  ;;  %6067 = vmatprep.subr.bf16.mxu1 %v6649_v1  ;;  %6001 = vmatprep.mubr.msk.bf16.mxu0 %vm6650_vm0, %v6649_v1 }
 0x12e   : > { %v782_v4 = vadd.f32 %v771_v3, %v7530_v58  ;;  %v5615_v5 = vpop.f32.mrb[21].mxu0  ;;  %v923_v6 = vpop.f32.mrb[20].mxu1  ;;  %6029 = vmatprep.mubr.msk.bf16.mxu1 %vm6650_vm0, %v6649_v1 }
 0x12f   : > { %v774_v7 = vpop.f32.mrb[22].mxu0  ;;  %6040 = vmatpush3.bf16.msra.mxu0 %v6524_v48  ;;  %v5643_v8 = vpop.f32.mrb[21].mxu1 }
 0x130   : > { %v783_v11 = vadd.f32 %v774_v7, %v7540_v2  ;;  %v7645_v12 = vadd.f32 %v923_v6, %v782_v4  ;;  %6068 = vmatpush3.bf16.msra.mxu1 %v6525_v63  ;;  %v926_v58 = vpop.f32.mrb[22].mxu1  ;;  %6041 = vmatprep.subr.bf16.mxu0 %v6649_v1  ;;  %v5616_v15 = vpop.f32.mrb[23].mxu0  ;;  %v2777_v2 = vshrl.u32 %v7597_v36, 16  ;;  %v3218_v63 = vsel %vm400_vm1, %v3213_v52, %v3217_v53 }
 0x131   : > { %6069 = vmatprep.subr.bf16.mxu1 %v6649_v1  ;;  %v5644_v16 = vpop.f32.mrb[23].mxu1  ;;  %v3219_v7 = vshrl.u32 %v7687_v29, 16  ;;  %v3223_v8 = vshll.u32 %v7727_v56, 16 }
 0x132   : > { %v7653_v17 = vadd.f32 %v926_v58, %v783_v11  ;;  %6002 = vmatmul.mubr.bf16.gmra.mrb[100].mxu0 %v2776_v9  ;;  %v2779_v23 = vor.u32 %v2777_v2, %v2775_v62  ;;  %v6543_v11 = vld [vmem:[%s8206_s3 + $0x548] sm:$0xff]  }
 0x133   : > { %6042 = vmatpush3.bf16.msra.mxu0 %v6526_v10  ;;  %6030 = vmatmul.mubr.bf16.gmra.mrb[100].mxu1 %v2919_v14  ;;  %v3221_v58 = vor.u32 %v3219_v7, %v3217_v53 }
 0x134   : > { %6070 = vmatpush3.bf16.msra.mxu1 %v6527_v13  ;;  %6043 = vmatprep.subr.bf16.mxu0 %v6649_v1  ;;  %v3225_v13 = vrot.slane %v3223_v8, 1 }
 0x135   : > { %6071 = vmatprep.subr.bf16.mxu1 %v6649_v1  ;;  %6005 = vmatprep.mubr.msk.bf16.mxu0 %vm6650_vm0, %v6649_v1 }
 0x136   : > { %6033 = vmatprep.mubr.msk.bf16.mxu1 %vm6650_vm0, %v6649_v1 }
 0x137   : > { %6044 = vmatpush3.bf16.msra.mxu0 %v6528_v18 }
 0x138   : > { %6072 = vmatpush3.bf16.msra.mxu1 %v6529_v19  ;;  %6045 = vmatprep.subr.bf16.mxu0 %v6649_v1 }
 0x139   : > { %6073 = vmatprep.subr.bf16.mxu1 %v6649_v1 }
 0x13a   : > { %6006 = vmatmul.mubr.bf16.gmra.mrb[104].mxu0 %v2779_v23 }
 0x13b   : > { %6046 = vmatpush3.bf16.msra.mxu0 %v6530_v24  ;;  %6034 = vmatmul.mubr.bf16.gmra.mrb[104].mxu1 %v2918_v0  ;;  %v6540_v0 = vld [vmem:[%s8206_s3 + $0x500] sm:$0xff]  }
 0x13c   : > { %6074 = vmatpush3.bf16.msra.mxu1 %v6531_v26  ;;  %6047 = vmatprep.subr.bf16.mxu0 %v6649_v1  ;;  %v3226_v26 = vsel %vm400_vm1, %v3221_v58, %v3225_v13  ;;  %v6561_v58 = vld [vmem:[%s8206_s3 + $0x5c0] sm:$0xff]  }
 0x13d   : > { %v1065_v32 = vpop.f32.mrb[24].mxu0  ;;  %6075 = vmatprep.subr.bf16.mxu1 %v6649_v1  ;;  %6053 = vmatprep.mubr.msk.bf16.mxu0 %vm6650_vm0, %v6649_v1 }
 0x13e   : > { %v1088_v33 = vadd.f32 %v1065_v32, %v7586_v27  ;;  %v1205_v36 = vpop.f32.mrb[24].mxu1  ;;  %v5663_v28 = vpop.f32.mrb[25].mxu0  ;;  %6081 = vmatprep.mubr.msk.bf16.mxu1 %vm6650_vm0, %v6649_v1  ;;  %v3039_v32 = vld [vmem:[%s7290_s26 + $0x14] sm:$0x7] }
 0x13f   : > { %v5691_v37 = vpop.f32.mrb[25].mxu1  ;;  %v1068_v38 = vpop.f32.mrb[26].mxu0  ;;  %6048 = vmatpush3.bf16.msra.mxu0 %v6532_v20  ;;  %v5020_v28 = vcombine.low %v7714_v49, %v3039_v32  ;;  %v6565_v32 = vld [vmem:[%s8206_s3 + $0x5d0] sm:$0xff]  }
 0x140   : > { %v7705_v27 = vadd.f32 %v1205_v36, %v1088_v33  ;;  %v1089_v43 = vadd.f32 %v1068_v38, %v7595_v34  ;;  %v1208_v44 = vpop.f32.mrb[26].mxu1  ;;  %6076 = vmatpush3.bf16.msra.mxu1 %v6533_v31  ;;  %6049 = vmatprep.subr.bf16.mxu0 %v6649_v1  ;;  %v5664_v46 = vpop.f32.mrb[27].mxu0  ;;  %v6536_v34 = vld [vmem:[%s8206_s3 + $0x4b8] sm:$0xff]   ;;  %v3227_v33 = vshrl.u32 %v7727_v56, 16  ;;  %v6550_v37 = vld [vmem:[%s8206_s3 + $0x520] sm:$0xff]  }
 0x141   : > { %v5692_v47 = vpop.f32.mrb[27].mxu1  ;;  %6077 = vmatprep.subr.bf16.mxu1 %v6649_v1  ;;  %v6548_v36 = vld [vmem:[%s8206_s3 + $0x558] sm:$0xff]  }
 0x142   : > { %v7717_v51 = vadd.f32 %v1208_v44, %v1089_v43  ;;  %v3229_v38 = vor.u32 %v3227_v33, %v3225_v13 }
 0x143   : > { %6050 = vmatpush3.bf16.msra.mxu0 %v6534_v35  ;;  %v6551_v35 = vld [vmem:[%s8206_s3 + $0x560] sm:$0xff]  }
 0x144   : > { %6078 = vmatpush3.bf16.msra.mxu1 %v6535_v45  ;;  %6051 = vmatprep.subr.bf16.mxu0 %v6649_v1 }
 0x145   : > { %v1073_v55 = vpop.f32.mrb[28].mxu0  ;;  %6079 = vmatprep.subr.bf16.mxu1 %v6649_v1 }
 0x146   : > { %v1090_v57 = vadd.f32 %v1073_v55, %v7616_v54  ;;  %v5667_v59 = vpop.f32.mrb[29].mxu0  ;;  %v1213_v48 = vpop.f32.mrb[28].mxu1  ;;  %v6541_v54 = vld [vmem:[%s8206_s3 + $0x540] sm:$0xff]  }
 0x147   : > { %v1076_v61 = vpop.f32.mrb[30].mxu0  ;;  %6052 = vmatpush3.bf16.msra.mxu0 %v6536_v34  ;;  %v5695_v62 = vpop.f32.mrb[29].mxu1  ;;  %v5070_v34 = vcombine.low %v3344_v41, %v7665_v22  ;;  %v6556_v22 = vld [vmem:[%s8206_s3 + $0x538] sm:$0xff]   ;;  %v6570_v41 = vld [vmem:[%s8206_s3 + $0x5e0] sm:$0xff]  }
 0x148   : > { %v1091_v3 = vadd.f32 %v1076_v61, %v7624_v60  ;;  %v7736_v4 = vadd.f32 %v1213_v48, %v1090_v57  ;;  %6080 = vmatpush3.bf16.msra.mxu1 %v6537_v42  ;;  %v1216_v5 = vpop.f32.mrb[30].mxu1  ;;  %6093 = vmatprep.subr.bf16.mxu0 %v6649_v1  ;;  %v5668_v6 = vpop.f32.mrb[31].mxu0  ;;  %v6542_v60 = vld [vmem:[%s8206_s3 + $0x508] sm:$0xff]   ;;  %v6555_v42 = vld [vmem:[%s8206_s3 + $0x570] sm:$0xff]   ;;  %v3366_v48 = vrot.slane %v7687_v29, 1  ;;  %v6557_v61 = vld [vmem:[%s8206_s3 + $0x578] sm:$0xff]  }
 0x149   : > { %6121 = vmatprep.subr.bf16.mxu1 %v6649_v1  ;;  %v5696_v9 = vpop.f32.mrb[31].mxu1  ;;  %v3484_v62 = vld [vmem:[%s7290_s26 + $0x4] sm:$0xf] }
 0x14a   : > { %v7745_v10 = vadd.f32 %v1216_v5, %v1091_v3  ;;  %6054 = vmatmul.mubr.bf16.vlgmr.msra.gmra.mrb[108].mxu0 %v7676_v25  ;;  %v6560_v9 = vld [vmem:[%s8206_s3 + $0x580] sm:$0xff]  }
 0x14b   : > { %6082 = vmatmul.mubr.bf16.vlgmr.msra.gmra.mrb[108].mxu1 %v3218_v63  ;;  %6094 = vmatpush3.bf16.msra.mxu0 %v6540_v0  ;;  %v7837_v63 = vld [vmem:[%s7290_s26 + $0x8] sm:$0xf] }
 0x14c   : > { %6122 = vmatpush3.bf16.msra.mxu1 %v6541_v54  ;;  %6095 = vmatprep.subr.bf16.mxu0 %v6649_v1  ;;  %v7843_v8 = vcombine.low %v3484_v62, %v7837_v63  ;;  %v6576_v62 = vld [vmem:[%s8206_s3 + $0x5f0] sm:$0xff]  }
 0x14d   : > { %v1081_v14 = vpop.f32.mrb[32].mxu0  ;;  %6123 = vmatprep.subr.bf16.mxu1 %v6649_v1  ;;  %6057 = vmatprep.mubr.msk.bf16.mxu0 %vm6650_vm0, %v6649_v1 }
 0x14e   : > { %v1092_v15 = vadd.f32 %v1081_v14, %v7645_v12  ;;  %v5671_v16 = vpop.f32.mrb[33].mxu0  ;;  %v1221_v2 = vpop.f32.mrb[32].mxu1  ;;  %6085 = vmatprep.mubr.msk.bf16.mxu1 %vm6650_vm0, %v6649_v1  ;;  %v6545_v12 = vld [vmem:[%s8206_s3 + $0x550] sm:$0xff]  }
 0x14f   : > { %v1084_v18 = vpop.f32.mrb[34].mxu0  ;;  %6096 = vmatpush3.bf16.msra.mxu0 %v6542_v60  ;;  %v5699_v19 = vpop.f32.mrb[33].mxu1  ;;  %v3368_v16 = vrot.slane %v7727_v56, 1 }
 0x150   : > { %v1093_v23 = vadd.f32 %v1084_v18, %v7653_v17  ;;  %v7765_v24 = vadd.f32 %v1221_v2, %v1092_v15  ;;  %6124 = vmatpush3.bf16.msra.mxu1 %v6543_v11  ;;  %v1224_v25 = vpop.f32.mrb[34].mxu1  ;;  %6097 = vmatprep.subr.bf16.mxu0 %v6649_v1  ;;  %v5672_v20 = vpop.f32.mrb[35].mxu0  ;;  %v6547_v17 = vld [vmem:[%s8206_s3 + $0x518] sm:$0xff]   ;;  %v6563_v2 = vld [vmem:[%s8206_s3 + $0x5c8] sm:$0xff]  }
 0x151   : > { %6125 = vmatprep.subr.bf16.mxu1 %v6649_v1  ;;  %v5700_v30 = vpop.f32.mrb[35].mxu1  ;;  %v7878_v20 = vld [vmem:[%s7290_s26 + $0xc] sm:$0xff]  }
 0x152   : > { %v7773_v31 = vadd.f32 %v1224_v25, %v1093_v23  ;;  %6058 = vmatmul.mubr.bf16.gmra.mrb[112].mxu0 %v7687_v29 }
 0x153   : > { %6098 = vmatpush3.bf16.msra.mxu0 %v6544_v21  ;;  %6086 = vmatmul.mubr.bf16.gmra.mrb[112].mxu1 %v3226_v26  ;;  %v6564_v26 = vld [vmem:[%s8206_s3 + $0x590] sm:$0xff]  }
 0x154   : > { %6126 = vmatpush3.bf16.msra.mxu1 %v6545_v12  ;;  %6099 = vmatprep.subr.bf16.mxu0 %v6649_v1  ;;  %v3369_v12 = vsel %vm664_vm2, %v3366_v48, %v3368_v16 }
 0x155   : > { %6127 = vmatprep.subr.bf16.mxu1 %v6649_v1  ;;  %6061 = vmatprep.mubr.msk.bf16.mxu0 %vm6650_vm0, %v6649_v1 }
 0x156   : > { %6089 = vmatprep.mubr.msk.bf16.mxu1 %vm6650_vm0, %v6649_v1 }
 0x157   : > { %6100 = vmatpush3.bf16.msra.mxu0 %v6547_v17 }
 0x158   : > { %6128 = vmatpush3.bf16.msra.mxu1 %v6548_v36  ;;  %6101 = vmatprep.subr.bf16.mxu0 %v6649_v1 }
 0x159   : > { %6129 = vmatprep.subr.bf16.mxu1 %v6649_v1 }
 0x15a   : > { %6062 = vmatmul.mubr.bf16.gmra.mrb[116].mxu0 %v5020_v28 }
 0x15b   : > { %6102 = vmatpush3.bf16.msra.mxu0 %v6550_v37  ;;  %6090 = vmatmul.mubr.bf16.gmra.mrb[116].mxu1 %v3229_v38  ;;  %v6568_v37 = vld [vmem:[%s8206_s3 + $0x5d8] sm:$0xff]   ;;  %v3488_v38 = vld [vmem:[%s7290_s26 + $0x14] sm:$0xf] }
 0x15c   : > { %6130 = vmatpush3.bf16.msra.mxu1 %v6551_v35  ;;  %6103 = vmatprep.subr.bf16.mxu0 %v6649_v1  ;;  %v3489_v35 = vld [vmem:[%s7290_s26 + $0x18] sm:$0x7] }
 0x15d   : > { %v1357_v43 = vpop.f32.mrb[36].mxu0  ;;  %6131 = vmatprep.subr.bf16.mxu1 %v6649_v1  ;;  %6109 = vmatprep.mubr.msk.bf16.mxu0 %vm6650_vm0, %v6649_v1 }
 0x15e   : > { %v1380_v44 = vadd.f32 %v1357_v43, %v7705_v27  ;;  %v1515_v45 = vpop.f32.mrb[36].mxu1  ;;  %v5719_v46 = vpop.f32.mrb[37].mxu0  ;;  %6137 = vmatprep.mubr.msk.bf16.mxu1 %vm6650_vm0, %v6649_v1  ;;  %v6573_v43 = vld [vmem:[%s8206_s3 + $0x5a8] sm:$0xff]  }
 0x15f   : > { %v5747_v47 = vpop.f32.mrb[37].mxu1  ;;  %v1360_v49 = vpop.f32.mrb[38].mxu0  ;;  %6104 = vmatpush3.bf16.msra.mxu0 %v6552_v39  ;;  %v6569_v39 = vld [vmem:[%s8206_s3 + $0x5a0] sm:$0xff]  }
 0x160   : > { %v7817_v52 = vadd.f32 %v1515_v45, %v1380_v44  ;;  %v1381_v53 = vadd.f32 %v1360_v49, %v7717_v51  ;;  %v1518_v27 = vpop.f32.mrb[38].mxu1  ;;  %6132 = vmatpush3.bf16.msra.mxu1 %v6553_v40  ;;  %6105 = vmatprep.subr.bf16.mxu0 %v6649_v1  ;;  %v5720_v55 = vpop.f32.mrb[39].mxu0  ;;  %v3365_v51 = vrot.slane %v5070_v34, 1  ;;  %v5097_v40 = vcombine.low %v3488_v38, %v3489_v35  ;;  %v6574_v45 = vld [vmem:[%s8206_s3 + $0x5e8] sm:$0xff]   ;;  %v3794_v47 = vld [vmem:[%s7290_s26 + $0x4] sm:$0xe] }
 0x161   : > { %v5748_v57 = vpop.f32.mrb[39].mxu1  ;;  %6133 = vmatprep.subr.bf16.mxu1 %v6649_v1  ;;  %v3660_v44 = vshll.u32 %v7843_v8, 16  ;;  %v3658_v55 = vshrl.u32 %v7843_v8, 16 }
 0x162   : > { %v7825_v59 = vadd.f32 %v1518_v27, %v1381_v53  ;;  %v3367_v7 = vsel %vm664_vm2, %v3365_v51, %v3366_v48  ;;  %v3636_v51 = vld [vmem:[%s7290_s26 + $0x18] sm:$0xf] }
 0x163   : > { %6106 = vmatpush3.bf16.msra.mxu0 %v6554_v50  ;;  %v3662_v57 = vrot.slane %v3660_v44, 1 }
 0x164   : > { %6134 = vmatpush3.bf16.msra.mxu1 %v6555_v42  ;;  %6107 = vmatprep.subr.bf16.mxu0 %v6649_v1  ;;  %v6575_v42 = vld [vmem:[%s8206_s3 + $0x5b0] sm:$0xff]  }
 0x165   : > { %v1365_v0 = vpop.f32.mrb[40].mxu0  ;;  %6135 = vmatprep.subr.bf16.mxu1 %v6649_v1 }
 0x166   : > { %v1382_v3 = vadd.f32 %v1365_v0, %v7736_v4  ;;  %v5723_v5 = vpop.f32.mrb[41].mxu0  ;;  %v1523_v54 = vpop.f32.mrb[40].mxu1 }
 0x167   : > { %v1368_v6 = vpop.f32.mrb[42].mxu0  ;;  %6108 = vmatpush3.bf16.msra.mxu0 %v6556_v22  ;;  %v5751_v29 = vpop.f32.mrb[41].mxu1  ;;  %v3665_v22 = vshll.u32 %v7878_v20, 16 }
 0x168   : > { %v1383_v60 = vadd.f32 %v1368_v6, %v7745_v10  ;;  %v7849_v11 = vadd.f32 %v1523_v54, %v1382_v3  ;;  %6136 = vmatpush3.bf16.msra.mxu1 %v6557_v61  ;;  %v1526_v4 = vpop.f32.mrb[42].mxu1  ;;  %6149 = vmatprep.subr.bf16.mxu0 %v6649_v1  ;;  %v5724_v13 = vpop.f32.mrb[43].mxu0  ;;  %v6562_v10 = vld [vmem:[%s8206_s3 + $0x588] sm:$0xff]   ;;  %v5147_v3 = vcombine.low %v3794_v47, %v7837_v63  ;;  %v6578_v63 = vld [vmem:[%s8206_s3 + $0x5f8] sm:$0xff]  }
 0x169   : > { %6177 = vmatprep.subr.bf16.mxu1 %v6649_v1  ;;  %v5752_v14 = vpop.f32.mrb[43].mxu1  ;;  %v7945_v6 = vcombine.low %v3488_v38, %v3636_v51  ;;  %v3663_v29 = vor.u32 %v3662_v57, %v3658_v55  ;;  %v6588_v57 = vld [vmem:[%s8206_s3 + $0x620] sm:$0xff]  }
 0x16a   : > { %v7856_v15 = vadd.f32 %v1526_v4, %v1383_v60  ;;  %6110 = vmatmul.mubr.bf16.vlgmr.msra.gmra.mrb[120].mxu0 %v3367_v7  ;;  %v3667_v7 = vrot.slane %v3665_v22, 1  ;;  %v6589_v51 = vld [vmem:[%s8206_s3 + $0x660] sm:$0xff]  }
 0x16b   : > { %6138 = vmatmul.mubr.bf16.vlgmr.msra.gmra.mrb[120].mxu1 %v7843_v8  ;;  %6150 = vmatpush3.bf16.msra.mxu0 %v6560_v9  ;;  %v3815_v8 = vrot.slane %v5147_v3, 1  ;;  %v3816_v9 = vrot.slane %v7878_v20, 1 }
 0x16c   : > { %6178 = vmatpush3.bf16.msra.mxu1 %v6561_v58  ;;  %6151 = vmatprep.subr.bf16.mxu0 %v6649_v1 }
 0x16d   : > { %v1373_v18 = vpop.f32.mrb[44].mxu0  ;;  %6179 = vmatprep.subr.bf16.mxu1 %v6649_v1  ;;  %6113 = vmatprep.mubr.msk.bf16.mxu0 %vm6650_vm0, %v6649_v1 }
 0x16e   : > { %v1384_v19 = vadd.f32 %v1373_v18, %v7765_v24  ;;  %v5727_v21 = vpop.f32.mrb[45].mxu0  ;;  %v1531_v23 = vpop.f32.mrb[44].mxu1  ;;  %6141 = vmatprep.mubr.msk.bf16.mxu1 %vm6650_vm0, %v6649_v1  ;;  %v3669_v18 = vshrl.u32 %v7878_v20, 16 }
 0x16f   : > { %v1376_v56 = vpop.f32.mrb[46].mxu0  ;;  %6152 = vmatpush3.bf16.msra.mxu0 %v6562_v10  ;;  %v5755_v25 = vpop.f32.mrb[45].mxu1 }
 0x170   : > { %v1385_v30 = vadd.f32 %v1376_v56, %v7773_v31  ;;  %v7881_v17 = vadd.f32 %v1531_v23, %v1384_v19  ;;  %6180 = vmatpush3.bf16.msra.mxu1 %v6563_v2  ;;  %v1534_v24 = vpop.f32.mrb[46].mxu1  ;;  %6153 = vmatprep.subr.bf16.mxu0 %v6649_v1  ;;  %v5728_v33 = vpop.f32.mrb[47].mxu0  ;;  %v6567_v31 = vld [vmem:[%s8206_s3 + $0x598] sm:$0xff]   ;;  %v6580_v2 = vld [vmem:[%s8206_s3 + $0x600] sm:$0xff]   ;;  %v3673_v19 = vshll.u32 %v7945_v6, 16  ;;  %v3817_v56 = vsel %vm664_vm2, %v3815_v8, %v3816_v9 }
 0x171   : > { %6181 = vmatprep.subr.bf16.mxu1 %v6649_v1  ;;  %v5756_v36 = vpop.f32.mrb[47].mxu1  ;;  %v6581_v25 = vld [vmem:[%s8206_s3 + $0x640] sm:$0xff]   ;;  %v3818_v33 = vrot.slane %v7945_v6, 1 }
 0x172   : > { %v7888_v28 = vadd.f32 %v1534_v24, %v1385_v30  ;;  %6114 = vmatmul.mubr.bf16.gmra.mrb[124].mxu0 %v3369_v12  ;;  %v3671_v30 = vor.u32 %v3669_v18, %v3667_v7  ;;  %v3675_v24 = vrot.slane %v3673_v19, 1 }
 0x173   : > { %6154 = vmatpush3.bf16.msra.mxu0 %v6564_v26  ;;  %6142 = vmatmul.mubr.bf16.gmra.mrb[124].mxu1 %v7878_v20 }
 0x174   : > { %6182 = vmatpush3.bf16.msra.mxu1 %v6565_v32  ;;  %6155 = vmatprep.subr.bf16.mxu0 %v6649_v1  ;;  %v6583_v32 = vld [vmem:[%s8206_s3 + $0x648] sm:$0xff]  }
 0x175   : > { %6183 = vmatprep.subr.bf16.mxu1 %v6649_v1  ;;  %6117 = vmatprep.mubr.msk.bf16.mxu0 %vm6650_vm0, %v6649_v1 }
 0x176   : > { %6145 = vmatprep.mubr.msk.bf16.mxu1 %vm6650_vm0, %v6649_v1 }
 0x177   : > { %6156 = vmatpush3.bf16.msra.mxu0 %v6567_v31 }
 0x178   : > { %6184 = vmatpush3.bf16.msra.mxu1 %v6568_v37  ;;  %6157 = vmatprep.subr.bf16.mxu0 %v6649_v1 }
 0x179   : > { %6185 = vmatprep.subr.bf16.mxu1 %v6649_v1 }
 0x17a   : > { %6118 = vmatmul.mubr.bf16.gmra.mrb[128].mxu0 %v3368_v16  ;;  %v3668_v16 = vsel %vm400_vm1, %v3663_v29, %v3667_v7 }
 0x17b   : > { %6158 = vmatpush3.bf16.msra.mxu0 %v6569_v39  ;;  %6146 = vmatmul.mubr.bf16.gmra.mrb[128].mxu1 %v5097_v40  ;;  %v3676_v40 = vsel %vm400_vm1, %v3671_v30, %v3675_v24 }
 0x17c   : > { %6186 = vmatpush3.bf16.msra.mxu1 %v6570_v41  ;;  %6159 = vmatprep.subr.bf16.mxu0 %v6649_v1  ;;  %v6584_v41 = vld [vmem:[%s8206_s3 + $0x610] sm:$0xff]  }
 0x17d   : > { %v1655_v46 = vpop.f32.mrb[48].mxu0  ;;  %6187 = vmatprep.subr.bf16.mxu1 %v6649_v1  ;;  %6165 = vmatprep.mubr.msk.bf16.mxu0 %vm6650_vm0, %v6649_v1 }
 0x17e   : > { %v1678_v49 = vadd.f32 %v1655_v46, %v7817_v52  ;;  %v1807_v50 = vpop.f32.mrb[48].mxu1  ;;  %v5775_v34 = vpop.f32.mrb[49].mxu0  ;;  %6193 = vmatprep.mubr.msk.bf16.mxu1 %vm6650_vm0, %v6649_v1  ;;  %v3819_v46 = vsel %vm664_vm2, %v3816_v9, %v3818_v33 }
 0x17f   : > { %v5803_v53 = vpop.f32.mrb[49].mxu1  ;;  %v1658_v27 = vpop.f32.mrb[50].mxu0  ;;  %6160 = vmatpush3.bf16.msra.mxu0 %v6573_v43  ;;  %v6586_v34 = vld [vmem:[%s8206_s3 + $0x618] sm:$0xff]  }
 0x180   : > { %v7934_v48 = vadd.f32 %v1807_v50, %v1678_v49  ;;  %v1679_v52 = vadd.f32 %v1658_v27, %v7825_v59  ;;  %v1810_v61 = vpop.f32.mrb[50].mxu1  ;;  %6188 = vmatpush3.bf16.msra.mxu1 %v6574_v45  ;;  %6161 = vmatprep.subr.bf16.mxu0 %v6649_v1  ;;  %v5776_v0 = vpop.f32.mrb[51].mxu0  ;;  %v6577_v59 = vld [vmem:[%s8206_s3 + $0x5b8] sm:$0xff]   ;;  %v6585_v45 = vld [vmem:[%s8206_s3 + $0x650] sm:$0xff]   ;;  %v3934_v27 = vld [vmem:[%s7290_s26 + $0x8] sm:$0xf] }
 0x181   : > { %v5804_v5 = vpop.f32.mrb[51].mxu1  ;;  %6189 = vmatprep.subr.bf16.mxu1 %v6649_v1  ;;  %v6587_v53 = vld [vmem:[%s8206_s3 + $0x658] sm:$0xff]   ;;  %v6591_v0 = vld [vmem:[%s8206_s3 + $0x668] sm:$0xff]  }
 0x182   : > { %v7943_v54 = vadd.f32 %v1810_v61, %v1679_v52  ;;  %v6590_v52 = vld [vmem:[%s8206_s3 + $0x628] sm:$0xff]   ;;  %v8035_v61 = vld [vmem:[%s7290_s26 + $0x10] sm:$0xff]  }
 0x183   : > { %6162 = vmatpush3.bf16.msra.mxu0 %v6575_v42  ;;  %v8013_v42 = vld [vmem:[%s7290_s26 + $0xc] sm:$0xf] }
 0x184   : > { %6190 = vmatpush3.bf16.msra.mxu1 %v6576_v62  ;;  %6163 = vmatprep.subr.bf16.mxu0 %v6649_v1  ;;  %v8024_v22 = vcombine.low %v3934_v27, %v8013_v42 }
 0x185   : > { %v1663_v60 = vpop.f32.mrb[52].mxu0  ;;  %6191 = vmatprep.subr.bf16.mxu1 %v6649_v1 }
 0x186   : > { %v1680_v4 = vadd.f32 %v1663_v60, %v7849_v11  ;;  %v5779_v58 = vpop.f32.mrb[53].mxu0  ;;  %v1815_v13 = vpop.f32.mrb[52].mxu1  ;;  %v4110_v62 = vshll.u32 %v8024_v22, 16  ;;  %v4108_v8 = vshrl.u32 %v8024_v22, 16  ;;  %v4115_v60 = vshll.u32 %v8035_v61, 16 }
 0x187   : > { %v1666_v14 = vpop.f32.mrb[54].mxu0  ;;  %6164 = vmatpush3.bf16.msra.mxu0 %v6577_v59  ;;  %v5807_v10 = vpop.f32.mrb[53].mxu1 }
 0x188   : > { %v1681_v21 = vadd.f32 %v1666_v14, %v7856_v15  ;;  %v7964_v23 = vadd.f32 %v1815_v13, %v1680_v4  ;;  %6192 = vmatpush3.bf16.msra.mxu1 %v6578_v63  ;;  %v1818_v11 = vpop.f32.mrb[54].mxu1  ;;  %6205 = vmatprep.subr.bf16.mxu0 %v6649_v1  ;;  %v5780_v12 = vpop.f32.mrb[55].mxu0  ;;  %v6582_v15 = vld [vmem:[%s8206_s3 + $0x608] sm:$0xff]   ;;  %v6592_v63 = vld [vmem:[%s8206_s3 + $0x630] sm:$0xff]   ;;  %v4112_v9 = vrot.slane %v4110_v62, 1 }
 0x189   : > { %6233 = vmatprep.subr.bf16.mxu1 %v6649_v1  ;;  %v5808_v26 = vpop.f32.mrb[55].mxu1  ;;  %v6593_v13 = vld [vmem:[%s8206_s3 + $0x670] sm:$0xff]  }
 0x18a   : > { %v7972_v20 = vadd.f32 %v1818_v11, %v1681_v21  ;;  %6166 = vmatmul.mubr.bf16.vlgmr.msra.gmra.mrb[132].mxu0 %v3668_v16  ;;  %v8062_v16 = vld [vmem:[%s7290_s26 + $0x18] sm:$0xf]  ;;  %v4113_v19 = vor.u32 %v4112_v9, %v4108_v8  ;;  %v4117_v21 = vrot.slane %v4115_v60, 1 }
 0x18b   : > { %6194 = vmatmul.mubr.bf16.vlgmr.msra.gmra.mrb[132].mxu1 %v3817_v56  ;;  %6206 = vmatpush3.bf16.msra.mxu0 %v6580_v2  ;;  %v4086_v2 = vld [vmem:[%s7290_s26 + $0x1c] sm:$0xf] }
 0x18c   : > { %6234 = vmatpush3.bf16.msra.mxu1 %v6581_v25  ;;  %6207 = vmatprep.subr.bf16.mxu0 %v6649_v1  ;;  %v6595_v11 = vld [vmem:[%s8206_s3 + $0x678] sm:$0xff]   ;;  %v8075_v56 = vcombine.low %v8062_v16, %v4086_v2 }
 0x18d   : > { %v1671_v36 = vpop.f32.mrb[56].mxu0  ;;  %6235 = vmatprep.subr.bf16.mxu1 %v6649_v1  ;;  %6169 = vmatprep.mubr.msk.bf16.mxu0 %vm6650_vm0, %v6649_v1 }
 0x18e   : > { %v1682_v31 = vadd.f32 %v1671_v36, %v7881_v17  ;;  %v5783_v37 = vpop.f32.mrb[57].mxu0  ;;  %v1823_v38 = vpop.f32.mrb[56].mxu1  ;;  %6197 = vmatprep.mubr.msk.bf16.mxu1 %vm6650_vm0, %v6649_v1  ;;  %v4127_v62 = vshrl.u32 %v8075_v56, 16 }
 0x18f   : > { %v1674_v35 = vpop.f32.mrb[58].mxu0  ;;  %6208 = vmatpush3.bf16.msra.mxu0 %v6582_v15  ;;  %v5811_v39 = vpop.f32.mrb[57].mxu1 }
 0x190   : > { %v1683_v43 = vadd.f32 %v1674_v35, %v7888_v28  ;;  %v7993_v44 = vadd.f32 %v1823_v38, %v1682_v31  ;;  %6236 = vmatpush3.bf16.msra.mxu1 %v6583_v32  ;;  %v1826_v17 = vpop.f32.mrb[58].mxu1  ;;  %6209 = vmatprep.subr.bf16.mxu0 %v6649_v1  ;;  %v5784_v47 = vpop.f32.mrb[59].mxu0  ;;  %v3677_v28 = vshrl.u32 %v7945_v6, 16  ;;  %v4118_v32 = vsel %vm400_vm1, %v4113_v19, %v4117_v21 }
 0x191   : > { %6237 = vmatprep.subr.bf16.mxu1 %v6649_v1  ;;  %v5812_v49 = vpop.f32.mrb[59].mxu1  ;;  %v4119_v38 = vshrl.u32 %v8035_v61, 16  ;;  %v4123_v35 = vshll.u32 %v8075_v56, 16 }
 0x192   : > { %v8001_v50 = vadd.f32 %v1826_v17, %v1683_v43  ;;  %6170 = vmatmul.mubr.bf16.gmra.mrb[136].mxu0 %v3676_v40  ;;  %v3679_v55 = vor.u32 %v3677_v28, %v3675_v24 }
 0x193   : > { %6210 = vmatpush3.bf16.msra.mxu0 %v6584_v41  ;;  %6198 = vmatmul.mubr.bf16.gmra.mrb[136].mxu1 %v3819_v46  ;;  %v4121_v41 = vor.u32 %v4119_v38, %v4117_v21  ;;  %v4125_v43 = vrot.slane %v4123_v35, 1 }
 0x194   : > { %6238 = vmatpush3.bf16.msra.mxu1 %v6585_v45  ;;  %6211 = vmatprep.subr.bf16.mxu0 %v6649_v1 }
 0x195   : > { %6239 = vmatprep.subr.bf16.mxu1 %v6649_v1  ;;  %6173 = vmatprep.mubr.msk.bf16.mxu0 %vm6650_vm0, %v6649_v1 }
 0x196   : > { %6201 = vmatprep.mubr.msk.bf16.mxu1 %vm6650_vm0, %v6649_v1 }
 0x197   : > { %6212 = vmatpush3.bf16.msra.mxu0 %v6586_v34  ;;  %v6600_v34 = vld [vmem:[%s8206_s3 + $0x690] sm:$0xff]  }
 0x198   : > { %6240 = vmatpush3.bf16.msra.mxu1 %v6587_v53  ;;  %6213 = vmatprep.subr.bf16.mxu0 %v6649_v1 }
 0x199   : > { %6241 = vmatprep.subr.bf16.mxu1 %v6649_v1 }
 0x19a   : > { %6174 = vmatmul.mubr.bf16.gmra.mrb[140].mxu0 %v3679_v55 }
 0x19b   : > { %6214 = vmatpush3.bf16.msra.mxu0 %v6588_v57  ;;  %6202 = vmatmul.mubr.bf16.gmra.mrb[140].mxu1 %v3818_v33  ;;  %v6598_v33 = vld [vmem:[%s8206_s3 + $0x680] sm:$0xff]  }
 0x19c   : > { %6242 = vmatpush3.bf16.msra.mxu1 %v6589_v51  ;;  %6215 = vmatprep.subr.bf16.mxu0 %v6649_v1 }
 0x19d   : > { %v1965_v3 = vpop.f32.mrb[60].mxu0  ;;  %6243 = vmatprep.subr.bf16.mxu1 %v6649_v1  ;;  %6221 = vmatprep.mubr.msk.bf16.mxu0 %vm6650_vm0, %v6649_v1 }
 0x19e   : > { %v1988_v5 = vadd.f32 %v1965_v3, %v7934_v48  ;;  %v2105_v6 = vpop.f32.mrb[60].mxu1  ;;  %v5831_v59 = vpop.f32.mrb[61].mxu0  ;;  %6249 = vmatprep.mubr.msk.bf16.mxu1 %vm6650_vm0, %v6649_v1  ;;  %v6604_v3 = vld [vmem:[%s8206_s3 + $0x6a0] sm:$0xff]  }
 0x19f   : > { %v5859_v29 = vpop.f32.mrb[61].mxu1  ;;  %v1968_v7 = vpop.f32.mrb[62].mxu0  ;;  %6216 = vmatpush3.bf16.msra.mxu0 %v6590_v52  ;;  %v3939_v52 = vld [vmem:[%s7290_s26 + $0x1c] sm:$0x7]  ;;  %v4244_v59 = vld [vmem:[%s7290_s26 + $0x8] sm:$0xe] }
 0x1a0   : > { %v8053_v48 = vadd.f32 %v2105_v6, %v1988_v5  ;;  %v1989_v4 = vadd.f32 %v1968_v7, %v7943_v54  ;;  %v2108_v58 = vpop.f32.mrb[62].mxu1  ;;  %6244 = vmatpush3.bf16.msra.mxu1 %v6591_v0  ;;  %6217 = vmatprep.subr.bf16.mxu0 %v6649_v1  ;;  %v5832_v14 = vpop.f32.mrb[63].mxu0  ;;  %v6594_v54 = vld [vmem:[%s8206_s3 + $0x638] sm:$0xff]   ;;  %v5174_v0 = vcombine.low %v8062_v16, %v3939_v52  ;;  %v6605_v6 = vld [vmem:[%s8206_s3 + $0x6a8] sm:$0xff]  }
 0x1a1   : > { %v5860_v10 = vpop.f32.mrb[63].mxu1  ;;  %6245 = vmatprep.subr.bf16.mxu1 %v6649_v1  ;;  %v4129_v5 = vor.u32 %v4127_v62, %v4125_v43 }
 0x1a2   : > { %v8065_v18 = vadd.f32 %v2108_v58, %v1989_v4  ;;  %v6606_v4 = vld [vmem:[%s8206_s3 + $0x6b0] sm:$0xff]   ;;  %v5224_v58 = vcombine.low %v4244_v59, %v8013_v42  ;;  %v4266_v42 = vrot.slane %v8035_v61, 1 }
 0x1a3   : > { %6218 = vmatpush3.bf16.msra.mxu0 %v6592_v63 }
 0x1a4   : > { %6246 = vmatpush3.bf16.msra.mxu1 %v6593_v13  ;;  %6219 = vmatprep.subr.bf16.mxu0 %v6649_v1  ;;  %v4265_v19 = vrot.slane %v5224_v58, 1 }
 0x1a5   : > { %v1973_v25 = vpop.f32.mrb[64].mxu0  ;;  %6247 = vmatprep.subr.bf16.mxu1 %v6649_v1 }
 0x1a6   : > { %v1990_v12 = vadd.f32 %v1973_v25, %v7964_v23  ;;  %v5835_v26 = vpop.f32.mrb[65].mxu0  ;;  %v2113_v15 = vpop.f32.mrb[64].mxu1 }
 0x1a7   : > { %v1976_v30 = vpop.f32.mrb[66].mxu0  ;;  %6220 = vmatpush3.bf16.msra.mxu0 %v6594_v54  ;;  %v5863_v24 = vpop.f32.mrb[65].mxu1  ;;  %v6607_v54 = vld [vmem:[%s8206_s3 + $0x6b8] sm:$0xff]  }
 0x1a8   : > { %v1991_v36 = vadd.f32 %v1976_v30, %v7972_v20  ;;  %v8084_v31 = vadd.f32 %v2113_v15, %v1990_v12  ;;  %6248 = vmatpush3.bf16.msra.mxu1 %v6595_v11  ;;  %v2116_v37 = vpop.f32.mrb[66].mxu1  ;;  %6261 = vmatprep.subr.bf16.mxu0 %v6649_v1  ;;  %v5836_v23 = vpop.f32.mrb[67].mxu0  ;;  %v6599_v20 = vld [vmem:[%s8206_s3 + $0x688] sm:$0xff]   ;;  %v4267_v30 = vsel %vm664_vm2, %v4265_v19, %v4266_v42 }
 0x1a9   : > { %6289 = vmatprep.subr.bf16.mxu1 %v6649_v1  ;;  %v5864_v39 = vpop.f32.mrb[67].mxu1 }
 0x1aa   : > { %v8090_v40 = vadd.f32 %v2116_v37, %v1991_v36  ;;  %6222 = vmatmul.mubr.bf16.vlgmr.msra.gmra.mrb[144].mxu0 %v8024_v22 }
 0x1ab   : > { %6250 = vmatmul.mubr.bf16.vlgmr.msra.gmra.mrb[144].mxu1 %v4118_v32  ;;  %6262 = vmatpush3.bf16.msra.mxu0 %v6598_v33 }
 0x1ac   : > { %6297 = vmatpush3.bf16.msra.mxu1 %v6598_v33  ;;  %6263 = vmatprep.subr.bf16.mxu0 %v6649_v1 }
 0x1ad   : > { %v1981_v17 = vpop.f32.mrb[68].mxu0  ;;  %6290 = vmatprep.subr.bf16.mxu1 %v6649_v1  ;;  %6225 = vmatprep.mubr.msk.bf16.mxu0 %vm6650_vm0, %v6649_v1 }
 0x1ae   : > { %v1992_v45 = vadd.f32 %v1981_v17, %v7993_v44  ;;  %v5839_v46 = vpop.f32.mrb[69].mxu0  ;;  %v2121_v47 = vpop.f32.mrb[68].mxu1  ;;  %6253 = vmatprep.mubr.msk.bf16.mxu1 %vm6650_vm0, %v6649_v1  ;;  %v4126_v44 = vsel %vm400_vm1, %v4121_v41, %v4125_v43 }
 0x1af   : > { %v1984_v49 = vpop.f32.mrb[70].mxu0  ;;  %6264 = vmatpush3.bf16.msra.mxu0 %v6599_v20  ;;  %v5867_v28 = vpop.f32.mrb[69].mxu1 }
 0x1b0   : > { %v1993_v53 = vadd.f32 %v1984_v49, %v8001_v50  ;;  %v8107_v27 = vadd.f32 %v2121_v47, %v1992_v45  ;;  %6298 = vmatpush3.bf16.msra.mxu1 %v6599_v20  ;;  %v2124_v55 = vpop.f32.mrb[70].mxu1  ;;  %6265 = vmatprep.subr.bf16.mxu0 %v6649_v1  ;;  %v5840_v57 = vpop.f32.mrb[71].mxu0  ;;  %v6602_v50 = vld [vmem:[%s8206_s3 + $0x698] sm:$0xff]  }
 0x1b1   : > { %6291 = vmatprep.subr.bf16.mxu1 %v6649_v1  ;;  %v5868_v22 = vpop.f32.mrb[71].mxu1 }
 0x1b2   : > { %v8112_v51 = vadd.f32 %v2124_v55, %v1993_v53  ;;  %6226 = vmatmul.mubr.bf16.gmra.mrb[148].mxu0 %v8035_v61 }
 0x1b3   : > { %6266 = vmatpush3.bf16.msra.mxu0 %v6600_v34  ;;  %6254 = vmatmul.mubr.bf16.gmra.mrb[148].mxu1 %v4126_v44 }
 0x1b4   : > { %6299 = vmatpush3.bf16.msra.mxu1 %v6600_v34  ;;  %6267 = vmatprep.subr.bf16.mxu0 %v6649_v1 }
 0x1b5   : > { %6292 = vmatprep.subr.bf16.mxu1 %v6649_v1  ;;  %6229 = vmatprep.mubr.msk.bf16.mxu0 %vm6650_vm0, %v6649_v1 }
 0x1b6   : > { %6257 = vmatprep.mubr.msk.bf16.mxu1 %vm6650_vm0, %v6649_v1 }
 0x1b7   : > { %6268 = vmatpush3.bf16.msra.mxu0 %v6602_v50 }
 0x1b8   : > { %6300 = vmatpush3.bf16.msra.mxu1 %v6602_v50  ;;  %6269 = vmatprep.subr.bf16.mxu0 %v6649_v1 }
 0x1b9   : > { %6293 = vmatprep.subr.bf16.mxu1 %v6649_v1 }
 0x1ba   : > { %6230 = vmatmul.mubr.bf16.gmra.mrb[152].mxu0 %v5174_v0 }
 0x1bb   : > { %6270 = vmatpush3.bf16.msra.mxu0 %v6604_v3  ;;  %6258 = vmatmul.mubr.bf16.gmra.mrb[152].mxu1 %v4129_v5 }
 0x1bc   : > { %6301 = vmatpush3.bf16.msra.mxu1 %v6604_v3  ;;  %6271 = vmatprep.subr.bf16.mxu0 %v6649_v1 }
 0x1bd   : > { %v2257_v29 = vpop.f32.mrb[72].mxu0  ;;  %6294 = vmatprep.subr.bf16.mxu1 %v6649_v1  ;;  %6277 = vmatprep.mubr.msk.bf16.mxu0 %vm6650_vm0, %v6649_v1 }
 0x1be   : > { %v2280_v7 = vadd.f32 %v2257_v29, %v8053_v48  ;;  %v2415_v63 = vpop.f32.mrb[72].mxu1  ;;  %v5887_v8 = vpop.f32.mrb[73].mxu0  ;;  %6281 = vmatprep.mubr.msk.bf16.mxu1 %vm6650_vm0, %v6649_v1 }
 0x1bf   : > { %v5915_v9 = vpop.f32.mrb[73].mxu1  ;;  %v2260_v60 = vpop.f32.mrb[74].mxu0  ;;  %6272 = vmatpush3.bf16.msra.mxu0 %v6605_v6 }
 0x1c0   : > { %v2438_v13 = vadd.f32 %v2415_v63, %v2280_v7  ;;  %v2281_v14 = vadd.f32 %v2260_v60, %v8065_v18  ;;  %v2418_v10 = vpop.f32.mrb[74].mxu1  ;;  %6302 = vmatpush3.bf16.msra.mxu1 %v6605_v6  ;;  %6273 = vmatprep.subr.bf16.mxu0 %v6649_v1  ;;  %v5888_v48 = vpop.f32.mrb[75].mxu0  ;;  %v4268_v18 = vrot.slane %v8075_v56, 1 }
 0x1c1   : > { %v5916_v16 = vpop.f32.mrb[75].mxu1  ;;  %6295 = vmatprep.subr.bf16.mxu1 %v6649_v1 }
 0x1c2   : > { %v2439_v2 = vadd.f32 %v2418_v10, %v2281_v14  ;;  %v4269_v33 = vsel %vm664_vm2, %v4266_v42, %v4268_v18 }
 0x1c3   : > { %6274 = vmatpush3.bf16.msra.mxu0 %v6606_v4 }
 0x1c4   : > { %6303 = vmatpush3.bf16.msra.mxu1 %v6606_v4  ;;  %6275 = vmatprep.subr.bf16.mxu0 %v6649_v1 }
 0x1c5   : > { %v2265_v21 = vpop.f32.mrb[76].mxu0  ;;  %6296 = vmatprep.subr.bf16.mxu1 %v6649_v1 }
 0x1c6   : > { %v2282_v11 = vadd.f32 %v2265_v21, %v8084_v31  ;;  %v5891_v25 = vpop.f32.mrb[77].mxu0  ;;  %v2423_v12 = vpop.f32.mrb[76].mxu1 }
 0x1c7   : > { %v2268_v26 = vpop.f32.mrb[78].mxu0  ;;  %6276 = vmatpush3.bf16.msra.mxu0 %v6607_v54  ;;  %v5919_v15 = vpop.f32.mrb[77].mxu1 }
 0x1c8   : > { %v2283_v24 = vadd.f32 %v2268_v26, %v8090_v40  ;;  %v2440_v61 = vadd.f32 %v2423_v12, %v2282_v11  ;;  %6304 = vmatpush3.bf16.msra.mxu1 %v6607_v54  ;;  %v2426_v32 = vpop.f32.mrb[78].mxu1  ;;  %v5892_v56 = vpop.f32.mrb[79].mxu0 }
 0x1c9   : > { %v5920_v36 = vpop.f32.mrb[79].mxu1 }
 0x1ca   : > { %v2441_v37 = vadd.f32 %v2426_v32, %v2283_v24  ;;  %6278 = vmatmul.mubr.bf16.vlgmr.msra.gmra.mrb[156].mxu0 %v4267_v30 }
 0x1cb   : > { %6282 = vmatmul.mubr.bf16.vlgmr.msra.gmra.mrb[156].mxu1 %v4269_v33 }
 0x1cc   : > { %6285 = vmatprep.mubr.msk.bf16.mxu1 %vm6650_vm0, %v6649_v1 }
 0x1cd   : > { %v2273_v31 = vpop.f32.mrb[80].mxu0 }
 0x1ce   : > { %v2284_v23 = vadd.f32 %v2273_v31, %v8107_v27  ;;  %v5895_v38 = vpop.f32.mrb[81].mxu0  ;;  %v2431_v35 = vpop.f32.mrb[80].mxu1 }
 0x1cf   : > { %v2276_v39 = vpop.f32.mrb[82].mxu0  ;;  %v5923_v40 = vpop.f32.mrb[81].mxu1 }
 0x1d0   : > { %v2285_v20 = vadd.f32 %v2276_v39, %v8112_v51  ;;  %v2442_v41 = vadd.f32 %v2431_v35, %v2284_v23  ;;  %v2434_v43 = vpop.f32.mrb[82].mxu1  ;;  %v5896_v17 = vpop.f32.mrb[83].mxu0 }
 0x1d1   : > { %v5924_v45 = vpop.f32.mrb[83].mxu1 }
 0x1d2   : > { %v2443_v46 = vadd.f32 %v2434_v43, %v2285_v20 }
 0x1d3   : > { %6286 = vmatmul.mubr.bf16.gmra.mrb[160].mxu1 %v4268_v18 }
 0x1dd   : > { %v2555_v47 = vpop.f32.mrb[84].mxu0 }
 0x1de   : > { %v2578_v49 = vadd.f32 %v2555_v47, %v2438_v13  ;;  %v2707_v28 = vpop.f32.mrb[84].mxu1  ;;  %v5943_v34 = vpop.f32.mrb[85].mxu0 }
 0x1df   : > { %v5971_v53 = vpop.f32.mrb[85].mxu1  ;;  %v2558_v55 = vpop.f32.mrb[86].mxu0 }
 0x1e0   : > { %v2730_v44 = vadd.f32 %v2707_v28, %v2578_v49  ;;  %v2579_v27 = vadd.f32 %v2558_v55, %v2439_v2  ;;  %v2710_v57 = vpop.f32.mrb[86].mxu1  ;;  %v5944_v22 = vpop.f32.mrb[87].mxu0 }
 0x1e1   : > { %v5972_v50 = vpop.f32.mrb[87].mxu1 }
 0x1e2   : > { %v2731_v52 = vadd.f32 %v2710_v57, %v2579_v27 }
 0x1e5   : > { %v2563_v62 = vpop.f32.mrb[88].mxu0 }
 0x1e6   : > { %v2580_v51 = vadd.f32 %v2563_v62, %v2440_v61  ;;  %v5947_v0 = vpop.f32.mrb[89].mxu0  ;;  %v2715_v3 = vpop.f32.mrb[88].mxu1 }
 0x1e7   : > { %v2566_v5 = vpop.f32.mrb[90].mxu0  ;;  %v5975_v6 = vpop.f32.mrb[89].mxu1 }
 0x1e8   : > { %v2581_v59 = vadd.f32 %v2566_v5, %v2441_v37  ;;  %v2732_v29 = vadd.f32 %v2715_v3, %v2580_v51  ;;  %v2718_v7 = vpop.f32.mrb[90].mxu1  ;;  %v5948_v63 = vpop.f32.mrb[91].mxu0 }
 0x1e9   : > { %v5976_v8 = vpop.f32.mrb[91].mxu1 }
 0x1ea   : > { %v2733_v9 = vadd.f32 %v2718_v7, %v2581_v59 }
 0x1ed   : > { %v2571_v60 = vpop.f32.mrb[92].mxu0 }
 0x1ee   : > { %v2582_v4 = vadd.f32 %v2571_v60, %v2442_v41  ;;  %v5951_v58 = vpop.f32.mrb[93].mxu0  ;;  %v2723_v13 = vpop.f32.mrb[92].mxu1 }
 0x1ef   : > { %v2574_v14 = vpop.f32.mrb[94].mxu0  ;;  %v5979_v10 = vpop.f32.mrb[93].mxu1 }
 0x1f0   : > { %v2583_v48 = vadd.f32 %v2574_v14, %v2443_v46  ;;  %v2734_v16 = vadd.f32 %v2723_v13, %v2582_v4  ;;  %v2726_v2 = vpop.f32.mrb[94].mxu1  ;;  %v5952_v54 = vpop.f32.mrb[95].mxu0 }
 0x1f1   : > { %v5980_v19 = vpop.f32.mrb[95].mxu1 }
 0x1f2   : > { %v2735_v42 = vadd.f32 %v2726_v2, %v2583_v48 }
 0x1fd   : > { %v2865_v18 = vpop.f32.mrb[96].mxu0 }
 0x1fe   : > { %v2888_v21 = vadd.f32 %v2865_v18, %v2730_v44  ;;  %v3005_v11 = vpop.f32.mrb[96].mxu1  ;;  %v5999_v25 = vpop.f32.mrb[97].mxu0 }
 0x1ff   : > { %v6027_v12 = vpop.f32.mrb[97].mxu1  ;;  %v2868_v26 = vpop.f32.mrb[98].mxu0 }
 0x200   : > { %v3028_v15 = vadd.f32 %v3005_v11, %v2888_v21  ;;  %v2889_v30 = vadd.f32 %v2868_v26, %v2731_v52  ;;  %v3008_v24 = vpop.f32.mrb[98].mxu1  ;;  %v6000_v61 = vpop.f32.mrb[99].mxu0 }
 0x201   : > { %v6028_v32 = vpop.f32.mrb[99].mxu1 }
 0x202   : > { %v3029_v33 = vadd.f32 %v3008_v24, %v2889_v30 }
 0x205   : > { %v2873_v56 = vpop.f32.mrb[100].mxu0 }
 0x206   : > { %v2890_v36 = vadd.f32 %v2873_v56, %v2732_v29  ;;  %v6003_v37 = vpop.f32.mrb[101].mxu0  ;;  %v3013_v31 = vpop.f32.mrb[100].mxu1 }
 0x207   : > { %v2876_v23 = vpop.f32.mrb[102].mxu0  ;;  %v6031_v38 = vpop.f32.mrb[101].mxu1 }
 0x208   : > { %v2891_v35 = vadd.f32 %v2876_v23, %v2733_v9  ;;  %v3030_v39 = vadd.f32 %v3013_v31, %v2890_v36  ;;  %v3016_v40 = vpop.f32.mrb[102].mxu1  ;;  %v6004_v20 = vpop.f32.mrb[103].mxu0 }
 0x209   : > { %v6032_v41 = vpop.f32.mrb[103].mxu1 }
 0x20a   : > { %v3031_v43 = vadd.f32 %v3016_v40, %v2891_v35 }
 0x20d   : > { %v2881_v17 = vpop.f32.mrb[104].mxu0 }
 0x20e   : > { %v2892_v45 = vadd.f32 %v2881_v17, %v2734_v16  ;;  %v6007_v46 = vpop.f32.mrb[105].mxu0  ;;  %v3021_v47 = vpop.f32.mrb[104].mxu1 }
 0x20f   : > { %v2884_v49 = vpop.f32.mrb[106].mxu0  ;;  %v6035_v28 = vpop.f32.mrb[105].mxu1 }
 0x210   : > { %v2893_v34 = vadd.f32 %v2884_v49, %v2735_v42  ;;  %v3032_v53 = vadd.f32 %v3021_v47, %v2892_v45  ;;  %v3024_v55 = vpop.f32.mrb[106].mxu1  ;;  %v6008_v44 = vpop.f32.mrb[107].mxu0 }
 0x211   : > { %v6036_v27 = vpop.f32.mrb[107].mxu1 }
 0x212   : > { %v3033_v57 = vadd.f32 %v3024_v55, %v2893_v34 }
 0x21d   : > { %v3157_v22 = vpop.f32.mrb[108].mxu0 }
 0x21e   : > { %v3180_v50 = vadd.f32 %v3157_v22, %v3028_v15  ;;  %v3315_v52 = vpop.f32.mrb[108].mxu1  ;;  %v6055_v62 = vpop.f32.mrb[109].mxu0 }
 0x21f   : > { %v6083_v51 = vpop.f32.mrb[109].mxu1  ;;  %v3160_v0 = vpop.f32.mrb[110].mxu0 }
 0x220   : > { %v3338_v3 = vadd.f32 %v3315_v52, %v3180_v50  ;;  %v3181_v5 = vadd.f32 %v3160_v0, %v3029_v33  ;;  %v3318_v6 = vpop.f32.mrb[110].mxu1  ;;  %v6056_v59 = vpop.f32.mrb[111].mxu0 }
 0x221   : > { %v6084_v29 = vpop.f32.mrb[111].mxu1 }
 0x222   : > { %v3339_v7 = vadd.f32 %v3318_v6, %v3181_v5 }
 0x225   : > { %v3165_v63 = vpop.f32.mrb[112].mxu0 }
 0x226   : > { %v3182_v8 = vadd.f32 %v3165_v63, %v3030_v39  ;;  %v6059_v9 = vpop.f32.mrb[113].mxu0  ;;  %v3323_v60 = vpop.f32.mrb[112].mxu1 }
 0x227   : > { %v3168_v4 = vpop.f32.mrb[114].mxu0  ;;  %v6087_v58 = vpop.f32.mrb[113].mxu1 }
 0x228   : > { %v3183_v13 = vadd.f32 %v3168_v4, %v3031_v43  ;;  %v3340_v1 = vadd.f32 %v3323_v60, %v3182_v8  ;;  %v3326_v14 = vpop.f32.mrb[114].mxu1  ;;  %v6060_v10 = vpop.f32.mrb[115].mxu0 }
 0x229   : > { %v6088_v48 = vpop.f32.mrb[115].mxu1 }
 0x22a   : > { %v3341_v16 = vadd.f32 %v3326_v14, %v3183_v13 }
 0x22d   : > { %v3173_v2 = vpop.f32.mrb[116].mxu0 }
 0x22e   : > { %v3184_v54 = vadd.f32 %v3173_v2, %v3032_v53  ;;  %v6063_v19 = vpop.f32.mrb[117].mxu0  ;;  %v3331_v42 = vpop.f32.mrb[116].mxu1 }
 0x22f   : > { %v3176_v18 = vpop.f32.mrb[118].mxu0  ;;  %v6091_v21 = vpop.f32.mrb[117].mxu1 }
 0x230   : > { %v3185_v11 = vadd.f32 %v3176_v18, %v3033_v57  ;;  %v3342_v25 = vadd.f32 %v3331_v42, %v3184_v54  ;;  %v3334_v12 = vpop.f32.mrb[118].mxu1  ;;  %v6064_v26 = vpop.f32.mrb[119].mxu0 }
 0x231   : > { %v6092_v15 = vpop.f32.mrb[119].mxu1 }
 0x232   : > { %v3343_v30 = vadd.f32 %v3334_v12, %v3185_v11 }
 0x23d   : > { %v3455_v24 = vpop.f32.mrb[120].mxu0 }
 0x23e   : > { %v3478_v61 = vadd.f32 %v3455_v24, %v3338_v3  ;;  %v3607_v32 = vpop.f32.mrb[120].mxu1  ;;  %v6111_v33 = vpop.f32.mrb[121].mxu0 }
 0x23f   : > { %v6139_v56 = vpop.f32.mrb[121].mxu1  ;;  %v3458_v36 = vpop.f32.mrb[122].mxu0 }
 0x240   : > { %v3630_v37 = vadd.f32 %v3607_v32, %v3478_v61  ;;  %v3479_v31 = vadd.f32 %v3458_v36, %v3339_v7  ;;  %v3610_v23 = vpop.f32.mrb[122].mxu1  ;;  %v6112_v38 = vpop.f32.mrb[123].mxu0 }
 0x241   : > { %v6140_v35 = vpop.f32.mrb[123].mxu1 }
 0x242   : > { %v3631_v39 = vadd.f32 %v3610_v23, %v3479_v31 }
 0x245   : > { %v3463_v40 = vpop.f32.mrb[124].mxu0 }
 0x246   : > { %v3480_v20 = vadd.f32 %v3463_v40, %v3340_v1  ;;  %v6115_v41 = vpop.f32.mrb[125].mxu0  ;;  %v3615_v43 = vpop.f32.mrb[124].mxu1 }
 0x247   : > { %v3466_v17 = vpop.f32.mrb[126].mxu0  ;;  %v6143_v45 = vpop.f32.mrb[125].mxu1 }
 0x248   : > { %v3481_v46 = vadd.f32 %v3466_v17, %v3341_v16  ;;  %v3632_v47 = vadd.f32 %v3615_v43, %v3480_v20  ;;  %v3618_v49 = vpop.f32.mrb[126].mxu1  ;;  %v6116_v28 = vpop.f32.mrb[127].mxu0 }
 0x249   : > { %v6144_v34 = vpop.f32.mrb[127].mxu1 }
 0x24a   : > { %v3633_v53 = vadd.f32 %v3618_v49, %v3481_v46 }
 0x24d   : > { %v3471_v55 = vpop.f32.mrb[128].mxu0 }
 0x24e   : > { %v3482_v44 = vadd.f32 %v3471_v55, %v3342_v25  ;;  %v6119_v27 = vpop.f32.mrb[129].mxu0  ;;  %v3623_v57 = vpop.f32.mrb[128].mxu1 }
 0x24f   : > { %v3474_v22 = vpop.f32.mrb[130].mxu0  ;;  %v6147_v50 = vpop.f32.mrb[129].mxu1 }
 0x250   : > { %v3483_v52 = vadd.f32 %v3474_v22, %v3343_v30  ;;  %v3634_v62 = vadd.f32 %v3623_v57, %v3482_v44  ;;  %v3626_v51 = vpop.f32.mrb[130].mxu1  ;;  %v6120_v0 = vpop.f32.mrb[131].mxu0 }
 0x251   : > { %v6148_v3 = vpop.f32.mrb[131].mxu1 }
 0x252   : > { %v3635_v5 = vadd.f32 %v3626_v51, %v3483_v52 }
 0x25d   : > { %v3765_v6 = vpop.f32.mrb[132].mxu0 }
 0x25e   : > { %v3788_v59 = vadd.f32 %v3765_v6, %v3630_v37  ;;  %v3905_v29 = vpop.f32.mrb[132].mxu1  ;;  %v6167_v7 = vpop.f32.mrb[133].mxu0 }
 0x25f   : > { %v6195_v63 = vpop.f32.mrb[133].mxu1  ;;  %v3768_v8 = vpop.f32.mrb[134].mxu0 }
 0x260   : > { %v3928_v9 = vadd.f32 %v3905_v29, %v3788_v59  ;;  %v3789_v60 = vadd.f32 %v3768_v8, %v3631_v39  ;;  %v3908_v4 = vpop.f32.mrb[134].mxu1  ;;  %v6168_v58 = vpop.f32.mrb[135].mxu0 }
 0x261   : > { %v6196_v13 = vpop.f32.mrb[135].mxu1 }
 0x262   : > { %v3929_v1 = vadd.f32 %v3908_v4, %v3789_v60  ;;  %v5233_v4 = vld [vmem:[%s8207_s4] ss:$0 sm:$0xff] }
 0x265   : > { %v3773_v14 = vpop.f32.mrb[136].mxu0 }
 0x266   : > { %v3790_v10 = vadd.f32 %v3773_v14, %v3632_v47  ;;  %v6171_v48 = vpop.f32.mrb[137].mxu0  ;;  %v3913_v16 = vpop.f32.mrb[136].mxu1 }
 0x267   : > { %v3776_v2 = vpop.f32.mrb[138].mxu0  ;;  %v6199_v54 = vpop.f32.mrb[137].mxu1 }
 0x268   : > { %v3791_v19 = vadd.f32 %v3776_v2, %v3633_v53  ;;  %v3930_v42 = vadd.f32 %v3913_v16, %v3790_v10  ;;  %v3916_v18 = vpop.f32.mrb[138].mxu1  ;;  %v6172_v21 = vpop.f32.mrb[139].mxu0 }
 0x269   : > { %v6200_v11 = vpop.f32.mrb[139].mxu1 }
 0x26a   : > { %v3931_v25 = vadd.f32 %v3916_v18, %v3791_v19 }
 0x26d   : > { %v3781_v12 = vpop.f32.mrb[140].mxu0 }
 0x26e   : > { %v3792_v26 = vadd.f32 %v3781_v12, %v3634_v62  ;;  %v6175_v15 = vpop.f32.mrb[141].mxu0  ;;  %v3921_v30 = vpop.f32.mrb[140].mxu1 }
 0x26f   : > { %v3784_v24 = vpop.f32.mrb[142].mxu0  ;;  %v6203_v61 = vpop.f32.mrb[141].mxu1 }
 0x270   : > { %v3793_v32 = vadd.f32 %v3784_v24, %v3635_v5  ;;  %v3932_v33 = vadd.f32 %v3921_v30, %v3792_v26  ;;  %v3924_v56 = vpop.f32.mrb[142].mxu1  ;;  %v6176_v36 = vpop.f32.mrb[143].mxu0 }
 0x271   : > { %v6204_v37 = vpop.f32.mrb[143].mxu1 }
 0x272   : > { %v3933_v31 = vadd.f32 %v3924_v56, %v3793_v32 }
 0x27d   : > { %v4057_v23 = vpop.f32.mrb[144].mxu0 }
 0x27e   : > { %v4080_v38 = vadd.f32 %v4057_v23, %v3928_v9  ;;  %v4215_v35 = vpop.f32.mrb[144].mxu1  ;;  %v6223_v39 = vpop.f32.mrb[145].mxu0 }
 0x27f   : > { %v6251_v40 = vpop.f32.mrb[145].mxu1  ;;  %v4060_v20 = vpop.f32.mrb[146].mxu0 }
 0x280   : > { %v4238_v41 = vadd.f32 %v4215_v35, %v4080_v38  ;;  %v4081_v43 = vadd.f32 %v4060_v20, %v3929_v1  ;;  %v4218_v17 = vpop.f32.mrb[146].mxu1  ;;  %v6224_v45 = vpop.f32.mrb[147].mxu0 }
 0x281   : > { %v6252_v46 = vpop.f32.mrb[147].mxu1 }
 0x282   : > { %v4239_v47 = vadd.f32 %v4218_v17, %v4081_v43 }
 0x285   : > { %v4065_v49 = vpop.f32.mrb[148].mxu0 }
 0x286   : > { %v4082_v28 = vadd.f32 %v4065_v49, %v3930_v42  ;;  %v6227_v34 = vpop.f32.mrb[149].mxu0  ;;  %v4223_v53 = vpop.f32.mrb[148].mxu1 }
 0x287   : > { %v4068_v55 = vpop.f32.mrb[150].mxu0  ;;  %v6255_v44 = vpop.f32.mrb[149].mxu1 }
 0x288   : > { %v4083_v27 = vadd.f32 %v4068_v55, %v3931_v25  ;;  %v4240_v57 = vadd.f32 %v4223_v53, %v4082_v28  ;;  %v4226_v22 = vpop.f32.mrb[150].mxu1  ;;  %v6228_v50 = vpop.f32.mrb[151].mxu0 }
 0x289   : > { %v6256_v52 = vpop.f32.mrb[151].mxu1 }
 0x28a   : > { %v4241_v62 = vadd.f32 %v4226_v22, %v4083_v27 }
 0x28d   : > { %v4073_v51 = vpop.f32.mrb[152].mxu0 }
 0x28e   : > { %v4084_v0 = vadd.f32 %v4073_v51, %v3932_v33  ;;  %v6231_v3 = vpop.f32.mrb[153].mxu0  ;;  %v4231_v5 = vpop.f32.mrb[152].mxu1 }
 0x28f   : > { %v4076_v6 = vpop.f32.mrb[154].mxu0  ;;  %v6259_v59 = vpop.f32.mrb[153].mxu1 }
 0x290   : > { %v4085_v29 = vadd.f32 %v4076_v6, %v3933_v31  ;;  %v4242_v7 = vadd.f32 %v4231_v5, %v4084_v0  ;;  %v4234_v63 = vpop.f32.mrb[154].mxu1  ;;  %v6232_v8 = vpop.f32.mrb[155].mxu0 }
 0x291   : > { %v6260_v9 = vpop.f32.mrb[155].mxu1 }
 0x292   : > { %v4243_v60 = vadd.f32 %v4234_v63, %v4085_v29 }
 0x29d   : > { %v4355_v58 = vpop.f32.mrb[156].mxu0 }
 0x29e   : > { %v4378_v13 = vadd.f32 %v4355_v58, %v4238_v41  ;;  %v4363_v1 = vpop.f32.mrb[156].mxu1  ;;  %v6279_v14 = vpop.f32.mrb[157].mxu0 }
 0x29f   : > { %v4380_v10 = vadd.f32 %v4363_v1, %v4240_v57  ;;  %v6283_v48 = vpop.f32.mrb[157].mxu1  ;;  %v4358_v16 = vpop.f32.mrb[158].mxu0 }
 0x2a0   : > { %v4390_v2 = vadd.f32 %v5233_v4, %v4378_v13  ;;  %v4379_v54 = vadd.f32 %v4358_v16, %v4239_v47  ;;  %v4366_v19 = vpop.f32.mrb[158].mxu1  ;;  %v6280_v42 = vpop.f32.mrb[159].mxu0 }
 0x2a1   : > { %v4392_v18 = vadd.f32 %v5233_v4, %v4380_v10  ;;  %v4381_v21 = vadd.f32 %v4366_v19, %v4241_v62  ;;  %v6284_v11 = vpop.f32.mrb[159].mxu1 }
 0x2a2   : > { %4396 = vst [vmem:[%s8171_s15] sm:$0xff] %v4390_v2  ;;  %v4391_v25 = vadd.f32 %v5233_v4, %v4379_v54 }
 0x2a3   : > { %4398 = vst [vmem:[%s8171_s15 + $0x10] sm:$0xff] %v4392_v18  ;;  %v4393_v12 = vadd.f32 %v5233_v4, %v4381_v21 }
 0x2a4   : > { %4397 = vst [vmem:[%s8171_s15 + $0x8] sm:$0xff] %v4391_v25 }
 0x2a5   : > { %4399 = vst [vmem:[%s8171_s15 + $0x18] sm:$0xff] %v4393_v12 }
 0x2a6   : > { %v4371_v26 = vpop.f32.mrb[160].mxu1 }
 0x2a7   : > { %v4382_v15 = vadd.f32 %v4371_v26, %v4242_v7  ;;  %v6287_v30 = vpop.f32.mrb[161].mxu1 }
 0x2a8   : > { %v4374_v24 = vpop.f32.mrb[162].mxu1 }
 0x2a9   : > { %v4394_v61 = vadd.f32 %v5233_v4, %v4382_v15  ;;  %v4383_v32 = vadd.f32 %v4374_v24, %v4243_v60  ;;  %v6288_v33 = vpop.f32.mrb[163].mxu1 }
 0x2ab   : > { %4400 = vst [vmem:[%s8171_s15 + $0x20] sm:$0xff] %v4394_v61  ;;  %v4395_v56 = vadd.f32 %v5233_v4, %v4383_v32 }
 0x2ad   : > { %4401 = vst [vmem:[%s8171_s15 + $0x28] sm:$0x3f] %v4395_v56 }
 0x2ae PF: > { %s15_s22 = sadd.s32 1, %s6647_s22   ;;  %s8209_s18 = smov %s6639_s20 }
 0x2af   : > { %p12_p10 = scmp.ge.s32.totalorder %s15_s22, 10   ;;  %s8210_s19 = smov %s6643_s21 }
 0x2b0   : > { %s8211_s20 = smov %s8214_s23  ;;  %s8212_s21 = smov %s8218_s24 }
 0x2b1   :  { %14 = sbr.rel (!%p12_p10) target bundleno = 3 (0x3), region = 102 }

</bundles_post_ra>
